<compile_context>
chip_gen: v5e
topology: v5e:2x2
jax: 0.10.0
libtpu: 0.0.40
codegen_flags: <defaults>
</compile_context>

<pallas_src>
import functools

import jax
import jax.numpy as jnp
from jax.experimental import pallas as pl
from jax.experimental.pallas import tpu as pltpu

K_TOP = 10
_DEFAULT_TILE = 1024          # max rows (pairs) per grid step; multiple of 8


def _round_up(x, m):
    return ((x + m - 1) // m) * m


def _cdiv(a, b):
    return (a + b - 1) // b


def _sigmoid_topk_kernel(scores_ref, sig_ref, vals_ref, idx_ref, *, k):
    tp, c = scores_ref.shape
    x = jax.nn.sigmoid(scores_ref[...].astype(jnp.float32))        # (tp, c), in (0, 1)
    sig_ref[...] = x.astype(sig_ref.dtype)

    hi_mask = jnp.int32(~0x7F)
    lo_mask = jnp.int32(0x7F)

    # Packed sortable key: positive-f32 bitcast is monotone in the value; the
    # low 7 mantissa bits are replaced by (c-1-col) so one integer max gives
    # both the max-value bucket and the smallest-index tie-break.  Keys are
    # therefore unique per lane -> the selection mask is just (key == kmax).
    col_ids = jax.lax.broadcasted_iota(jnp.int32, (tp, c), 1)       # hoisted, loop-free
    idx_field = (c - 1) - col_ids                                    # 0..c-1 (c <= 128)
    bits = pltpu.bitcast(x, jnp.int32)
    key = (bits & hi_mask) | idx_field
    low7_bf16 = (bits & lo_mask).astype(jnp.bfloat16)                # 0..127, exact in bf16
    ones = jnp.ones((c, 128), jnp.bfloat16)                          # bf16 MXU weights, 1 pass

    neg = jnp.int32(jnp.iinfo(jnp.int32).min)
    val_cols = []
    idx_cols = []
    for _ in range(k):                                               # unrolled: k = 10
        kmax = jnp.max(key, axis=-1, keepdims=True)                  # the only XLU reduce / iter
        mask = key == kmax                                           # unique winner per row
        sel_idx = (c - 1) - (kmax & lo_mask)                         # (tp, 1) int32, in range

        # Exact value recovery: fetch the 7 truncated mantissa bits with a bf16
        # MXU row-sum (single integer nonzero per row -> exact).
        low_sel = jnp.dot(jnp.where(mask, low7_bf16, jnp.bfloat16(0)), ones,
                          preferred_element_type=jnp.float32)[:, :1]
        low_int = low_sel.astype(jnp.int32)                          # already an exact integer
        val = pltpu.bitcast((kmax & hi_mask) | low_int, jnp.float32)

        val_cols.append(val)
        idx_cols.append(sel_idx)
        key = jnp.where(mask, neg, key)                              # retire the selected class

    # One block store per output instead of k masked single-lane column stores.
    vals_ref[...] = jnp.concatenate(val_cols, axis=1).astype(vals_ref.dtype)
    idx_ref[...] = jnp.concatenate(idx_cols, axis=1)


def sigmoid_topk(scores, *, k=K_TOP, max_tile=_DEFAULT_TILE, min_grid_steps=2):
    """scores: (N, C) float logits (native dtype).

    Returns (sigmoid(scores), topk_vals (N, k), topk_idx (N, k) int32)."""
    n, c = scores.shape
    if c > 128:
        raise ValueError("class axis must fit the 7-bit tie-break field (C <= 128)")
    if n == 0:
        return (jnp.zeros((0, c), scores.dtype),
                jnp.zeros((0, k), scores.dtype),
                jnp.zeros((0, k), jnp.int32))

    # Tile choice: largest multiple of 8 that still yields >= min_grid_steps grid
    # steps (v7x dual-TC occupancy), capped at max_tile.  Pad N to an exact tile
    # multiple so no grid block ever reads a partial window.
    n8 = _round_up(n, 8)
    tile = min(max_tile, max(8, _round_up(_cdiv(n8, min_grid_steps), 8)))
    grid_n = _cdiv(n8, tile)
    n_pad = grid_n * tile
    if n_pad != n:
        scores = jnp.pad(scores, ((0, n_pad - n), (0, 0)))

    kernel = functools.partial(_sigmoid_topk_kernel, k=k)
    sig, vals, idx = pl.pallas_call(
        kernel,
        out_shape=(
            jax.ShapeDtypeStruct((n_pad, c), scores.dtype),
            jax.ShapeDtypeStruct((n_pad, k), scores.dtype),
            jax.ShapeDtypeStruct((n_pad, k), jnp.int32),
        ),
        grid=(grid_n,),
        in_specs=[pl.BlockSpec((tile, c), lambda i: (i, 0))],
        out_specs=(
            pl.BlockSpec((tile, c), lambda i: (i, 0)),
            pl.BlockSpec((tile, k), lambda i: (i, 0)),
            pl.BlockSpec((tile, k), lambda i: (i, 0)),
        ),
        compiler_params=pltpu.CompilerParams(dimension_semantics=("parallel",)),
    )(scores)
    return sig[:n], vals[:n], idx[:n]


def vrd_relationship_phrase_forward(net_out, batch):
    """JAX/Pallas equivalent of VRDRelationshipPhrase.forward's tensor path."""
    rel_logits = net_out["rel_scores"][1]                # (total_npairs, nclasses)
    nclasses = rel_logits.shape[1]

    rel_scores, topk_vals, topk_idx = sigmoid_topk(rel_logits)   # hot path in Pallas

    per_image = []
    npairs_count = 0
    batch_size = len(batch["idx"])
    for i in range(batch_size):
        nboxes = int(batch["n_boxes"][i])
        npairs = int(batch["n_pairs"][i])
        if nboxes == 0:
            per_image.append(None)
        else:
            b, e = npairs_count, npairs_count + npairs
            per_image.append({
                "rel_score": rel_scores[b:e].reshape(nboxes, nboxes, nclasses),
                "rel_prob": (
                    topk_vals[b:e].reshape(nboxes, nboxes, K_TOP),
                    topk_idx[b:e].reshape(nboxes, nboxes, K_TOP),
                ),
            })
        npairs_count += npairs

    # TODO(synk): vrd_utils.item_to_det / annot_to_gt / eval_batch(_union) and the
    # recall bookkeeping are host-side NumPy box matching over raw dataset
    # annotations (variable-size per image); no Pallas equivalent — they stay
    # outside the kernel, as does the per-image Python slicing loop above.
    return {
        "rel_scores": rel_scores,
        "rel_prob": (topk_vals, topk_idx),
        "per_image": per_image,
    }


if __name__ == "__main__":
    key = jax.random.PRNGKey(0)

    # Small synthetic batch: 2 images, 8 boxes each -> 64 pairs each, 70 predicates.
    batch_size = 2
    nboxes_per_img = 8
    nclasses = 70
    npairs_per_img = nboxes_per_img * nboxes_per_img     # 64
    total_npairs = batch_size * npairs_per_img           # 128

    k0, k1, k2 = jax.random.split(key, 3)
    rel_logits_aux = jax.random.normal(k0, (total_npairs, nclasses), dtype=jnp.float32)
    rel_logits = jax.random.normal(k1, (total_npairs, nclasses), dtype=jnp.float32)

    net_out = {"rel_scores": (rel_logits_aux, rel_logits)}   # forward uses index [1]
    batch = {
        "idx": list(range(batch_size)),
        "n_boxes": [nboxes_per_img] * batch_size,
        "n_pairs": [npairs_per_img] * batch_size,
    }

    out = vrd_relationship_phrase_forward(net_out, batch)
    jax.block_until_ready(out["rel_scores"])

    sig = out["rel_scores"]
    vals, idx = out["rel_prob"]

    # ---- f32 reference checks against plain JAX ----
    ref_sig = jax.nn.sigmoid(rel_logits)
    ref_vals, ref_idx = jax.lax.top_k(ref_sig, K_TOP)

    # Sigmoid output matches XLA's to fp precision.
    assert jnp.allclose(sig, ref_sig, atol=1e-6)
    # Top-k values match; positional order may differ only for scores closer
    # than ~2^-17 relative (well inside 2e-5).
    assert jnp.allclose(vals, ref_vals, atol=2e-5)
    # Indices are valid and the returned values are exact gathers at those indices.
    assert bool(jnp.all((idx >= 0) & (idx < nclasses)))
    gathered = jnp.take_along_axis(sig, idx, axis=-1)
    assert jnp.allclose(gathered, vals, atol=1e-6)
    # Where the reference top-(k+1) scores are well separated (no near-ties),
    # indices must match jax/torch top-k exactly.
    ref_vals_k1, _ = jax.lax.top_k(ref_sig, K_TOP + 1)
    gaps = ref_vals_k1[:, :-1] - ref_vals_k1[:, 1:]
    safe = jnp.all(gaps > 1e-4, axis=-1, keepdims=True)
    assert bool(jnp.all(jnp.where(safe, idx == ref_idx, True)))

    # Per-image reshaped views line up with the flat arrays.
    item0 = out["per_image"][0]
    assert item0["rel_score"].shape == (nboxes_per_img, nboxes_per_img, nclasses)
    assert item0["rel_prob"][0].shape == (nboxes_per_img, nboxes_per_img, K_TOP)
    assert jnp.allclose(
        item0["rel_prob"][0].reshape(-1, K_TOP), ref_vals[:npairs_per_img], atol=2e-5
    )

    # ---- bf16-input check (exercises the pad-to-tile path and mixed dtype) ----
    logits_bf16 = jax.random.normal(k2, (40, nclasses), dtype=jnp.float32).astype(jnp.bfloat16)
    sig_b, vals_b, idx_b = sigmoid_topk(logits_bf16)
    jax.block_until_ready(sig_b)
    assert sig_b.dtype == jnp.bfloat16 and vals_b.dtype == jnp.bfloat16
    assert bool(jnp.all((idx_b >= 0) & (idx_b < nclasses)))
    # Returned values are bit-exact gathers of the emitted sigmoid output.
    gathered_b = jnp.take_along_axis(sig_b, idx_b, axis=-1)
    assert bool(jnp.all(gathered_b == vals_b))
    # And close to the f32 reference within bf16 rounding.
    ref_sig_b = jax.nn.sigmoid(logits_bf16.astype(jnp.float32))
    ref_vals_b, _ = jax.lax.top_k(ref_sig_b, K_TOP)
    assert jnp.allclose(vals_b.astype(jnp.float32), ref_vals_b, atol=5e-3)

    print("KERNEL_OK")
</pallas_src>

<mosaic_0001>
module attributes {stable_mosaic.version = 11 : i64} {
  func.func @_sigmoid_topk_kernel(%arg0: i32, %arg1: memref<64x70xf32, #tpu.memory_space<vmem>>, %arg2: memref<64x70xf32, #tpu.memory_space<vmem>>, %arg3: memref<64x10xf32, #tpu.memory_space<vmem>>, %arg4: memref<64x10xi32, #tpu.memory_space<vmem>>) attributes {dimension_semantics = [#tpu.dimension_semantics<parallel>], iteration_bounds = array<i64: 2>, scalar_prefetch = 0 : i64, scratch_operands = 0 : i64, tpu.core_type = #tpu.core_type<tc>, window_params = [{transform_indices = @transform_0, window_bounds = array<i64: 64, 70>}, {transform_indices = @transform_1, window_bounds = array<i64: 64, 70>}, {transform_indices = @transform_2, window_bounds = array<i64: 64, 10>}, {transform_indices = @transform_3, window_bounds = array<i64: 64, 10>}]} {
    %c0 = arith.constant 0 : index
    %c0_0 = arith.constant 0 : index
    %0 = vector.load %arg1[%c0, %c0_0] : memref<64x70xf32, #tpu.memory_space<vmem>>, vector<64x70xf32>
    %1 = arith.negf %0 : vector<64x70xf32>
    %2 = math.exp %1 : vector<64x70xf32>
    %cst = arith.constant 1.000000e+00 : f32
    %3 = vector.broadcast %cst : f32 to vector<64x70xf32>
    %4 = arith.addf %3, %2 : vector<64x70xf32>
    %5 = arith.divf %3, %4 : vector<64x70xf32>
    %c0_1 = arith.constant 0 : index
    %c0_2 = arith.constant 0 : index
    %6 = vector.load %arg2[%c0_1, %c0_2] : memref<64x70xf32, #tpu.memory_space<vmem>>, vector<64x70xf32>
    tpu.vector_store %arg2[%c0_1, %c0_2], %5 {strides = array<i32>} : memref<64x70xf32, #tpu.memory_space<vmem>>, vector<64x70xf32>,
    %7 = tpu.iota {dimensions = array<i32: 1>} : vector<64x70xi32>
    %c69_i32 = arith.constant 69 : i32
    %8 = vector.broadcast %c69_i32 : i32 to vector<64x70xi32>
    %9 = arith.subi %8, %7 : vector<64x70xi32>
    %10 = tpu.bitcast %5 : vector<64x70xf32> -> vector<64x70xi32>
    %c-128_i32 = arith.constant -128 : i32
    %11 = vector.broadcast %c-128_i32 : i32 to vector<64x70xi32>
    %12 = arith.andi %10, %11 : vector<64x70xi32>
    %13 = arith.ori %12, %9 : vector<64x70xi32>
    %c127_i32 = arith.constant 127 : i32
    %14 = vector.broadcast %c127_i32 : i32 to vector<64x70xi32>
    %15 = arith.andi %10, %14 : vector<64x70xi32>
    %16 = arith.sitofp %15 : vector<64x70xi32> to vector<64x70xbf16>
    %cst_3 = arith.constant 1.000000e+00 : bf16
    %17 = vector.broadcast %cst_3 : bf16 to vector<70x128xbf16>
    %cst_4 = arith.constant dense<-2147483648> : vector<64xi32>
    %18 = vector.multi_reduction <maxsi>, %13, %cst_4 [1] : vector<64x70xi32> to vector<64xi32>
    %19 = vector.shape_cast %18 : vector<64xi32> to vector<64x1xi32>
    %20 = vector.broadcast %19 : vector<64x1xi32> to vector<64x70xi32>
    %21 = arith.cmpi eq, %13, %20 : vector<64x70xi32>
    %c127_i32_5 = arith.constant 127 : i32
    %22 = vector.broadcast %c127_i32_5 : i32 to vector<64x1xi32>
    %23 = arith.andi %19, %22 : vector<64x1xi32>
    %c69_i32_6 = arith.constant 69 : i32
    %24 = vector.broadcast %c69_i32_6 : i32 to vector<64x1xi32>
    %25 = arith.subi %24, %23 : vector<64x1xi32>
    %cst_7 = arith.constant 0.000000e+00 : bf16
    %26 = vector.broadcast %cst_7 : bf16 to vector<64x70xbf16>
    %27 = arith.select %21, %16, %26 : vector<64x70xi1>, vector<64x70xbf16>
    %cst_8 = arith.constant dense<0.000000e+00> : vector<64x128xf32>
    %28 = tpu.matmul %27, %17, %cst_8 {dimension_numbers = #tpu.dot_dimension_numbers<[1], [0], [0], [1], [0, 0, 1, 1], [], []>} : vector<64x70xbf16>, vector<70x128xbf16>, vector<64x128xf32> -> vector<64x128xf32>
    %29 = vector.extract_strided_slice %28 {offsets = [0, 0], sizes = [64, 1], strides = [1, 1]} : vector<64x128xf32> to vector<64x1xf32>
    %30 = arith.fptosi %29 : vector<64x1xf32> to vector<64x1xi32>
    %c-128_i32_9 = arith.constant -128 : i32
    %31 = vector.broadcast %c-128_i32_9 : i32 to vector<64x1xi32>
    %32 = arith.andi %19, %31 : vector<64x1xi32>
    %33 = arith.ori %32, %30 : vector<64x1xi32>
    %34 = tpu.bitcast %33 : vector<64x1xi32> -> vector<64x1xf32>
    %c-2147483648_i32 = arith.constant -2147483648 : i32
    %35 = vector.broadcast %c-2147483648_i32 : i32 to vector<64x70xi32>
    %36 = arith.select %21, %35, %13 : vector<64x70xi1>, vector<64x70xi32>
    %cst_10 = arith.constant dense<-2147483648> : vector<64xi32>
    %37 = vector.multi_reduction <maxsi>, %36, %cst_10 [1] : vector<64x70xi32> to vector<64xi32>
    %38 = vector.shape_cast %37 : vector<64xi32> to vector<64x1xi32>
    %39 = vector.broadcast %38 : vector<64x1xi32> to vector<64x70xi32>
    %40 = arith.cmpi eq, %36, %39 : vector<64x70xi32>
    %c127_i32_11 = arith.constant 127 : i32
    %41 = vector.broadcast %c127_i32_11 : i32 to vector<64x1xi32>
    %42 = arith.andi %38, %41 : vector<64x1xi32>
    %c69_i32_12 = arith.constant 69 : i32
    %43 = vector.broadcast %c69_i32_12 : i32 to vector<64x1xi32>
    %44 = arith.subi %43, %42 : vector<64x1xi32>
    %cst_13 = arith.constant 0.000000e+00 : bf16
    %45 = vector.broadcast %cst_13 : bf16 to vector<64x70xbf16>
    %46 = arith.select %40, %16, %45 : vector<64x70xi1>, vector<64x70xbf16>
    %cst_14 = arith.constant dense<0.000000e+00> : vector<64x128xf32>
    %47 = tpu.matmul %46, %17, %cst_14 {dimension_numbers = #tpu.dot_dimension_numbers<[1], [0], [0], [1], [0, 0, 1, 1], [], []>} : vector<64x70xbf16>, vector<70x128xbf16>, vector<64x128xf32> -> vector<64x128xf32>
    %48 = vector.extract_strided_slice %47 {offsets = [0, 0], sizes = [64, 1], strides = [1, 1]} : vector<64x128xf32> to vector<64x1xf32>
    %49 = arith.fptosi %48 : vector<64x1xf32> to vector<64x1xi32>
    %c-128_i32_15 = arith.constant -128 : i32
    %50 = vector.broadcast %c-128_i32_15 : i32 to vector<64x1xi32>
    %51 = arith.andi %38, %50 : vector<64x1xi32>
    %52 = arith.ori %51, %49 : vector<64x1xi32>
    %53 = tpu.bitcast %52 : vector<64x1xi32> -> vector<64x1xf32>
    %c-2147483648_i32_16 = arith.constant -2147483648 : i32
    %54 = vector.broadcast %c-2147483648_i32_16 : i32 to vector<64x70xi32>
    %55 = arith.select %40, %54, %36 : vector<64x70xi1>, vector<64x70xi32>
    %cst_17 = arith.constant dense<-2147483648> : vector<64xi32>
    %56 = vector.multi_reduction <maxsi>, %55, %cst_17 [1] : vector<64x70xi32> to vector<64xi32>
    %57 = vector.shape_cast %56 : vector<64xi32> to vector<64x1xi32>
    %58 = vector.broadcast %57 : vector<64x1xi32> to vector<64x70xi32>
    %59 = arith.cmpi eq, %55, %58 : vector<64x70xi32>
    %c127_i32_18 = arith.constant 127 : i32
    %60 = vector.broadcast %c127_i32_18 : i32 to vector<64x1xi32>
    %61 = arith.andi %57, %60 : vector<64x1xi32>
    %c69_i32_19 = arith.constant 69 : i32
    %62 = vector.broadcast %c69_i32_19 : i32 to vector<64x1xi32>
    %63 = arith.subi %62, %61 : vector<64x1xi32>
    %cst_20 = arith.constant 0.000000e+00 : bf16
    %64 = vector.broadcast %cst_20 : bf16 to vector<64x70xbf16>
    %65 = arith.select %59, %16, %64 : vector<64x70xi1>, vector<64x70xbf16>
    %cst_21 = arith.constant dense<0.000000e+00> : vector<64x128xf32>
    %66 = tpu.matmul %65, %17, %cst_21 {dimension_numbers = #tpu.dot_dimension_numbers<[1], [0], [0], [1], [0, 0, 1, 1], [], []>} : vector<64x70xbf16>, vector<70x128xbf16>, vector<64x128xf32> -> vector<64x128xf32>
    %67 = vector.extract_strided_slice %66 {offsets = [0, 0], sizes = [64, 1], strides = [1, 1]} : vector<64x128xf32> to vector<64x1xf32>
    %68 = arith.fptosi %67 : vector<64x1xf32> to vector<64x1xi32>
    %c-128_i32_22 = arith.constant -128 : i32
    %69 = vector.broadcast %c-128_i32_22 : i32 to vector<64x1xi32>
    %70 = arith.andi %57, %69 : vector<64x1xi32>
    %71 = arith.ori %70, %68 : vector<64x1xi32>
    %72 = tpu.bitcast %71 : vector<64x1xi32> -> vector<64x1xf32>
    %c-2147483648_i32_23 = arith.constant -2147483648 : i32
    %73 = vector.broadcast %c-2147483648_i32_23 : i32 to vector<64x70xi32>
    %74 = arith.select %59, %73, %55 : vector<64x70xi1>, vector<64x70xi32>
    %cst_24 = arith.constant dense<-2147483648> : vector<64xi32>
    %75 = vector.multi_reduction <maxsi>, %74, %cst_24 [1] : vector<64x70xi32> to vector<64xi32>
    %76 = vector.shape_cast %75 : vector<64xi32> to vector<64x1xi32>
    %77 = vector.broadcast %76 : vector<64x1xi32> to vector<64x70xi32>
    %78 = arith.cmpi eq, %74, %77 : vector<64x70xi32>
    %c127_i32_25 = arith.constant 127 : i32
    %79 = vector.broadcast %c127_i32_25 : i32 to vector<64x1xi32>
    %80 = arith.andi %76, %79 : vector<64x1xi32>
    %c69_i32_26 = arith.constant 69 : i32
    %81 = vector.broadcast %c69_i32_26 : i32 to vector<64x1xi32>
    %82 = arith.subi %81, %80 : vector<64x1xi32>
    %cst_27 = arith.constant 0.000000e+00 : bf16
    %83 = vector.broadcast %cst_27 : bf16 to vector<64x70xbf16>
    %84 = arith.select %78, %16, %83 : vector<64x70xi1>, vector<64x70xbf16>
    %cst_28 = arith.constant dense<0.000000e+00> : vector<64x128xf32>
    %85 = tpu.matmul %84, %17, %cst_28 {dimension_numbers = #tpu.dot_dimension_numbers<[1], [0], [0], [1], [0, 0, 1, 1], [], []>} : vector<64x70xbf16>, vector<70x128xbf16>, vector<64x128xf32> -> vector<64x128xf32>
    %86 = vector.extract_strided_slice %85 {offsets = [0, 0], sizes = [64, 1], strides = [1, 1]} : vector<64x128xf32> to vector<64x1xf32>
    %87 = arith.fptosi %86 : vector<64x1xf32> to vector<64x1xi32>
    %c-128_i32_29 = arith.constant -128 : i32
    %88 = vector.broadcast %c-128_i32_29 : i32 to vector<64x1xi32>
    %89 = arith.andi %76, %88 : vector<64x1xi32>
    %90 = arith.ori %89, %87 : vector<64x1xi32>
    %91 = tpu.bitcast %90 : vector<64x1xi32> -> vector<64x1xf32>
    %c-2147483648_i32_30 = arith.constant -2147483648 : i32
    %92 = vector.broadcast %c-2147483648_i32_30 : i32 to vector<64x70xi32>
    %93 = arith.select %78, %92, %74 : vector<64x70xi1>, vector<64x70xi32>
    %cst_31 = arith.constant dense<-2147483648> : vector<64xi32>
    %94 = vector.multi_reduction <maxsi>, %93, %cst_31 [1] : vector<64x70xi32> to vector<64xi32>
    %95 = vector.shape_cast %94 : vector<64xi32> to vector<64x1xi32>
    %96 = vector.broadcast %95 : vector<64x1xi32> to vector<64x70xi32>
    %97 = arith.cmpi eq, %93, %96 : vector<64x70xi32>
    %c127_i32_32 = arith.constant 127 : i32
    %98 = vector.broadcast %c127_i32_32 : i32 to vector<64x1xi32>
    %99 = arith.andi %95, %98 : vector<64x1xi32>
    %c69_i32_33 = arith.constant 69 : i32
    %100 = vector.broadcast %c69_i32_33 : i32 to vector<64x1xi32>
    %101 = arith.subi %100, %99 : vector<64x1xi32>
    %cst_34 = arith.constant 0.000000e+00 : bf16
    %102 = vector.broadcast %cst_34 : bf16 to vector<64x70xbf16>
    %103 = arith.select %97, %16, %102 : vector<64x70xi1>, vector<64x70xbf16>
    %cst_35 = arith.constant dense<0.000000e+00> : vector<64x128xf32>
    %104 = tpu.matmul %103, %17, %cst_35 {dimension_numbers = #tpu.dot_dimension_numbers<[1], [0], [0], [1], [0, 0, 1, 1], [], []>} : vector<64x70xbf16>, vector<70x128xbf16>, vector<64x128xf32> -> vector<64x128xf32>
    %105 = vector.extract_strided_slice %104 {offsets = [0, 0], sizes = [64, 1], strides = [1, 1]} : vector<64x128xf32> to vector<64x1xf32>
    %106 = arith.fptosi %105 : vector<64x1xf32> to vector<64x1xi32>
    %c-128_i32_36 = arith.constant -128 : i32
    %107 = vector.broadcast %c-128_i32_36 : i32 to vector<64x1xi32>
    %108 = arith.andi %95, %107 : vector<64x1xi32>
    %109 = arith.ori %108, %106 : vector<64x1xi32>
    %110 = tpu.bitcast %109 : vector<64x1xi32> -> vector<64x1xf32>
    %c-2147483648_i32_37 = arith.constant -2147483648 : i32
    %111 = vector.broadcast %c-2147483648_i32_37 : i32 to vector<64x70xi32>
    %112 = arith.select %97, %111, %93 : vector<64x70xi1>, vector<64x70xi32>
    %cst_38 = arith.constant dense<-2147483648> : vector<64xi32>
    %113 = vector.multi_reduction <maxsi>, %112, %cst_38 [1] : vector<64x70xi32> to vector<64xi32>
    %114 = vector.shape_cast %113 : vector<64xi32> to vector<64x1xi32>
    %115 = vector.broadcast %114 : vector<64x1xi32> to vector<64x70xi32>
    %116 = arith.cmpi eq, %112, %115 : vector<64x70xi32>
    %c127_i32_39 = arith.constant 127 : i32
    %117 = vector.broadcast %c127_i32_39 : i32 to vector<64x1xi32>
    %118 = arith.andi %114, %117 : vector<64x1xi32>
    %c69_i32_40 = arith.constant 69 : i32
    %119 = vector.broadcast %c69_i32_40 : i32 to vector<64x1xi32>
    %120 = arith.subi %119, %118 : vector<64x1xi32>
    %cst_41 = arith.constant 0.000000e+00 : bf16
    %121 = vector.broadcast %cst_41 : bf16 to vector<64x70xbf16>
    %122 = arith.select %116, %16, %121 : vector<64x70xi1>, vector<64x70xbf16>
    %cst_42 = arith.constant dense<0.000000e+00> : vector<64x128xf32>
    %123 = tpu.matmul %122, %17, %cst_42 {dimension_numbers = #tpu.dot_dimension_numbers<[1], [0], [0], [1], [0, 0, 1, 1], [], []>} : vector<64x70xbf16>, vector<70x128xbf16>, vector<64x128xf32> -> vector<64x128xf32>
    %124 = vector.extract_strided_slice %123 {offsets = [0, 0], sizes = [64, 1], strides = [1, 1]} : vector<64x128xf32> to vector<64x1xf32>
    %125 = arith.fptosi %124 : vector<64x1xf32> to vector<64x1xi32>
    %c-128_i32_43 = arith.constant -128 : i32
    %126 = vector.broadcast %c-128_i32_43 : i32 to vector<64x1xi32>
    %127 = arith.andi %114, %126 : vector<64x1xi32>
    %128 = arith.ori %127, %125 : vector<64x1xi32>
    %129 = tpu.bitcast %128 : vector<64x1xi32> -> vector<64x1xf32>
    %c-2147483648_i32_44 = arith.constant -2147483648 : i32
    %130 = vector.broadcast %c-2147483648_i32_44 : i32 to vector<64x70xi32>
    %131 = arith.select %116, %130, %112 : vector<64x70xi1>, vector<64x70xi32>
    %cst_45 = arith.constant dense<-2147483648> : vector<64xi32>
    %132 = vector.multi_reduction <maxsi>, %131, %cst_45 [1] : vector<64x70xi32> to vector<64xi32>
    %133 = vector.shape_cast %132 : vector<64xi32> to vector<64x1xi32>
    %134 = vector.broadcast %133 : vector<64x1xi32> to vector<64x70xi32>
    %135 = arith.cmpi eq, %131, %134 : vector<64x70xi32>
    %c127_i32_46 = arith.constant 127 : i32
    %136 = vector.broadcast %c127_i32_46 : i32 to vector<64x1xi32>
    %137 = arith.andi %133, %136 : vector<64x1xi32>
    %c69_i32_47 = arith.constant 69 : i32
    %138 = vector.broadcast %c69_i32_47 : i32 to vector<64x1xi32>
    %139 = arith.subi %138, %137 : vector<64x1xi32>
    %cst_48 = arith.constant 0.000000e+00 : bf16
    %140 = vector.broadcast %cst_48 : bf16 to vector<64x70xbf16>
    %141 = arith.select %135, %16, %140 : vector<64x70xi1>, vector<64x70xbf16>
    %cst_49 = arith.constant dense<0.000000e+00> : vector<64x128xf32>
    %142 = tpu.matmul %141, %17, %cst_49 {dimension_numbers = #tpu.dot_dimension_numbers<[1], [0], [0], [1], [0, 0, 1, 1], [], []>} : vector<64x70xbf16>, vector<70x128xbf16>, vector<64x128xf32> -> vector<64x128xf32>
    %143 = vector.extract_strided_slice %142 {offsets = [0, 0], sizes = [64, 1], strides = [1, 1]} : vector<64x128xf32> to vector<64x1xf32>
    %144 = arith.fptosi %143 : vector<64x1xf32> to vector<64x1xi32>
    %c-128_i32_50 = arith.constant -128 : i32
    %145 = vector.broadcast %c-128_i32_50 : i32 to vector<64x1xi32>
    %146 = arith.andi %133, %145 : vector<64x1xi32>
    %147 = arith.ori %146, %144 : vector<64x1xi32>
    %148 = tpu.bitcast %147 : vector<64x1xi32> -> vector<64x1xf32>
    %c-2147483648_i32_51 = arith.constant -2147483648 : i32
    %149 = vector.broadcast %c-2147483648_i32_51 : i32 to vector<64x70xi32>
    %150 = arith.select %135, %149, %131 : vector<64x70xi1>, vector<64x70xi32>
    %cst_52 = arith.constant dense<-2147483648> : vector<64xi32>
    %151 = vector.multi_reduction <maxsi>, %150, %cst_52 [1] : vector<64x70xi32> to vector<64xi32>
    %152 = vector.shape_cast %151 : vector<64xi32> to vector<64x1xi32>
    %153 = vector.broadcast %152 : vector<64x1xi32> to vector<64x70xi32>
    %154 = arith.cmpi eq, %150, %153 : vector<64x70xi32>
    %c127_i32_53 = arith.constant 127 : i32
    %155 = vector.broadcast %c127_i32_53 : i32 to vector<64x1xi32>
    %156 = arith.andi %152, %155 : vector<64x1xi32>
    %c69_i32_54 = arith.constant 69 : i32
    %157 = vector.broadcast %c69_i32_54 : i32 to vector<64x1xi32>
    %158 = arith.subi %157, %156 : vector<64x1xi32>
    %cst_55 = arith.constant 0.000000e+00 : bf16
    %159 = vector.broadcast %cst_55 : bf16 to vector<64x70xbf16>
    %160 = arith.select %154, %16, %159 : vector<64x70xi1>, vector<64x70xbf16>
    %cst_56 = arith.constant dense<0.000000e+00> : vector<64x128xf32>
    %161 = tpu.matmul %160, %17, %cst_56 {dimension_numbers = #tpu.dot_dimension_numbers<[1], [0], [0], [1], [0, 0, 1, 1], [], []>} : vector<64x70xbf16>, vector<70x128xbf16>, vector<64x128xf32> -> vector<64x128xf32>
    %162 = vector.extract_strided_slice %161 {offsets = [0, 0], sizes = [64, 1], strides = [1, 1]} : vector<64x128xf32> to vector<64x1xf32>
    %163 = arith.fptosi %162 : vector<64x1xf32> to vector<64x1xi32>
    %c-128_i32_57 = arith.constant -128 : i32
    %164 = vector.broadcast %c-128_i32_57 : i32 to vector<64x1xi32>
    %165 = arith.andi %152, %164 : vector<64x1xi32>
    %166 = arith.ori %165, %163 : vector<64x1xi32>
    %167 = tpu.bitcast %166 : vector<64x1xi32> -> vector<64x1xf32>
    %c-2147483648_i32_58 = arith.constant -2147483648 : i32
    %168 = vector.broadcast %c-2147483648_i32_58 : i32 to vector<64x70xi32>
    %169 = arith.select %154, %168, %150 : vector<64x70xi1>, vector<64x70xi32>
    %cst_59 = arith.constant dense<-2147483648> : vector<64xi32>
    %170 = vector.multi_reduction <maxsi>, %169, %cst_59 [1] : vector<64x70xi32> to vector<64xi32>
    %171 = vector.shape_cast %170 : vector<64xi32> to vector<64x1xi32>
    %172 = vector.broadcast %171 : vector<64x1xi32> to vector<64x70xi32>
    %173 = arith.cmpi eq, %169, %172 : vector<64x70xi32>
    %c127_i32_60 = arith.constant 127 : i32
    %174 = vector.broadcast %c127_i32_60 : i32 to vector<64x1xi32>
    %175 = arith.andi %171, %174 : vector<64x1xi32>
    %c69_i32_61 = arith.constant 69 : i32
    %176 = vector.broadcast %c69_i32_61 : i32 to vector<64x1xi32>
    %177 = arith.subi %176, %175 : vector<64x1xi32>
    %cst_62 = arith.constant 0.000000e+00 : bf16
    %178 = vector.broadcast %cst_62 : bf16 to vector<64x70xbf16>
    %179 = arith.select %173, %16, %178 : vector<64x70xi1>, vector<64x70xbf16>
    %cst_63 = arith.constant dense<0.000000e+00> : vector<64x128xf32>
    %180 = tpu.matmul %179, %17, %cst_63 {dimension_numbers = #tpu.dot_dimension_numbers<[1], [0], [0], [1], [0, 0, 1, 1], [], []>} : vector<64x70xbf16>, vector<70x128xbf16>, vector<64x128xf32> -> vector<64x128xf32>
    %181 = vector.extract_strided_slice %180 {offsets = [0, 0], sizes = [64, 1], strides = [1, 1]} : vector<64x128xf32> to vector<64x1xf32>
    %182 = arith.fptosi %181 : vector<64x1xf32> to vector<64x1xi32>
    %c-128_i32_64 = arith.constant -128 : i32
    %183 = vector.broadcast %c-128_i32_64 : i32 to vector<64x1xi32>
    %184 = arith.andi %171, %183 : vector<64x1xi32>
    %185 = arith.ori %184, %182 : vector<64x1xi32>
    %186 = tpu.bitcast %185 : vector<64x1xi32> -> vector<64x1xf32>
    %c-2147483648_i32_65 = arith.constant -2147483648 : i32
    %187 = vector.broadcast %c-2147483648_i32_65 : i32 to vector<64x70xi32>
    %188 = arith.select %173, %187, %169 : vector<64x70xi1>, vector<64x70xi32>
    %cst_66 = arith.constant dense<-2147483648> : vector<64xi32>
    %189 = vector.multi_reduction <maxsi>, %188, %cst_66 [1] : vector<64x70xi32> to vector<64xi32>
    %190 = vector.shape_cast %189 : vector<64xi32> to vector<64x1xi32>
    %191 = vector.broadcast %190 : vector<64x1xi32> to vector<64x70xi32>
    %192 = arith.cmpi eq, %188, %191 : vector<64x70xi32>
    %c127_i32_67 = arith.constant 127 : i32
    %193 = vector.broadcast %c127_i32_67 : i32 to vector<64x1xi32>
    %194 = arith.andi %190, %193 : vector<64x1xi32>
    %c69_i32_68 = arith.constant 69 : i32
    %195 = vector.broadcast %c69_i32_68 : i32 to vector<64x1xi32>
    %196 = arith.subi %195, %194 : vector<64x1xi32>
    %cst_69 = arith.constant 0.000000e+00 : bf16
    %197 = vector.broadcast %cst_69 : bf16 to vector<64x70xbf16>
    %198 = arith.select %192, %16, %197 : vector<64x70xi1>, vector<64x70xbf16>
    %cst_70 = arith.constant dense<0.000000e+00> : vector<64x128xf32>
    %199 = tpu.matmul %198, %17, %cst_70 {dimension_numbers = #tpu.dot_dimension_numbers<[1], [0], [0], [1], [0, 0, 1, 1], [], []>} : vector<64x70xbf16>, vector<70x128xbf16>, vector<64x128xf32> -> vector<64x128xf32>
    %200 = vector.extract_strided_slice %199 {offsets = [0, 0], sizes = [64, 1], strides = [1, 1]} : vector<64x128xf32> to vector<64x1xf32>
    %201 = arith.fptosi %200 : vector<64x1xf32> to vector<64x1xi32>
    %c-128_i32_71 = arith.constant -128 : i32
    %202 = vector.broadcast %c-128_i32_71 : i32 to vector<64x1xi32>
    %203 = arith.andi %190, %202 : vector<64x1xi32>
    %204 = arith.ori %203, %201 : vector<64x1xi32>
    %205 = tpu.bitcast %204 : vector<64x1xi32> -> vector<64x1xf32>
    %206 = tpu.concatenate %34, %53, %72, %91, %110, %129, %148, %167, %186, %205 in 1 : vector<64x1xf32>, vector<64x1xf32>, vector<64x1xf32>, vector<64x1xf32>, vector<64x1xf32>, vector<64x1xf32>, vector<64x1xf32>, vector<64x1xf32>, vector<64x1xf32>, vector<64x1xf32> -> vector<64x10xf32>
    %c0_72 = arith.constant 0 : index
    %c0_73 = arith.constant 0 : index
    %207 = vector.load %arg3[%c0_72, %c0_73] : memref<64x10xf32, #tpu.memory_space<vmem>>, vector<64x10xf32>
    tpu.vector_store %arg3[%c0_72, %c0_73], %206 {strides = array<i32>} : memref<64x10xf32, #tpu.memory_space<vmem>>, vector<64x10xf32>,
    %208 = tpu.concatenate %25, %44, %63, %82, %101, %120, %139, %158, %177, %196 in 1 : vector<64x1xi32>, vector<64x1xi32>, vector<64x1xi32>, vector<64x1xi32>, vector<64x1xi32>, vector<64x1xi32>, vector<64x1xi32>, vector<64x1xi32>, vector<64x1xi32>, vector<64x1xi32> -> vector<64x10xi32>
    %c0_74 = arith.constant 0 : index
    %c0_75 = arith.constant 0 : index
    %209 = vector.load %arg4[%c0_74, %c0_75] : memref<64x10xi32, #tpu.memory_space<vmem>>, vector<64x10xi32>
    tpu.vector_store %arg4[%c0_74, %c0_75], %208 {strides = array<i32>} : memref<64x10xi32, #tpu.memory_space<vmem>>, vector<64x10xi32>,
    return
  }
  func.func @transform_0(%arg0: i32) -> (i32, i32) {
    %c0_i32 = arith.constant 0 : i32
    %c0_i32_0 = arith.constant 0 : i32
    return %arg0, %c0_i32 : i32, i32
  }
  func.func @transform_1(%arg0: i32) -> (i32, i32) {
    %c0_i32 = arith.constant 0 : i32
    %c0_i32_0 = arith.constant 0 : i32
    return %arg0, %c0_i32 : i32, i32
  }
  func.func @transform_2(%arg0: i32) -> (i32, i32) {
    %c0_i32 = arith.constant 0 : i32
    %c0_i32_0 = arith.constant 0 : i32
    return %arg0, %c0_i32 : i32, i32
  }
  func.func @transform_3(%arg0: i32) -> (i32, i32) {
    %c0_i32 = arith.constant 0 : i32
    %c0_i32_0 = arith.constant 0 : i32
    return %arg0, %c0_i32 : i32, i32
  }
}

</mosaic_0001>

<bundles_post_ra>
// kernel: tpu_custom_call.1
= control target key start
LH: loop header
LB: loop body
LE: loop exit
PB: predicated region body
PF: predicated region fallthrough
CT: control target
= control target key end

     0   :  { %s4030_s12 = smov 0   ;;  %s7662_s0 = inlined_call_operand.vmem [shape: f32[128,70], index: 0, kind: input, shape index: {}]   ;;  %s7663_s1 = inlined_call_operand.vmem [shape: f32[128,70], index: 1, kind: output, shape index: {0}]   ;;  %s7664_s2 = inlined_call_operand.vmem [shape: f32[128,10], index: 2, kind: output, shape index: {1}]   ;;  %s7665_s3 = inlined_call_operand.vmem [shape: s32[128,10], index: 3, kind: output, shape index: {2}]  }
   0x1 LB: > { %s3467_s13 = sadd.s32 4294967295, %s3997_s12   ;;  %p3471_p0 = scmp.ge.s32.totalorder %s3997_s12, 1  ;;  %s3997_s12 = sphi %s4030_s12, %s14_s12  }
   0x2   : > { %p143_p1 = scmp.lt.s32.totalorder %s3997_s12, 3 }
   0x4   : > { %p144_p2 = pnand %p3471_p0, %p143_p1 }
   0x6   : > { %147 = sbr.rel (%p144_p2) target bundleno = 2912 (0xb60), region = 24 }
   0xb   : > { %s3472_s14 = sshll.u32 %s3467_s13, 3  ;;  %v372_v16 = vlaneseq  ;;  %vm363_vm3 = vcmask 572416   ;;  %s4001_s22 = smov 1  }
   0xc   : > { %p178_p3 = scmp.lt.s32.totalorder %s3472_s14, 15  ;;  %s4002_s23 = smov 2  }
   0xd   : > { %v373_v23 = vand.u32 127, %v372_v16  ;;  %s4003_s24 = smov 3   ;;  %s4004_s28 = smov 4  }
   0xe   : > { %s8044_s14 = smov (!%p178_p3, %s3472_s14), 15  ;;  %s4005_s29 = smov 5  }
   0xf   : > { %s4038_s15 = sshll.u32 %s8044_s14, 3  ;;  %v4063_v33 = vsub.s32 69, %v373_v23  ;;  %s4006_s30 = smov 6  }
  0x10   : > { %s4044_s18 = scalar_lea.vmem %s7662_s0, %s4038_s15  ;;  %s4109_s21 = scalar_lea.vmem %s7663_s1, %s4038_s15 }
  0x11   : > { %v205_v0 = vld [vmem:[%s4044_s18 + $0x10] sm:$0xff]  ;;  %v203_v1 = vld [vmem:[%s4044_s18] sm:$0xff]  ;;  %v206_v6 = vld [vmem:[%s4044_s18 + $0x18] sm:$0xff]  ;;  %s7094_s27 = scalar_lea.vmem %s7665_s3, %s4038_s15  ;;  %s4007_s4 = smov 7  }
  0x12   : > { %v207_v2 = vld [vmem:[%s4044_s18 + $0x20] sm:$0xff]  ;;  %v3482_v3 = vmul.f32 -1.442695, %v205_v0  ;;  %v3480_v4 = vmul.f32 -1.442695, %v203_v1  ;;  %v204_v7 = vld [vmem:[%s4044_s18 + $0x8] sm:$0xff]  ;;  %s7607_s9 = scalar_lea.vmem %s7664_s2, %s4038_s15 }
  0x13   : > { %v3484_v5 = vmul.f32 -1.442695, %v207_v2  ;;  %v208_v8 = vld [vmem:[%s4044_s18 + $0x28] sm:$0xff]  ;;  %v3483_v9 = vmul.f32 -1.442695, %v206_v6  ;;  %v209_v12 = vld [vmem:[%s4044_s18 + $0x30] sm:$0xff] }
  0x14   : > { %3959 = vpow2.f32 %v3482_v3  ;;  %v3481_v10 = vmul.f32 -1.442695, %v204_v7  ;;  %v3485_v11 = vmul.f32 -1.442695, %v208_v8  ;;  %v3486_v19 = vmul.f32 -1.442695, %v209_v12 }
  0x15   : > { %3961 = vpow2.f32 %v3480_v4  ;;  %s4008_s5 = smov 8   ;;  %s4009_s6 = smov 9  }
  0x16   : > { %3963 = vpow2.f32 %v3484_v5 }
  0x17   : > { %3965 = vpow2.f32 %v3483_v9 }
  0x18   : > { %3967 = vpow2.f32 %v3481_v10 }
  0x19   : > { %3969 = vpow2.f32 %v3485_v11 }
  0x1a   : > { %v3960_v13 = vpop.eup %3959 }
  0x1b   : > { %v3962_v14 = vpop.eup %3961  ;;  %v237_v15 = vadd.f32 1.0, %v3960_v13 }
  0x1c   : > { %v3964_v17 = vpop.eup %3963  ;;  %v235_v18 = vadd.f32 1.0, %v3962_v14 }
  0x1d   : > { %v3966_v20 = vpop.eup %3965  ;;  %3971 = vrcp.f32 %v237_v15  ;;  %v4053_v24 = vadd.f32 1.0, %v3964_v17  ;;  %v282_v26 = vand.u32 2147483647, %v237_v15  ;;  %v284_v27 = vand.u32 2147483648, %v237_v15 }
  0x1e   : > { %v3968_v21 = vpop.eup %3967  ;;  %3973 = vrcp.f32 %v235_v18  ;;  %v4055_v25 = vadd.f32 1.0, %v3966_v20  ;;  %v252_v29 = vand.u32 2147483647, %v235_v18  ;;  %v254_v30 = vand.u32 2147483648, %v235_v18 }
  0x1f   : > { %v3970_v22 = vpop.eup %3969  ;;  %v4057_v28 = vadd.f32 1.0, %v3968_v21  ;;  %3975 = vpow2.f32 %v3486_v19  ;;  %vm278_vm0 = vweird.f32 %v237_v15  ;;  %vm248_vm1 = vweird.f32 %v235_v18 }
  0x20   : > { %3977 = vrcp.f32 %v4053_v24  ;;  %v4061_v31 = vadd.f32 1.0, %v3970_v22  ;;  %vm4066_vm2 = vcmp.eq.f32.partialorder %v282_v26, 8.507059e+37  ;;  %v285_v37 = vor.u32 1.1754944e-38, %v284_v27 }
  0x21   : > { %3979 = vrcp.f32 %v4055_v25  ;;  %v312_v38 = vand.u32 2147483647, %v4053_v24  ;;  %vm4071_vm4 = vcmp.eq.f32.partialorder %v252_v29, 8.507059e+37  ;;  %v255_v41 = vor.u32 1.1754944e-38, %v254_v30 }
  0x22   : > { %3981 = vrcp.f32 %v4057_v28  ;;  %v314_v42 = vand.u32 2147483648, %v4053_v24  ;;  %vm308_vm6 = vweird.f32 %v4053_v24  ;;  %vm293_vm8 = vweird.f32 %v4055_v25 }
  0x23   : > { %v3972_v32 = vpop.eup %3971  ;;  %3983 = vrcp.f32 %v4061_v31  ;;  %v297_v47 = vand.u32 2147483647, %v4055_v25  ;;  %vm4083_vm9 = vcmp.eq.f32.partialorder %v312_v38, 8.507059e+37  ;;  %v299_v52 = vand.u32 2147483648, %v4055_v25 }
  0x24   : > { %v3974_v34 = vpop.eup %3973  ;;  %v274_v35 = vmul.f32 %v3972_v32, %v237_v15  ;;  %vm279_vm5 = vweird.f32 %v3972_v32  ;;  %v315_v56 = vor.u32 1.1754944e-38, %v314_v42  ;;  %vm263_vm11 = vweird.f32 %v4057_v28 }
  0x25   : > { %v244_v39 = vmul.f32 %v3974_v34, %v235_v18  ;;  %v4076_v43 = vpop.eup %3975  ;;  %vm249_vm7 = vweird.f32 %v3974_v34  ;;  %vm4091_vm10 = vmor %vm278_vm0, %vm279_vm5  ;;  %vm4111_vm15 = vcmp.eq.f32.partialorder %v297_v47, 8.507059e+37  ;;  %v300_v4 = vor.u32 1.1754944e-38, %v299_v52 }
  0x26   : > { %v275_v44 = vsub.f32 1.0, %v274_v35  ;;  %v3978_v45 = vpop.eup %3977  ;;  %vm4099_vm12 = vmor %vm248_vm1, %vm249_vm7  ;;  %v269_v15 = vand.u32 2147483648, %v4057_v28  ;;  %v267_v18 = vand.u32 2147483647, %v4057_v28  ;;  %v327_v30 = vand.u32 2147483647, %v4061_v31 }
  0x27   : > { %v245_v46 = vsub.f32 1.0, %v244_v39  ;;  %v3980_v48 = vpop.eup %3979  ;;  %v304_v50 = vmul.f32 %v3978_v45, %v4053_v24  ;;  %vm309_vm13 = vweird.f32 %v3978_v45  ;;  %v329_v36 = vand.u32 2147483648, %v4061_v31 }
  0x28   : > { %v276_v49 = vmul.f32 %v3972_v32, %v275_v44  ;;  %v4088_v53 = vpop.eup %3981  ;;  %v289_v57 = vmul.f32 %v3980_v48, %v4055_v25  ;;  %vm294_vm14 = vweird.f32 %v3980_v48  ;;  %vm4127_vm0 = vmor %vm308_vm6, %vm309_vm13  ;;  %v270_v29 = vor.u32 1.1754944e-38, %v269_v15 }
  0x29   : > { %v246_v55 = vmul.f32 %v3974_v34, %v245_v46  ;;  %v305_v60 = vsub.f32 1.0, %v304_v50  ;;  %v259_v61 = vmul.f32 %v4088_v53, %v4057_v28  ;;  %v4115_v1 = vpop.eup %3983  ;;  %vm4144_vm1 = vmor %vm293_vm8, %vm294_vm14  ;;  %vm268_vm6 = vcmp.eq.f32.partialorder %v267_v18, 8.507059e+37 }
  0x2a   : > { %v277_v58 = vadd.f32 %v3972_v32, %v276_v49  ;;  %v290_v63 = vsub.f32 1.0, %v289_v57  ;;  %v319_v10 = vmul.f32 %v4115_v1, %v4061_v31  ;;  %vm4220_vm7 = vcmp.eq.f32.partialorder %v327_v30, 8.507059e+37 }
  0x2b   : > { %v247_v62 = vadd.f32 %v3974_v34, %v246_v55  ;;  %v306_v3 = vmul.f32 %v3978_v45, %v305_v60  ;;  %v260_v5 = vsub.f32 1.0, %v259_v61  ;;  %v330_v51 = vor.u32 1.1754944e-38, %v329_v36 }
  0x2c   : > { %v281_v2 = vsel %vm4091_vm10, %v3972_v32, %v277_v58  ;;  %v291_v9 = vmul.f32 %v3980_v48, %v290_v63  ;;  %v320_v25 = vsub.f32 1.0, %v319_v10  ;;  %vm324_vm8 = vweird.f32 %v4115_v1 }
  0x2d   : > { %v4121_v6 = vsel %vm4066_vm2, %v285_v37, %v281_v2  ;;  %v251_v7 = vsel %vm4099_vm12, %v3974_v34, %v247_v62  ;;  %v307_v13 = vadd.f32 %v3978_v45, %v306_v3  ;;  %vm323_vm2 = vweird.f32 %v4061_v31 }
  0x2e   : > { %v385_v11 = vand.u32 4294967168, %v4121_v6  ;;  %366 = vst.msk [vmem:[%s4109_s21 + $0x10] sm:$0xff] %vm363_vm3, %v4121_v6  ;;  %v4139_v12 = vsel %vm4071_vm4, %v255_v41, %v251_v7  ;;  %v292_v17 = vadd.f32 %v3980_v48, %v291_v9  ;;  %v261_v21 = vmul.f32 %v4088_v53, %v260_v5 }
  0x2f   : > { %v383_v16 = vand.u32 4294967168, %v4139_v12  ;;  %364 = vst.msk [vmem:[%s4109_s21] sm:$0xff] %vm363_vm3, %v4139_v12  ;;  %v311_v20 = vsel %vm4127_vm0, %v3978_v45, %v307_v13  ;;  %vm264_vm4 = vweird.f32 %v4088_v53  ;;  %v241_v41 = vadd.f32 1.0, %v4076_v43 }
  0x30   : > { %v4156_v19 = vor.u32 %v385_v11, %v4063_v33  ;;  %v4167_v23 = vsel %vm4083_vm9, %v315_v56, %v311_v20  ;;  %v296_v24 = vsel %vm4144_vm1, %v3980_v48, %v292_v17  ;;  %vm4202_vm5 = vmor %vm263_vm11, %vm264_vm4  ;;  %v262_v44 = vadd.f32 %v4088_v53, %v261_v21 }
  0x31   : > { %v4163_v22 = vor.u32 %v383_v16, %v4063_v33  ;;  %v387_v27 = vand.u32 4294967168, %v4167_v23  ;;  %368 = vst.msk [vmem:[%s4109_s21 + $0x20] sm:$0xff] %vm363_vm3, %v4167_v23  ;;  %v4187_v35 = vsel %vm4111_vm15, %v300_v4, %v296_v24  ;;  %v321_v45 = vmul.f32 %v4115_v1, %v320_v25  ;;  %vm325_vm9 = vmor %vm323_vm2, %vm324_vm8  ;;  %v210_v24 = vld [vmem:[%s4044_s18 + $0x38] sm:$0xff] }
  0x32   : > { %v4173_v26 = vsel %vm363_vm3, %v4156_v19, 2147483648  ;;  %367 = vst.msk [vmem:[%s4109_s21 + $0x18] sm:$0xff] %vm363_vm3, %v4187_v35  ;;  %v386_v39 = vand.u32 4294967168, %v4187_v35  ;;  %v266_v49 = vsel %vm4202_vm5, %v4088_v53, %v262_v44  ;;  %3985 = vrcp.f32 %v241_v41 }
  0x33   : > { %v455_v32 = vshra.s32 %v4173_v26, 16  ;;  %v4183_v34 = vsel %vm363_vm3, %v4163_v22, 2147483648  ;;  %v4192_v38 = vor.u32 %v387_v27, %v4063_v33  ;;  %v322_v50 = vadd.f32 %v4115_v1, %v321_v45 }
  0x34   : > { %v425_v37 = vshra.s32 %v4183_v34, 16  ;;  %v4218_v28 = vor.u32 %v386_v39, %v4063_v33  ;;  %v4235_v54 = vsel %vm268_vm6, %v270_v29, %v266_v49  ;;  %vm338_vm10 = vweird.f32 %v241_v41 }
  0x35   : > { %v4207_v42 = vcvt.s32.f32 %v455_v32  ;;  %v4215_v47 = vsel %vm363_vm3, %v4192_v38, 2147483648  ;;  %365 = vst.msk [vmem:[%s4109_s21 + $0x8] sm:$0xff] %vm363_vm3, %v4235_v54  ;;  %v384_v53 = vand.u32 4294967168, %v4235_v54  ;;  %v326_v57 = vsel %vm325_vm9, %v4115_v1, %v322_v50 }
  0x36   : > { %v4211_v46 = vcvt.s32.f32 %v425_v37  ;;  %v485_v43 = vshra.s32 %v4215_v47, 16  ;;  %v4233_v52 = vsel %vm363_vm3, %v4218_v28, 2147483648  ;;  %v4256_v60 = vsel %vm4220_vm7, %v330_v51, %v326_v57 }
  0x37   : > { %458 = vmax.xlane.f32.xlu1 %v4207_v42  ;;  %v470_v56 = vshra.s32 %v4233_v52, 16  ;;  %v4252_v59 = vor.u32 %v384_v53, %v4063_v33  ;;  %369 = vst.msk [vmem:[%s4109_s21 + $0x28] sm:$0xff] %vm363_vm3, %v4256_v60  ;;  %v388_v61 = vand.u32 4294967168, %v4256_v60  ;;  %v344_v4 = vand.u32 2147483648, %v241_v41 }
  0x38   : > { %428 = vmax.xlane.f32.xlu0 %v4211_v46  ;;  %v4238_v55 = vcvt.s32.f32 %v485_v43  ;;  %v3986_v62 = vpop.eup %3985  ;;  %v342_v8 = vand.u32 2147483647, %v241_v41  ;;  %v3487_v25 = vmul.f32 -1.442695, %v210_v24  ;;  %v424_v49 = vand.u32 65535, %v4183_v34 }
  0x39   : > { %v4249_v58 = vcvt.s32.f32 %v470_v56  ;;  %v4264_v31 = vsel %vm363_vm3, %v4252_v59, 2147483648  ;;  %v4268_v0 = vor.u32 %v388_v61, %v4063_v33  ;;  %v334_v1 = vmul.f32 %v3986_v62, %v241_v41 }
  0x3a   : > { %488 = vmax.xlane.f32.xlu2 %v4238_v55  ;;  %v440_v63 = vshra.s32 %v4264_v31, 16  ;;  %vm339_vm11 = vweird.f32 %v3986_v62  ;;  %v345_v11 = vor.u32 1.1754944e-38, %v344_v4  ;;  %vm343_vm13 = vcmp.eq.f32.partialorder %v342_v8, 8.507059e+37 }
  0x3b   : > { %v4275_v3 = vsel %vm363_vm3, %v4268_v0, 2147483648  ;;  %v335_v7 = vsub.f32 1.0, %v334_v1  ;;  %vm340_vm12 = vmor %vm338_vm10, %vm339_vm11  ;;  %3987 = vpow2.f32 %v3487_v25  ;;  %v426_v51 = vcvt.s32.f32 %v424_v49 }
  0x3c   : > { %v4271_v2 = vcvt.s32.f32 %v440_v63  ;;  %v500_v5 = vshra.s32 %v4275_v3, 16  ;;  %v469_v61 = vand.u32 65535, %v4233_v52  ;;  %vm615_vm10 = vcmask 1042432  }
  0x3d   : > { %v336_v10 = vmul.f32 %v3986_v62, %v335_v7 }
  0x3e   : > { %v4279_v9 = vcvt.s32.f32 %v500_v5  ;;  %v471_v63 = vcvt.s32.f32 %v469_v61 }
  0x3f   : > { %473 = vmax.xlane.f32.xlu1 %v4249_v58  ;;  %v337_v13 = vadd.f32 %v3986_v62, %v336_v10  ;;  %v454_v10 = vand.u32 65535, %v4173_v26  ;;  %v499_v26 = vand.u32 65535, %v4275_v3  ;;  %v3999_v3 = vmov 0  }
  0x40   : > { %443 = vmax.xlane.f32.xlu0 %v4271_v2  ;;  %v4352_v25 = vsel %vm615_vm10, 1065369472, %v3999_v3 }
  0x41   : > { %v341_v14 = vsel %vm340_vm12, %v3986_v62, %v337_v13  ;;  %v3988_v27 = vpop.eup %3987  ;;  %622 = vmatpush.bf16.msra.mxu0 %v4352_v25  ;;  %3530 = vmatpush.bf16.msra.mxu2 %v4352_v25 }
  0x42   : > { %503 = vmax.xlane.f32.xlu2 %v4279_v9  ;;  %v4282_v15 = vsel %vm343_vm13, %v345_v11, %v341_v14  ;;  %v242_v29 = vadd.f32 1.0, %v3988_v27  ;;  %883 = vmatpush.bf16.msra.mxu1 %v4352_v25 }
  0x43   : > { %370 = vst.msk [vmem:[%s4109_s21 + $0x30] sm:$0xff] %vm363_vm3, %v4282_v15  ;;  %v389_v16 = vand.u32 4294967168, %v4282_v15  ;;  %3535 = vmatpush.bf16.msra.mxu3 %v4352_v25 }
  0x44   : > { %3989 = vrcp.f32 %v242_v29  ;;  %v359_v39 = vand.u32 2147483648, %v242_v29  ;;  %vm353_vm14 = vweird.f32 %v242_v29  ;;  %v357_v41 = vand.u32 2147483647, %v242_v29 }
  0x45   : > { %v4289_v17 = vor.u32 %v389_v16, %v4063_v33  ;;  %v501_v16 = vcvt.s32.f32 %v499_v26 }
  0x46   : > { %v360_v44 = vor.u32 1.1754944e-38, %v359_v39  ;;  %vm358_vm1 = vcmp.eq.f32.partialorder %v357_v41, 8.507059e+37  ;;  %v400_v39 = vand.u32 127, %v4235_v54 }
  0x47   : > { %v4293_v18 = vsel %vm363_vm3, %v4289_v17, 2147483648 }
  0x48   : > { %v515_v20 = vshra.s32 %v4293_v18, 16 }
  0x4a   : > { %v4296_v21 = vcvt.s32.f32 %v515_v20  ;;  %v3990_v30 = vpop.eup %3989 }
  0x4b   : > { %v349_v32 = vmul.f32 %v3990_v30, %v242_v29  ;;  %vm354_vm15 = vweird.f32 %v3990_v30 }
  0x4c   : > { %518 = vmax.xlane.f32.xlu2 %v4296_v21  ;;  %vm355_vm0 = vmor %vm353_vm14, %vm354_vm15 }
  0x4d   : > { %v350_v36 = vsub.f32 1.0, %v349_v32 }
  0x4f   : > { %v351_v37 = vmul.f32 %v3990_v30, %v350_v36  ;;  %v399_v36 = vand.u32 127, %v4139_v12 }
  0x51   : > { %v352_v40 = vadd.f32 %v3990_v30, %v351_v37 }
  0x53   : > { %v356_v45 = vsel %vm355_vm0, %v3990_v30, %v352_v40 }
  0x54   : > { %v4300_v48 = vsel %vm358_vm1, %v360_v44, %v356_v45 }
  0x55   : > { %371 = vst.msk [vmem:[%s4109_s21 + $0x38] sm:$0xff] %vm363_vm3, %v4300_v48  ;;  %v390_v43 = vand.u32 4294967168, %v4300_v48 }
  0x57   : > { %v4308_v50 = vor.u32 %v390_v43, %v4063_v33  ;;  %v439_v33 = vand.u32 65535, %v4264_v31  ;;  %v407_v43 = vcvt.s32.f32 %v399_v36 }
  0x59   : > { %v4316_v57 = vsel %vm363_vm3, %v4308_v50, 2147483648  ;;  %v441_v7 = vcvt.s32.f32 %v439_v33 }
  0x5a   : > { %v530_v34 = vshra.s32 %v4316_v57, 16  ;;  %v529_v30 = vand.u32 65535, %v4316_v57  ;;  %v408_v57 = vcvt.s32.f32 %v400_v39 }
  0x5c   : > { %v4327_v5 = vcvt.s32.f32 %v530_v34  ;;  %v531_v40 = vcvt.s32.f32 %v529_v30  ;;  %v404_v30 = vand.u32 127, %v4256_v60 }
  0xaa   : > { %v4310_v56 = vpop.xlane.xlu1 %458 }
  0xab   : > { %v4312_v53 = vpop.xlane.xlu0 %428  ;;  %vm460_vm7 = vcmp.eq.f32.partialorder %v4207_v42, %v4310_v56 }
  0xac   : > { %vm430_vm2 = vcmp.eq.f32.partialorder %v4211_v46, %v4312_v53  ;;  %v484_v46 = vand.u32 65535, %v4215_v47 }
  0xad   : > { %v431_v62 = vsel %vm430_vm2, %v426_v51, -inf  ;;  %v4323_v1 = vpop.xlane.xlu2 %488 }
  0xae   : > { %432 = vmax.xlane.f32.xlu0 %v431_v62  ;;  %v486_v11 = vcvt.s32.f32 %v484_v46  ;;  %vm490_vm6 = vcmp.eq.f32.partialorder %v4238_v55, %v4323_v1 }
  0xb0   : > { %v491_v13 = vsel %vm490_vm6, %v486_v11, -inf  ;;  %v401_v11 = vand.u32 127, %v4121_v6 }
  0xb2   : > { %v4325_v4 = vpop.xlane.xlu1 %473 }
  0xb3   : > { %vm475_vm4 = vcmp.eq.f32.partialorder %v4249_v58, %v4325_v4  ;;  %v4332_v8 = vpop.xlane.xlu0 %443  ;;  %v456_v58 = vcvt.s32.f32 %v454_v10  ;;  %v480_v37 = vcvt.f32.s32 %v4325_v4  ;;  %v465_v10 = vcvt.f32.s32 %v4310_v56 }
  0xb4   : > { %v476_v52 = vsel %vm475_vm4, %v471_v63, -inf  ;;  %vm445_vm5 = vcmp.eq.f32.partialorder %v4271_v2, %v4332_v8  ;;  %v514_v2 = vand.u32 65535, %v4293_v18  ;;  %v435_v18 = vcvt.f32.s32 %v4312_v53 }
  0xb5   : > { %477 = vmax.xlane.f32.xlu2 %v476_v52  ;;  %v446_v31 = vsel %vm445_vm5, %v441_v7, -inf  ;;  %v4342_v47 = vpop.xlane.xlu2 %503  ;;  %v461_v14 = vsel %vm460_vm7, %v456_v58, -inf  ;;  %v450_v12 = vcvt.f32.s32 %v4332_v8  ;;  %v481_v54 = vshll.u32 %v480_v37, 16 }
  0xb6   : > { %533 = vmax.xlane.f32.xlu0 %v4327_v5  ;;  %447 = vmax.xlane.f32.xlu1 %v446_v31  ;;  %vm505_vm8 = vcmp.eq.f32.partialorder %v4279_v9, %v4342_v47  ;;  %v516_v20 = vcvt.s32.f32 %v514_v2  ;;  %v7666_v9 = vmov 1065369472   ;;  %v436_v27 = vshll.u32 %v435_v18, 16 }
  0xb7   : > { %v506_v24 = vsel %vm505_vm8, %v501_v16, -inf  ;;  %623 = vmatpush.bf16.msra.mxu0 %v7666_v9  ;;  %3531 = vmatpush.bf16.msra.mxu2 %v7666_v9  ;;  %v451_v63 = vshll.u32 %v450_v12, 16  ;;  %v4420_v7 = vpack.c.bf16 %v407_v43, %v407_v43  ;;  %v466_v6 = vshll.u32 %v465_v10, 16 }
  0xb8   : > { %884 = vmatpush.bf16.msra.mxu1 %v7666_v9  ;;  %3536 = vmatpush.bf16.msra.mxu3 %v7666_v9  ;;  %v510_v12 = vcvt.f32.s32 %v4342_v47  ;;  %v412_v47 = vcvt.s32.f32 %v404_v30 }
  0xba   : > { %v511_v8 = vshll.u32 %v510_v12, 16 }
  0xbb   : > { %624 = vmatpush.bf16.msra.mxu0 %v7666_v9  ;;  %3532 = vmatpush.bf16.msra.mxu2 %v7666_v9 }
  0xbc   : > { %885 = vmatpush.bf16.msra.mxu1 %v7666_v9  ;;  %3537 = vmatpush.bf16.msra.mxu3 %v7666_v9 }
  0xbe   : > { %492 = vmax.xlane.f32.xlu0 %v491_v13  ;;  %462 = vmax.xlane.f32.xlu1 %v461_v14 }
  0xbf   : > { %v4348_v55 = vpop.xlane.xlu2 %518  ;;  %625 = vmatpush.bf16.msra.mxu0 %v7666_v9  ;;  %3533 = vmatpush.bf16.msra.mxu2 %v7666_v9 }
  0xc0   : > { %vm520_vm9 = vcmp.eq.f32.partialorder %v4296_v21, %v4348_v55  ;;  %886 = vmatpush.bf16.msra.mxu1 %v7666_v9  ;;  %3538 = vmatpush.bf16.msra.mxu3 %v7666_v9 }
  0xc1   : > { %v521_v42 = vsel %vm520_vm9, %v516_v20, -inf  ;;  %v403_v20 = vand.u32 127, %v4167_v23  ;;  %v525_v23 = vcvt.f32.s32 %v4348_v55 }
  0xc2   : > { %522 = vmax.xlane.f32.xlu2 %v521_v42 }
  0xc3   : > { %626 = vmatpush.bf16.msra.mxu0 %v7666_v9  ;;  %3534 = vmatpush.bf16.msra.mxu2 %v7666_v9  ;;  %v411_v60 = vcvt.s32.f32 %v403_v20 }
  0xc4   : > { %887 = vmatpush.bf16.msra.mxu1 %v7666_v9  ;;  %3539 = vmatpush.bf16.msra.mxu3 %v7666_v9 }
  0xc6   : > { %507 = vmax.xlane.f32.xlu1 %v506_v24 }
  0xc7   : > { %1136 = vmatpush.bf16.msrb.mxu2 %v4352_v25  ;;  %1642 = vmatpush.bf16.msrb.mxu0 %v4352_v25 }
  0xc8   : > { %1389 = vmatpush.bf16.msrb.mxu3 %v4352_v25  ;;  %1895 = vmatpush.bf16.msrb.mxu1 %v4352_v25 }
  0xcb   : > { %1137 = vmatpush.bf16.msrb.mxu2 %v7666_v9  ;;  %1643 = vmatpush.bf16.msrb.mxu0 %v7666_v9 }
  0xcc   : > { %1390 = vmatpush.bf16.msrb.mxu3 %v7666_v9  ;;  %1896 = vmatpush.bf16.msrb.mxu1 %v7666_v9 }
  0xcf   : > { %1138 = vmatpush.bf16.msrb.mxu2 %v7666_v9  ;;  %1644 = vmatpush.bf16.msrb.mxu0 %v7666_v9 }
  0xd0   : > { %1391 = vmatpush.bf16.msrb.mxu3 %v7666_v9  ;;  %1897 = vmatpush.bf16.msrb.mxu1 %v7666_v9 }
  0xd3   : > { %1139 = vmatpush.bf16.msrb.mxu2 %v7666_v9  ;;  %1645 = vmatpush.bf16.msrb.mxu0 %v7666_v9 }
  0xd4   : > { %1392 = vmatpush.bf16.msrb.mxu3 %v7666_v9  ;;  %1898 = vmatpush.bf16.msrb.mxu1 %v7666_v9 }
  0xd7   : > { %1140 = vmatpush.bf16.msrb.mxu2 %v7666_v9  ;;  %1646 = vmatpush.bf16.msrb.mxu0 %v7666_v9 }
  0xd8   : > { %1393 = vmatpush.bf16.msrb.mxu3 %v7666_v9  ;;  %1899 = vmatpush.bf16.msrb.mxu1 %v7666_v9 }
 0x121   : > { %v433_v21 = vpop.xlane.xlu0 %432 }
 0x122   : > { %v434_v29 = vcvt.f32.s32 %v433_v21 }
 0x124   : > { %v4384_v32 = vadd.s32 %v436_v27, %v434_v29  ;;  %v402_v29 = vand.u32 127, %v4187_v35 }
 0x126   : > { %vm543_vm11 = vcmp.eq.s32.totalorder %v4163_v22, %v4384_v32 }
 0x127   : > { %v4399_v41 = vsel %vm543_vm11, 2147483648, %v4163_v22  ;;  %vm4439_vm14 = vmpackc.low %vm543_vm11, %vm543_vm11 }
 0x128   : > { %v478_v44 = vpop.xlane.xlu2 %477  ;;  %v4404_v45 = vsel %vm363_vm3, %v4399_v41, 2147483648  ;;  %v575_v56 = vsel %vm4439_vm14, %v4420_v7, 0 }
 0x129   : > { %v479_v49 = vcvt.f32.s32 %v478_v44  ;;  %v4408_v51 = vpop.xlane.xlu0 %533  ;;  %v690_v53 = vshra.s32 %v4404_v45, 16  ;;  %v448_v62 = vpop.xlane.xlu1 %447  ;;  %v591_v21 = vunpack.c.l.b16 %v575_v56  ;;  %v410_v44 = vcvt.s32.f32 %v402_v29 }
 0x12a   : > { %vm535_vm12 = vcmp.eq.f32.partialorder %v4327_v5, %v4408_v51  ;;  %v449_v4 = vcvt.f32.s32 %v448_v62  ;;  %v495_v5 = vcvt.f32.s32 %v4323_v1  ;;  %v4445_v1 = vpack.c.bf16 %v408_v57, %v408_v57 }
 0x12b   : > { %v4415_v61 = vadd.s32 %v481_v54, %v479_v49  ;;  %v536_v34 = vsel %vm535_vm12, %v531_v40, -inf  ;;  %v4417_v33 = vcvt.s32.f32 %v690_v53  ;;  %v409_v40 = vcvt.s32.f32 %v401_v11 }
 0x12c   : > { %537 = vmax.xlane.f32.xlu0 %v536_v34  ;;  %v4427_v46 = vadd.s32 %v451_v63, %v449_v4  ;;  %v496_v14 = vshll.u32 %v495_v5, 16  ;;  %v526_v49 = vshll.u32 %v525_v23, 16  ;;  %v4515_v5 = vpack.c.bf16 %v411_v60, %v411_v60 }
 0x12d   : > { %7770 = vst [vmem:[#allocation2_spill] sm:$0xff] %v4415_v61  ;;  %693 = vmax.xlane.f32.xlu1 %v4417_v33  ;;  %vm546_vm13 = vcmp.eq.s32.totalorder %v4218_v28, %v4415_v61  ;;  %v4510_v57 = vpack.c.bf16 %v409_v40, %v409_v40 }
 0x12e   : > { %v4433_v52 = vsel %vm546_vm13, 2147483648, %v4218_v28  ;;  %vm544_vm15 = vcmp.eq.s32.totalorder %v4252_v59, %v4427_v46  ;;  %vm4548_vm6 = vmpackc.low %vm546_vm13, %vm546_vm13 }
 0x12f   : > { %v4450_v31 = vsel %vm363_vm3, %v4433_v52, 2147483648  ;;  %v4457_v13 = vsel %vm544_vm15, 2147483648, %v4252_v59  ;;  %vm568_vm0 = vmpackc.low %vm544_vm15, %vm544_vm15  ;;  %7773 = vst [vmem:[#allocation3_spill] sm:$0xff] %v4510_v57 }
 0x130   : > { %v735_v22 = vshra.s32 %v4450_v31, 16  ;;  %v4464_v2 = vsel %vm363_vm3, %v4457_v13, 2147483648  ;;  %v576_v42 = vsel %vm568_vm0, %v4445_v1, 0 }
 0x131   : > { %v493_v58 = vpop.xlane.xlu0 %492  ;;  %v463_v24 = vpop.xlane.xlu1 %462  ;;  %v705_v59 = vshra.s32 %v4464_v2, 16  ;;  %v592_v27 = vunpack.c.l.b16 %v576_v42 }
 0x132   : > { %v494_v26 = vcvt.f32.s32 %v493_v58  ;;  %v4466_v16 = vcvt.s32.f32 %v735_v22  ;;  %v464_v3 = vcvt.f32.s32 %v463_v24  ;;  %v4525_v58 = vpack.c.bf16 %v410_v44, %v410_v44 }
 0x133   : > { %v4475_v36 = vcvt.s32.f32 %v705_v59  ;;  %v599_v39 = vpack.c.b16 %v592_v27, %v591_v21 }
 0x134   : > { %v4471_v18 = vadd.s32 %v496_v14, %v494_v26  ;;  %v4479_v37 = vadd.s32 %v466_v6, %v464_v3  ;;  %7776 = vst [vmem:[#allocation4_spill] sm:$0xff] %v4525_v58  ;;  %v578_v24 = vsel %vm4548_vm6, %v4525_v58, 0 }
 0x135   : > { %738 = vmax.xlane.f32.xlu1 %v4466_v16  ;;  %708 = vmax.xlane.f32.xlu2 %v4475_v36  ;;  %v523_v62 = vpop.xlane.xlu2 %522  ;;  %v594_v23 = vunpack.c.l.b16 %v578_v24 }
 0x136   : > { %vm547_vm1 = vcmp.eq.s32.totalorder %v4192_v38, %v4471_v18  ;;  %3488 = vmatmul.msk.bf16.vlgmr.msra.gmra.mxu0 %vm363_vm3, %v599_v39  ;;  %vm545_vm2 = vcmp.eq.s32.totalorder %v4156_v19, %v4479_v37  ;;  %v524_v10 = vcvt.f32.s32 %v523_v62 }
 0x137   : > { %v4488_v35 = vsel %vm547_vm1, 2147483648, %v4192_v38  ;;  %v4502_v43 = vsel %vm545_vm2, 2147483648, %v4156_v19  ;;  %2654 = vmatpush.bf16.msra.mxu0 %v4352_v25  ;;  %vm4521_vm4 = vmpackc.low %vm545_vm2, %vm545_vm2  ;;  %v4538_v19 = vpack.c.bf16 %v412_v47, %v412_v47  ;;  %v405_v47 = vand.u32 127, %v4282_v15 }
 0x138   : > { %v4496_v55 = vsel %vm363_vm3, %v4488_v35, 2147483648  ;;  %v4508_v53 = vsel %vm363_vm3, %v4502_v43, 2147483648  ;;  %vm4533_vm5 = vmpackc.low %vm547_vm1, %vm547_vm1  ;;  %v4540_v26 = vadd.s32 %v526_v49, %v524_v10  ;;  %v577_v38 = vsel %vm4521_vm4, %v4510_v57, 0 }
 0x139   : > { %v750_v54 = vshra.s32 %v4496_v55, 16  ;;  %v508_v34 = vpop.xlane.xlu1 %507  ;;  %v720_v63 = vshra.s32 %v4508_v53, 16  ;;  %v579_v28 = vsel %vm4533_vm5, %v4515_v5, 0  ;;  %v593_v42 = vunpack.c.l.b16 %v577_v38 }
 0x13a   : > { %v509_v22 = vcvt.f32.s32 %v508_v34  ;;  %vm549_vm8 = vcmp.eq.s32.totalorder %v4289_v17, %v4540_v26  ;;  %v595_v29 = vunpack.c.l.b16 %v579_v28  ;;  %v406_v49 = vand.u32 127, %v4300_v48 }
 0x13b   : > { %v4513_v4 = vcvt.s32.f32 %v750_v54  ;;  %v4527_v56 = vcvt.s32.f32 %v720_v63  ;;  %2655 = vmatpush.bf16.msra.mxu0 %v7666_v9  ;;  %v600_v60 = vpack.c.b16 %v594_v23, %v593_v42  ;;  %v413_v62 = vcvt.s32.f32 %v405_v47  ;;  %vm573_vm11 = vmpackc.low %vm549_vm8, %vm549_vm8 }
 0x13c   : > { %v4542_v20 = vadd.s32 %v511_v8, %v509_v22  ;;  %v540_v34 = vcvt.f32.s32 %v4408_v51  ;;  %v689_v63 = vand.u32 65535, %v4404_v45  ;;  %v414_v8 = vcvt.s32.f32 %v406_v49 }
 0x13d   : > { %723 = vmax.xlane.f32.xlu0 %v4527_v56  ;;  %753 = vmax.xlane.f32.xlu2 %v4513_v4  ;;  %v4607_v22 = vpack.c.bf16 %v413_v62, %v413_v62  ;;  %v734_v51 = vand.u32 65535, %v4450_v31  ;;  %v749_v47 = vand.u32 65535, %v4496_v55 }
 0x13e   : > { %7779 = vst [vmem:[#allocation5_spill] sm:$0xff] %v4542_v20  ;;  %vm548_vm7 = vcmp.eq.s32.totalorder %v4268_v0, %v4542_v20  ;;  %v541_v11 = vshll.u32 %v540_v34, 16  ;;  %v691_v38 = vcvt.s32.f32 %v689_v63  ;;  %v4617_v15 = vpack.c.bf16 %v414_v8, %v414_v8 }
 0x13f   : > { %v4568_v59 = vsel %vm548_vm7, 2147483648, %v4268_v0  ;;  %vm572_vm9 = vmpackc.low %vm548_vm7, %vm548_vm7  ;;  %2656 = vmatpush.bf16.msra.mxu0 %v7666_v9  ;;  %v4581_v0 = vsel %vm549_vm8, 2147483648, %v4289_v17  ;;  %7782 = vst [vmem:[#allocation6_spill] sm:$0xff] %v4607_v22  ;;  %v581_v28 = vsel %vm573_vm11, %v4607_v22, 0  ;;  %v704_v17 = vand.u32 65535, %v4464_v2 }
 0x140   : > { %v4573_v3 = vsel %vm363_vm3, %v4568_v59, 2147483648  ;;  %v580_v21 = vsel %vm572_vm9, %v4538_v19, 0  ;;  %v4588_v12 = vsel %vm363_vm3, %v4581_v0, 2147483648  ;;  %7783 = vst [vmem:[#allocation7_spill] sm:$0xff] %v4617_v15  ;;  %v597_v31 = vunpack.c.l.b16 %v581_v28 }
 0x141   : > { %v765_v27 = vshra.s32 %v4573_v3, 16  ;;  %v596_v30 = vunpack.c.l.b16 %v580_v21  ;;  %v780_v44 = vshra.s32 %v4588_v12, 16  ;;  %v751_v34 = vcvt.s32.f32 %v749_v47 }
 0x143   : > { %v4583_v39 = vcvt.s32.f32 %v765_v27  ;;  %v601_v40 = vpack.c.b16 %v596_v30, %v595_v29  ;;  %2657 = vmatpush.bf16.msra.mxu0 %v7666_v9  ;;  %v4597_v54 = vcvt.s32.f32 %v780_v44  ;;  %v736_v30 = vcvt.s32.f32 %v734_v51 }
 0x145   : > { %768 = vmax.xlane.f32.xlu0 %v4583_v39  ;;  %3490 = vmatmul.msk.bf16.vlgmr.msra.gmra.mxu2 %vm363_vm3, %v601_v40 }
 0x146   : > { %3489 = vmatmul.msk.bf16.gmra.mxu0 %vm363_vm3, %v600_v60  ;;  %2148 = vmatpush.bf16.msra.mxu2 %v4352_v25  ;;  %v706_v60 = vcvt.s32.f32 %v704_v17 }
 0x147   : > { %2658 = vmatpush.bf16.msra.mxu0 %v7666_v9 }
 0x14a   : > { %2149 = vmatpush.bf16.msra.mxu2 %v7666_v9 }
 0x14d   : > { %783 = vmax.xlane.f32.xlu0 %v4597_v54 }
 0x14e   : > { %2150 = vmatpush.bf16.msra.mxu2 %v7666_v9 }
 0x152   : > { %2151 = vmatpush.bf16.msra.mxu2 %v7666_v9 }
 0x156   : > { %2152 = vmatpush.bf16.msra.mxu2 %v7666_v9 }
 0x19f   : > { %v538_v10 = vpop.xlane.xlu0 %537 }
 0x1a0   : > { %v539_v14 = vcvt.f32.s32 %v538_v10  ;;  %v4609_v6 = vpop.xlane.xlu1 %693 }
 0x1a1   : > { %vm695_vm10 = vcmp.eq.f32.partialorder %v4417_v33, %v4609_v6 }
 0x1a2   : > { %v4619_v48 = vadd.s32 %v541_v11, %v539_v14  ;;  %v696_v45 = vsel %vm695_vm10, %v691_v38, -inf  ;;  %v764_v11 = vand.u32 65535, %v4573_v3  ;;  %v779_v3 = vand.u32 65535, %v4588_v12 }
 0x1a3   : > { %697 = vmax.xlane.f32.xlu1 %v696_v45  ;;  %v656_v45 = vand.u32 4294967168, %v4384_v32  ;;  %vm3173_vm10 = vcmask 7168  }
 0x1a4   : > { %7784 = vst [vmem:[#allocation8_spill] sm:$0xff] %v4619_v48  ;;  %vm550_vm12 = vcmp.eq.s32.totalorder %v4308_v50, %v4619_v48 }
 0x1a5   : > { %v4626_v33 = vsel %vm550_vm12, 2147483648, %v4308_v50  ;;  %vm574_vm13 = vmpackc.low %vm550_vm12, %vm550_vm12 }
 0x1a6   : > { %v4631_v24 = vsel %vm363_vm3, %v4626_v33, 2147483648  ;;  %v582_v42 = vsel %vm574_vm13, %v4617_v15, 0 }
 0x1a7   : > { %v795_v21 = vshra.s32 %v4631_v24, 16  ;;  %v598_v27 = vunpack.c.l.b16 %v582_v42 }
 0x1a8   : > { %v4635_v29 = vpop.xlane.xlu1 %738  ;;  %v4641_v2 = vpop.xlane.xlu2 %708 }
 0x1a9   : > { %vm740_vm14 = vcmp.eq.f32.partialorder %v4466_v16, %v4635_v29  ;;  %v4639_v50 = vcvt.s32.f32 %v795_v21  ;;  %v602_v23 = vpack.c.b16 %v598_v27, %v597_v31  ;;  %vm710_vm15 = vcmp.eq.f32.partialorder %v4475_v36, %v4641_v2 }
 0x1aa   : > { %v741_v40 = vsel %vm740_vm14, %v736_v30, -inf  ;;  %v711_v44 = vsel %vm710_vm15, %v706_v60, -inf  ;;  %v719_v16 = vand.u32 65535, %v4508_v53  ;;  %v657_v30 = vand.u32 4294967168, %v4427_v46 }
 0x1ab   : > { %742 = vmax.xlane.f32.xlu0 %v741_v40  ;;  %798 = vmax.xlane.f32.xlu1 %v4639_v50  ;;  %v781_v40 = vcvt.s32.f32 %v779_v3  ;;  %v745_v3 = vcvt.f32.s32 %v4635_v29  ;;  %v554_v29 = vand.u32 127, %v4415_v61 }
 0x1ac   : > { %3491 = vmatmul.msk.bf16.gmra.mxu2 %vm363_vm3, %v602_v23  ;;  %712 = vmax.xlane.f32.xlu2 %v711_v44  ;;  %v721_v63 = vcvt.s32.f32 %v719_v16 }
 0x1b0   : > { %v4649_v49 = vpop.xlane.xlu2 %753  ;;  %v4651_v62 = vpop.xlane.xlu0 %723 }
 0x1b1   : > { %vm755_vm0 = vcmp.eq.f32.partialorder %v4513_v4, %v4649_v49  ;;  %vm725_vm1 = vcmp.eq.f32.partialorder %v4527_v56, %v4651_v62  ;;  %v766_v4 = vcvt.s32.f32 %v764_v11  ;;  %v660_v11 = vand.u32 4294967168, %v4471_v18 }
 0x1b2   : > { %v756_v36 = vsel %vm755_vm0, %v751_v34, -inf  ;;  %v726_v8 = vsel %vm725_vm1, %v721_v63, -inf  ;;  %v658_v63 = vand.u32 4294967168, %v4479_v37 }
 0x1b3   : > { %v628_v10 = vpop.f32.mrf.mxu0  ;;  %757 = vmax.xlane.f32.xlu1 %v756_v36 }
 0x1b4   : > { %727 = vmax.xlane.f32.xlu2 %v726_v8  ;;  %vm3540_vm2 = vcmp.lt.s32.totalorder %v628_v10, 0  ;;  %v3541_v55 = vceil.f32 %v628_v10  ;;  %v3542_v53 = vfloor.f32 %v628_v10 }
 0x1b6   : > { %v3543_v14 = vsel %vm3540_vm2, %v3541_v55, %v3542_v53 }
 0x1b7   : > { %v3544_v38 = vcvt.f32.s32 %v3543_v14 }
 0x1b8   : > { %v4659_v51 = vpop.xlane.xlu0 %768 }
 0x1b9   : > { %vm770_vm4 = vcmp.eq.f32.partialorder %v4583_v39, %v4659_v51  ;;  %v4663_v56 = vor.u32 %v3544_v38, %v656_v45  ;;  %v700_v38 = vcvt.f32.s32 %v4609_v6 }
 0x1ba   : > { %v771_v28 = vsel %vm770_vm4, %v766_v4, -inf }
 0x1bb   : > { %7785 = vst [vmem:[#allocation9_spill] sm:$0xff] %v4663_v56  ;;  %v630_v17 = vpop.f32.mrf.mxu0  ;;  %v701_v4 = vshll.u32 %v700_v38, 16 }
 0x1bc   : > { %772 = vmax.xlane.f32.xlu2 %v771_v28  ;;  %vm3545_vm5 = vcmp.lt.s32.totalorder %v630_v17, 0  ;;  %v3546_v42 = vceil.f32 %v630_v17  ;;  %v3547_v21 = vfloor.f32 %v630_v17  ;;  %v551_v17 = vand.u32 127, %v4384_v32 }
 0x1bd   : > { %v715_v32 = vcvt.f32.s32 %v4641_v2  ;;  %v552_v2 = vand.u32 127, %v4427_v46  ;;  %v562_v46 = vsub.s32 69, %v554_v29 }
 0x1be   : > { %v3548_v31 = vsel %vm3545_vm5, %v3546_v42, %v3547_v21  ;;  %v794_v21 = vand.u32 65535, %v4631_v24 }
 0x1bf   : > { %v3549_v27 = vcvt.f32.s32 %v3548_v31 }
 0x1c0   : > { %v4667_v23 = vpop.xlane.xlu0 %783 }
 0x1c1   : > { %vm785_vm6 = vcmp.eq.f32.partialorder %v4597_v54, %v4667_v23  ;;  %v4671_v39 = vor.u32 %v3549_v27, %v657_v30  ;;  %v559_v27 = vsub.s32 69, %v551_v17 }
 0x1c2   : > { %v786_v60 = vsel %vm785_vm6, %v781_v40, -inf }
 0x1c3   : > { %v633_v44 = vpop.f32.mrf.mxu0  ;;  %787 = vmax.xlane.f32.xlu0 %v786_v60 }
 0x1c4   : > { %vm3550_vm7 = vcmp.lt.s32.totalorder %v633_v44, 0  ;;  %v3551_v47 = vceil.f32 %v633_v44  ;;  %v3552_v16 = vfloor.f32 %v633_v44  ;;  %v796_v44 = vcvt.s32.f32 %v794_v21 }
 0x1c6   : > { %v3553_v34 = vsel %vm3550_vm7, %v3551_v47, %v3552_v16  ;;  %v746_v16 = vshll.u32 %v745_v3, 16 }
 0x1c7   : > { %v3554_v12 = vcvt.f32.s32 %v3553_v34 }
 0x1c8   : > { %v638_v36 = vpop.f32.mrf.mxu2 }
 0x1c9   : > { %vm3560_vm8 = vcmp.lt.s32.totalorder %v638_v36, 0  ;;  %v3561_v8 = vceil.f32 %v638_v36  ;;  %v3562_v10 = vfloor.f32 %v638_v36  ;;  %v4674_v55 = vor.u32 %v3554_v12, %v658_v63 }
 0x1cb   : > { %7786 = vst [vmem:[#allocation10_spill] sm:$0xff] %v4674_v55  ;;  %v3563_v53 = vsel %vm3560_vm8, %v3561_v8, %v3562_v10  ;;  %v716_v10 = vshll.u32 %v715_v32, 16 }
 0x1cc   : > { %v3564_v54 = vcvt.f32.s32 %v3563_v53 }
 0x1ce   : > { %v4677_v14 = vor.u32 %v3564_v54, %v660_v11 }
 0x1d0   : > { %7787 = vst [vmem:[#allocation11_spill] sm:$0xff] %v4677_v14 }
 0x216   : > { %v698_v45 = vpop.xlane.xlu1 %697 }
 0x217   : > { %v699_v28 = vcvt.f32.s32 %v698_v45 }
 0x219   : > { %v4681_v42 = vadd.s32 %v701_v4, %v699_v28  ;;  %v560_v4 = vsub.s32 69, %v552_v2 }
 0x21b   : > { %v816_v31 = vand.u32 127, %v4681_v42  ;;  %vm808_vm9 = vcmp.eq.s32.totalorder %v4399_v41, %v4681_v42 }
 0x21c   : > { %v4692_v6 = vsel %vm808_vm9, 2147483648, %v4399_v41  ;;  %vm4717_vm12 = vmpackc.low %vm808_vm9, %vm808_vm9  ;;  %v730_v41 = vcvt.f32.s32 %v4651_v62  ;;  %v555_v62 = vand.u32 127, %v4471_v18 }
 0x21d   : > { %v824_v30 = vsub.s32 69, %v816_v31  ;;  %v4697_v24 = vsel %vm363_vm3, %v4692_v6, 2147483648  ;;  %v840_v28 = vsel %vm4717_vm12, %v4420_v7, 0 }
 0x21e   : > { %v4700_v40 = vpop.xlane.xlu1 %798  ;;  %v743_v60 = vpop.xlane.xlu0 %742  ;;  %v943_v47 = vshra.s32 %v4697_v24, 16 }
 0x21f   : > { %v4704_v34 = vsel %vm3173_vm10, %v559_v27, %v824_v30  ;;  %v744_v12 = vcvt.f32.s32 %v743_v60  ;;  %vm800_vm11 = vcmp.eq.f32.partialorder %v4639_v50, %v4700_v40  ;;  %v713_v63 = vpop.xlane.xlu2 %712  ;;  %v760_v50 = vcvt.f32.s32 %v4649_v49  ;;  %v4750_v30 = vpop.f32.mrf.mxu2 }
 0x220   : > { %v801_v36 = vsel %vm800_vm11, %v796_v44, -inf  ;;  %v4709_v8 = vcvt.s32.f32 %v943_v47  ;;  %v714_v53 = vcvt.f32.s32 %v713_v63  ;;  %7790 = vst [vmem:[#allocation12_spill] sm:$0xff] %v4750_v30 }
 0x221   : > { %v4711_v54 = vadd.s32 %v746_v16, %v744_v12  ;;  %802 = vmax.xlane.f32.xlu1 %v801_v36  ;;  %v761_v31 = vshll.u32 %v760_v50, 16  ;;  %v856_v12 = vunpack.c.l.b16 %v840_v28  ;;  %v731_v36 = vshll.u32 %v730_v41, 16 }
 0x222   : > { %946 = vmax.xlane.f32.xlu2 %v4709_v8  ;;  %v4723_v38 = vadd.s32 %v716_v10, %v714_v53  ;;  %v553_v50 = vand.u32 127, %v4479_v37 }
 0x223   : > { %v819_v45 = vand.u32 127, %v4711_v54  ;;  %vm811_vm13 = vcmp.eq.s32.totalorder %v4433_v52, %v4711_v54 }
 0x224   : > { %v4736_v49 = vsel %vm811_vm13, 2147483648, %v4433_v52  ;;  %v817_v17 = vand.u32 127, %v4723_v38  ;;  %vm809_vm14 = vcmp.eq.s32.totalorder %v4457_v13, %v4723_v38  ;;  %vm4827_vm5 = vmpackc.low %vm811_vm13, %vm811_vm13 }
 0x225   : > { %v827_v21 = vsub.s32 69, %v819_v45  ;;  %v4743_v3 = vsel %vm363_vm3, %v4736_v49, 2147483648  ;;  %vm833_vm15 = vmpackc.low %vm809_vm14, %vm809_vm14  ;;  %v4747_v27 = vsel %vm809_vm14, 2147483648, %v4457_v13 }
 0x226   : > { %v988_v32 = vshra.s32 %v4743_v3, 16  ;;  %v825_v29 = vsub.s32 69, %v817_v17  ;;  %v841_v44 = vsel %vm833_vm15, %v4445_v1, 0  ;;  %v4758_v47 = vsel %vm363_vm3, %v4747_v27, 2147483648  ;;  %v758_v18 = vpop.xlane.xlu1 %757 }
 0x227   : > { %v4753_v60 = vsel %vm3173_vm10, %v562_v46, %v827_v21  ;;  %v728_v16 = vpop.xlane.xlu2 %727  ;;  %v857_v2 = vunpack.c.l.b16 %v841_v44  ;;  %v958_v13 = vshra.s32 %v4758_v47, 16  ;;  %v759_v53 = vcvt.f32.s32 %v758_v18 }
 0x228   : > { %v4761_v63 = vcvt.s32.f32 %v988_v32  ;;  %v4764_v10 = vsel %vm3173_vm10, %v560_v4, %v825_v29  ;;  %v729_v11 = vcvt.f32.s32 %v728_v16  ;;  %v775_v46 = vcvt.f32.s32 %v4659_v51 }
 0x229   : > { %v864_v45 = vpack.c.b16 %v857_v2, %v856_v12  ;;  %v4768_v17 = vcvt.s32.f32 %v958_v13  ;;  %v4771_v28 = vadd.s32 %v761_v31, %v759_v53  ;;  %v563_v4 = vsub.s32 69, %v555_v62 }
 0x22a   : > { %991 = vmax.xlane.f32.xlu2 %v4761_v63  ;;  %v4773_v21 = vadd.s32 %v731_v36, %v729_v11  ;;  %v561_v51 = vsub.s32 69, %v553_v50  ;;  %v776_v32 = vshll.u32 %v775_v46, 16 }
 0x22b   : > { %3492 = vmatmul.msk.bf16.vlgmr.msra.gmra.mxu1 %vm363_vm3, %v864_v45  ;;  %961 = vmax.xlane.f32.xlu0 %v4768_v17  ;;  %v820_v41 = vand.u32 127, %v4771_v28  ;;  %vm812_vm1 = vcmp.eq.s32.totalorder %v4488_v35, %v4771_v28 }
 0x22c   : > { %v818_v37 = vand.u32 127, %v4773_v21  ;;  %vm810_vm0 = vcmp.eq.s32.totalorder %v4502_v43, %v4773_v21  ;;  %2907 = vmatpush.bf16.msra.mxu1 %v4352_v25  ;;  %v4798_v16 = vsel %vm812_vm1, 2147483648, %v4488_v35  ;;  %vm4841_vm6 = vmpackc.low %vm812_vm1, %vm812_vm1  ;;  %v843_v35 = vsel %vm4827_vm5, %v4525_v58, 0 }
 0x22d   : > { %v4786_v31 = vsel %vm810_vm0, 2147483648, %v4502_v43  ;;  %v828_v62 = vsub.s32 69, %v820_v41  ;;  %vm4805_vm4 = vmpackc.low %vm810_vm0, %vm810_vm0  ;;  %v4817_v45 = vsel %vm363_vm3, %v4798_v16, 2147483648  ;;  %v844_v53 = vsel %vm4841_vm6, %v4515_v5, 0 }
 0x22e   : > { %v826_v29 = vsub.s32 69, %v818_v37  ;;  %v4792_v18 = vsel %vm363_vm3, %v4786_v31, 2147483648  ;;  %v1003_v37 = vshra.s32 %v4817_v45, 16  ;;  %v860_v14 = vunpack.c.l.b16 %v844_v53 }
 0x22f   : > { %v643_v44 = vpop.f32.mrf.mxu2  ;;  %v773_v13 = vpop.xlane.xlu2 %772  ;;  %v973_v36 = vshra.s32 %v4792_v18, 16  ;;  %v4810_v11 = vsel %vm3173_vm10, %v563_v4, %v828_v62 }
 0x230   : > { %vm3570_vm2 = vcmp.lt.s32.totalorder %v643_v44, 0  ;;  %v3571_v12 = vceil.f32 %v643_v44  ;;  %v3572_v2 = vfloor.f32 %v643_v44  ;;  %v4813_v50 = vsel %vm3173_vm10, %v561_v51, %v826_v29  ;;  %2908 = vmatpush.bf16.msra.mxu1 %v7666_v9 }
 0x231   : > { %v774_v46 = vcvt.f32.s32 %v773_v13  ;;  %v4820_v43 = vcvt.s32.f32 %v973_v36  ;;  %v556_v51 = vand.u32 127, %v4542_v20  ;;  %v842_v44 = vsel %vm4805_vm4, %v4510_v57, 0 }
 0x232   : > { %v3573_v41 = vsel %vm3570_vm2, %v3571_v12, %v3572_v2  ;;  %v790_v12 = vcvt.f32.s32 %v4667_v23  ;;  %v4847_v2 = vcvt.s32.f32 %v1003_v37  ;;  %v858_v36 = vunpack.c.l.b16 %v842_v44 }
 0x233   : > { %v3574_v62 = vcvt.f32.s32 %v3573_v41  ;;  %v4832_v29 = vadd.s32 %v776_v32, %v774_v46  ;;  %976 = vmax.xlane.f32.xlu1 %v4820_v43  ;;  %v662_v32 = vand.u32 4294967168, %v4540_v26  ;;  %v564_v41 = vsub.s32 69, %v556_v51 }
 0x234   : > { %2909 = vmatpush.bf16.msra.mxu1 %v7666_v9  ;;  %1006 = vmax.xlane.f32.xlu0 %v4847_v2  ;;  %v791_v55 = vshll.u32 %v790_v12, 16  ;;  %v859_v44 = vunpack.c.l.b16 %v843_v35 }
 0x235   : > { %7795 = vst [vmem:[#allocation13_spill] sm:$0xff] %v4832_v29  ;;  %v821_v13 = vand.u32 127, %v4832_v29  ;;  %vm813_vm7 = vcmp.eq.s32.totalorder %v4568_v59, %v4832_v29  ;;  %v4864_v46 = vor.u32 %v3574_v62, %v662_v32  ;;  %v7799_v32 = vmov 1065369472  }
 0x236   : > { %v4859_v23 = vsel %vm813_vm7, 2147483648, %v4568_v59  ;;  %vm837_vm8 = vmpackc.low %vm813_vm7, %vm813_vm7  ;;  %v788_v61 = vpop.xlane.xlu0 %787 }
 0x237   : > { %7798 = vst [vmem:[#allocation14_spill] sm:$0xff] %v4864_v46  ;;  %v829_v37 = vsub.s32 69, %v821_v13  ;;  %v4868_v4 = vsel %vm363_vm3, %v4859_v23, 2147483648  ;;  %v845_v9 = vsel %vm837_vm8, %v4538_v19, 0  ;;  %v789_v52 = vcvt.f32.s32 %v788_v61 }
 0x238   : > { %v1018_v59 = vshra.s32 %v4868_v4, 16  ;;  %v861_v62 = vunpack.c.l.b16 %v845_v9  ;;  %2910 = vmatpush.bf16.msra.mxu1 %v7799_v32  ;;  %v865_v13 = vpack.c.b16 %v859_v44, %v858_v36  ;;  %v557_v46 = vand.u32 127, %v4540_v26 }
 0x239   : > { %v4873_v56 = vsel %vm3173_vm10, %v564_v41, %v829_v37  ;;  %v4879_v20 = vadd.s32 %v791_v55, %v789_v52  ;;  %vm3182_vm8 = vcmask 15360  }
 0x23a   : > { %v4876_v51 = vcvt.s32.f32 %v1018_v59  ;;  %v866_v12 = vpack.c.b16 %v861_v62, %v860_v14  ;;  %v565_v61 = vsub.s32 69, %v557_v46  ;;  %v942_v46 = vand.u32 65535, %v4697_v24 }
 0x23b   : > { %7800 = vst [vmem:[#allocation15_spill] sm:$0xff] %v4879_v20  ;;  %3493 = vmatmul.msk.bf16.gmra.mxu1 %vm363_vm3, %v865_v13  ;;  %v822_v35 = vand.u32 127, %v4879_v20  ;;  %vm814_vm9 = vcmp.eq.s32.totalorder %v4581_v0, %v4879_v20  ;;  %v558_v62 = vand.u32 127, %v4619_v48 }
 0x23c   : > { %1021 = vmax.xlane.f32.xlu1 %v4876_v51  ;;  %3494 = vmatmul.msk.bf16.vlgmr.msra.gmra.mxu3 %vm363_vm3, %v866_v12  ;;  %v4892_v9 = vsel %vm814_vm9, 2147483648, %v4581_v0  ;;  %v944_v52 = vcvt.s32.f32 %v942_v46  ;;  %vm4921_vm12 = vmpackc.low %vm814_vm9, %vm814_vm9  ;;  %v987_v12 = vand.u32 65535, %v4743_v3 }
 0x23d   : > { %2911 = vmatpush.bf16.msra.mxu1 %v7799_v32  ;;  %2401 = vmatpush.bf16.msra.mxu3 %v4352_v25  ;;  %v830_v26 = vsub.s32 69, %v822_v35  ;;  %v4897_v55 = vsel %vm363_vm3, %v4892_v9, 2147483648  ;;  %v805_v25 = vcvt.f32.s32 %v4700_v40  ;;  %v846_v0 = vsel %vm4921_vm12, %v4607_v22, 0 }
 0x23e   : > { %v1033_v14 = vshra.s32 %v4897_v55, 16  ;;  %v862_v46 = vunpack.c.l.b16 %v846_v0  ;;  %v1002_v0 = vand.u32 65535, %v4817_v45 }
 0x23f   : > { %v4901_v36 = vsel %vm3173_vm10, %v565_v61, %v830_v26  ;;  %v806_v37 = vshll.u32 %v805_v25, 16  ;;  %v957_v25 = vand.u32 65535, %v4758_v47 }
 0x240   : > { %v4903_v53 = vcvt.s32.f32 %v1033_v14 }
 0x241   : > { %2402 = vmatpush.bf16.msra.mxu3 %v7799_v32  ;;  %v959_v47 = vcvt.s32.f32 %v957_v25  ;;  %v1004_v25 = vcvt.s32.f32 %v1002_v0 }
 0x244   : > { %1036 = vmax.xlane.f32.xlu1 %v4903_v53 }
 0x245   : > { %2403 = vmatpush.bf16.msra.mxu3 %v7799_v32 }
 0x249   : > { %2404 = vmatpush.bf16.msra.mxu3 %v7799_v32 }
 0x24d   : > { %2405 = vmatpush.bf16.msra.mxu3 %v7799_v32 }
 0x294   : > { %v803_v41 = vpop.xlane.xlu1 %802 }
 0x295   : > { %v804_v59 = vcvt.f32.s32 %v803_v41  ;;  %v4912_v44 = vpop.xlane.xlu2 %946 }
 0x296   : > { %vm948_vm11 = vcmp.eq.f32.partialorder %v4709_v8, %v4912_v44  ;;  %v566_v8 = vsub.s32 69, %v558_v62 }
 0x297   : > { %v4925_v24 = vadd.s32 %v806_v37, %v804_v59  ;;  %v949_v40 = vsel %vm948_vm11, %v944_v52, -inf }
 0x298   : > { %950 = vmax.xlane.f32.xlu2 %v949_v40 }
 0x299   : > { %7803 = vst [vmem:[#allocation16_spill] sm:$0xff] %v4925_v24  ;;  %v823_v13 = vand.u32 127, %v4925_v24  ;;  %vm815_vm13 = vcmp.eq.s32.totalorder %v4626_v33, %v4925_v24 }
 0x29a   : > { %v4935_v35 = vsel %vm815_vm13, 2147483648, %v4626_v33  ;;  %vm839_vm14 = vmpackc.low %vm815_vm13, %vm815_vm13  ;;  %v989_v33 = vcvt.s32.f32 %v987_v12  ;;  %v972_v12 = vand.u32 65535, %v4792_v18 }
 0x29b   : > { %v831_v61 = vsub.s32 69, %v823_v13  ;;  %v4939_v26 = vsel %vm363_vm3, %v4935_v35, 2147483648  ;;  %v847_v14 = vsel %vm839_vm14, %v4617_v15, 0 }
 0x29c   : > { %v1048_v3 = vshra.s32 %v4939_v26, 16  ;;  %v863_v41 = vunpack.c.l.b16 %v847_v14 }
 0x29d   : > { %v4945_v37 = vsel %vm3173_vm10, %v566_v8, %v831_v61  ;;  %v4947_v59 = vpop.xlane.xlu2 %991  ;;  %v974_v8 = vcvt.s32.f32 %v972_v12 }
 0x29e   : > { %v4949_v52 = vcvt.s32.f32 %v1048_v3  ;;  %vm993_vm15 = vcmp.eq.f32.partialorder %v4761_v63, %v4947_v59  ;;  %v867_v62 = vpack.c.b16 %v863_v41, %v862_v46  ;;  %v4953_v32 = vpop.xlane.xlu0 %961 }
 0x29f   : > { %v994_v40 = vsel %vm993_vm15, %v989_v33, -inf  ;;  %vm963_vm0 = vcmp.eq.f32.partialorder %v4768_v17, %v4953_v32  ;;  %v1017_v17 = vand.u32 65535, %v4868_v4 }
 0x2a0   : > { %1051 = vmax.xlane.f32.xlu2 %v4949_v52  ;;  %995 = vmax.xlane.f32.xlu1 %v994_v40  ;;  %v964_v13 = vsel %vm963_vm0, %v959_v47, -inf }
 0x2a1   : > { %3495 = vmatmul.msk.bf16.gmra.mxu3 %vm363_vm3, %v867_v62  ;;  %965 = vmax.xlane.f32.xlu0 %v964_v13  ;;  %v1019_v45 = vcvt.s32.f32 %v1017_v17  ;;  %v921_v13 = vand.u32 4294967168, %v4771_v28  ;;  %v998_v17 = vcvt.f32.s32 %v4947_v59 }
 0x2a6   : > { %v4961_v63 = vpop.xlane.xlu1 %976 }
 0x2a7   : > { %vm978_vm1 = vcmp.eq.f32.partialorder %v4820_v43, %v4961_v63  ;;  %v4965_v61 = vpop.xlane.xlu0 %1006  ;;  %v1032_v43 = vand.u32 65535, %v4897_v55  ;;  %v953_v55 = vcvt.f32.s32 %v4912_v44  ;;  %v968_v44 = vcvt.f32.s32 %v4953_v32 }
 0x2a8   : > { %v979_v14 = vsel %vm978_vm1, %v974_v8, -inf  ;;  %vm1008_vm2 = vcmp.eq.f32.partialorder %v4847_v2, %v4965_v61 }
 0x2a9   : > { %980 = vmax.xlane.f32.xlu0 %v979_v14  ;;  %v1009_v3 = vsel %vm1008_vm2, %v1004_v25, -inf  ;;  %v1034_v33 = vcvt.s32.f32 %v1032_v43  ;;  %v954_v8 = vshll.u32 %v953_v55, 16 }
 0x2aa   : > { %1010 = vmax.xlane.f32.xlu2 %v1009_v3 }
 0x2af   : > { %v4970_v18 = vpop.xlane.xlu1 %1021 }
 0x2b0   : > { %vm1023_vm4 = vcmp.eq.f32.partialorder %v4876_v51, %v4970_v18 }
 0x2b1   : > { %v1024_v46 = vsel %vm1023_vm4, %v1019_v45, -inf }
 0x2b2   : > { %1025 = vmax.xlane.f32.xlu0 %v1024_v46 }
 0x2b7   : > { %v4975_v41 = vpop.xlane.xlu1 %1036 }
 0x2b8   : > { %vm1038_vm5 = vcmp.eq.f32.partialorder %v4903_v53, %v4975_v41  ;;  %v1047_v53 = vand.u32 65535, %v4939_v26 }
 0x2b9   : > { %v1039_v2 = vsel %vm1038_vm5, %v1034_v33, -inf }
 0x2ba   : > { %1040 = vmax.xlane.f32.xlu1 %v1039_v2  ;;  %v1049_v43 = vcvt.s32.f32 %v1047_v53  ;;  %v999_v2 = vshll.u32 %v998_v17, 16 }
 0x2bf   : > { %v899_v4 = vpop.f32.mrf.mxu3 }
 0x2c0   : > { %vm3600_vm6 = vcmp.lt.s32.totalorder %v899_v4, 0  ;;  %v3601_v62 = vceil.f32 %v899_v4  ;;  %v3602_v40 = vfloor.f32 %v899_v4 }
 0x2c2   : > { %v3603_v47 = vsel %vm3600_vm6, %v3601_v62, %v3602_v40 }
 0x2c3   : > { %v3604_v51 = vcvt.f32.s32 %v3603_v47 }
 0x2c5   : > { %v4980_v12 = vor.u32 %v3604_v51, %v921_v13  ;;  %v969_v13 = vshll.u32 %v968_v44, 16 }
 0x2c7   : > { %7804 = vst [vmem:[#allocation17_spill] sm:$0xff] %v4980_v12 }
 0x30b   : > { %v951_v0 = vpop.xlane.xlu2 %950 }
 0x30c   : > { %v952_v14 = vcvt.f32.s32 %v951_v0  ;;  %v983_v0 = vcvt.f32.s32 %v4961_v63 }
 0x30e   : > { %v4983_v25 = vadd.s32 %v954_v8, %v952_v14 }
 0x310   : > { %7805 = vst [vmem:[#allocation18_spill] sm:$0xff] %v4983_v25  ;;  %v1069_v3 = vand.u32 127, %v4983_v25  ;;  %vm1061_vm7 = vcmp.eq.s32.totalorder %v4692_v6, %v4983_v25 }
 0x311   : > { %v4994_v28 = vsel %vm1061_vm7, 2147483648, %v4692_v6  ;;  %vm5019_vm11 = vmpackc.low %vm1061_vm7, %vm1061_vm7 }
 0x312   : > { %v1077_v45 = vsub.s32 69, %v1069_v3  ;;  %v4999_v26 = vsel %vm363_vm3, %v4994_v28, 2147483648  ;;  %v1093_v53 = vsel %vm5019_vm11, %v4420_v7, 0  ;;  %v984_v3 = vshll.u32 %v983_v0, 16 }
 0x313   : > { %v5001_v59 = vpop.xlane.xlu2 %1051  ;;  %v996_v46 = vpop.xlane.xlu1 %995  ;;  %v1196_v33 = vshra.s32 %v4999_v26, 16 }
 0x314   : > { %v5006_v4 = vsel %vm3182_vm8, %v4704_v34, %v1077_v45  ;;  %v997_v62 = vcvt.f32.s32 %v996_v46  ;;  %vm1053_vm9 = vcmp.eq.f32.partialorder %v4949_v52, %v5001_v59  ;;  %v966_v32 = vpop.xlane.xlu0 %965  ;;  %v1013_v45 = vcvt.f32.s32 %v4965_v61 }
 0x315   : > { %v1054_v40 = vsel %vm1053_vm9, %v1049_v43, -inf  ;;  %v5010_v47 = vcvt.s32.f32 %v1196_v33  ;;  %v967_v55 = vcvt.f32.s32 %v966_v32 }
 0x316   : > { %v5012_v51 = vadd.s32 %v999_v2, %v997_v62  ;;  %1055 = vmax.xlane.f32.xlu2 %v1054_v40  ;;  %v1109_v2 = vunpack.c.l.b16 %v1093_v53 }
 0x317   : > { %1199 = vmax.xlane.f32.xlu0 %v5010_v47  ;;  %v5025_v8 = vadd.s32 %v969_v13, %v967_v55 }
 0x318   : > { %7806 = vst [vmem:[#allocation19_spill] sm:$0xff] %v5012_v51  ;;  %v1072_v52 = vand.u32 127, %v5012_v51  ;;  %vm1064_vm12 = vcmp.eq.s32.totalorder %v4736_v49, %v5012_v51 }
 0x319   : > { %7809 = vst [vmem:[#allocation20_spill] sm:$0xff] %v5025_v8  ;;  %v5033_v63 = vsel %vm1064_vm12, 2147483648, %v4736_v49  ;;  %v1070_v14 = vand.u32 127, %v5025_v8  ;;  %vm1062_vm13 = vcmp.eq.s32.totalorder %v4747_v27, %v5025_v8  ;;  %vm5114_vm2 = vmpackc.low %vm1064_vm12, %vm1064_vm12 }
 0x31a   : > { %v1080_v6 = vsub.s32 69, %v1072_v52  ;;  %v5041_v17 = vsel %vm363_vm3, %v5033_v63, 2147483648  ;;  %v5052_v33 = vsel %vm1062_vm13, 2147483648, %v4747_v27  ;;  %vm1086_vm14 = vmpackc.low %vm1062_vm13, %vm1062_vm13 }
 0x31b   : > { %v1241_v44 = vshra.s32 %v5041_v17, 16  ;;  %v1078_v43 = vsub.s32 69, %v1070_v14  ;;  %v5058_v40 = vsel %vm363_vm3, %v5052_v33, 2147483648  ;;  %v1094_v13 = vsel %vm1086_vm14, %v4445_v1, 0 }
 0x31c   : > { %v5049_v46 = vsel %vm3182_vm8, %v4753_v60, %v1080_v6  ;;  %v981_v62 = vpop.xlane.xlu0 %980  ;;  %v1211_v55 = vshra.s32 %v5058_v40, 16  ;;  %v1110_v27 = vunpack.c.l.b16 %v1094_v13  ;;  %v1014_v14 = vshll.u32 %v1013_v45, 16 }
 0x31d   : > { %v5054_v32 = vcvt.s32.f32 %v1241_v44  ;;  %v5063_v61 = vsel %vm3182_vm8, %v4764_v10, %v1078_v43  ;;  %v982_v60 = vcvt.f32.s32 %v981_v62  ;;  %v1011_v0 = vpop.xlane.xlu2 %1010  ;;  %v1028_v44 = vcvt.f32.s32 %v4970_v18 }
 0x31e   : > { %v5069_v52 = vcvt.s32.f32 %v1211_v55  ;;  %v1117_v6 = vpack.c.b16 %v1110_v27, %v1109_v2  ;;  %v1012_v53 = vcvt.f32.s32 %v1011_v0 }
 0x31f   : > { %1244 = vmax.xlane.f32.xlu0 %v5054_v32  ;;  %v5067_v34 = vadd.s32 %v984_v3, %v982_v60  ;;  %v1029_v62 = vshll.u32 %v1028_v44, 16 }
 0x320   : > { %1214 = vmax.xlane.f32.xlu1 %v5069_v52  ;;  %3496 = vmatmul.msk.bf16.vlgmr.msrb.gmra.mxu2 %vm363_vm3, %v1117_v6  ;;  %v5077_v10 = vadd.s32 %v1014_v14, %v1012_v53 }
 0x321   : > { %7810 = vst [vmem:[#allocation21_spill] sm:$0xff] %v5067_v34  ;;  %v1071_v48 = vand.u32 127, %v5067_v34  ;;  %vm1063_vm15 = vcmp.eq.s32.totalorder %v4786_v31, %v5067_v34 }
 0x322   : > { %7811 = vst [vmem:[#allocation22_spill] sm:$0xff] %v5077_v10  ;;  %v5080_v3 = vsel %vm1063_vm15, 2147483648, %v4786_v31  ;;  %v1073_v18 = vand.u32 127, %v5077_v10  ;;  %vm1065_vm0 = vcmp.eq.s32.totalorder %v4798_v16, %v5077_v10  ;;  %vm5093_vm1 = vmpackc.low %vm1063_vm15, %vm1063_vm15 }
 0x323   : > { %v1079_v43 = vsub.s32 69, %v1071_v48  ;;  %v5084_v45 = vsel %vm363_vm3, %v5080_v3, 2147483648  ;;  %v5101_v55 = vsel %vm1065_vm0, 2147483648, %v4798_v16  ;;  %vm1089_vm7 = vmpackc.low %vm1065_vm0, %vm1065_vm0 }
 0x324   : > { %v1081_v48 = vsub.s32 69, %v1073_v18  ;;  %v1226_v27 = vshra.s32 %v5084_v45, 16  ;;  %v1043_v18 = vcvt.f32.s32 %v4975_v41 }
 0x325   : > { %v1026_v2 = vpop.xlane.xlu0 %1025  ;;  %v5089_v13 = vsel %vm3182_vm8, %v4813_v50, %v1079_v43  ;;  %v5108_v50 = vsel %vm363_vm3, %v5101_v55, 2147483648  ;;  %v1095_v43 = vsel %vm5093_vm1, %v4510_v57, 0 }
 0x326   : > { %v1027_v60 = vcvt.f32.s32 %v1026_v2  ;;  %v5120_v14 = vsel %vm3182_vm8, %v4810_v11, %v1081_v48  ;;  %v1256_v53 = vshra.s32 %v5108_v50, 16  ;;  %v5123_v44 = vcvt.s32.f32 %v1226_v27 }
 0x327   : > { %v1096_v11 = vsel %vm5114_vm2, %v4525_v58, 0 }
 0x328   : > { %v5104_v0 = vadd.s32 %v1029_v62, %v1027_v60  ;;  %v5132_v2 = vcvt.s32.f32 %v1256_v53  ;;  %1229 = vmax.xlane.f32.xlu2 %v5123_v44  ;;  %v1111_v60 = vunpack.c.l.b16 %v1095_v43  ;;  %v1044_v53 = vshll.u32 %v1043_v18, 16 }
 0x329   : > { %v1112_v34 = vunpack.c.l.b16 %v1096_v11 }
 0x32a   : > { %7814 = vst [vmem:[#allocation23_spill] sm:$0xff] %v5104_v0  ;;  %v1074_v49 = vand.u32 127, %v5104_v0  ;;  %vm1066_vm4 = vcmp.eq.s32.totalorder %v4859_v23, %v5104_v0  ;;  %1259 = vmax.xlane.f32.xlu1 %v5132_v2 }
 0x32b   : > { %v5142_v62 = vsel %vm1066_vm4, 2147483648, %v4859_v23  ;;  %v1118_v43 = vpack.c.b16 %v1112_v34, %v1111_v60  ;;  %vm1090_vm6 = vmpackc.low %vm1066_vm4, %vm1066_vm4  ;;  %v1097_v60 = vsel %vm1089_vm7, %v4515_v5, 0  ;;  %v1058_v23 = vcvt.f32.s32 %v5001_v59 }
 0x32c   : > { %v1082_v41 = vsub.s32 69, %v1074_v49  ;;  %v5146_v31 = vsel %vm363_vm3, %v5142_v62, 2147483648 }
 0x32d   : > { %v1041_v48 = vpop.xlane.xlu1 %1040  ;;  %v1271_v27 = vshra.s32 %v5146_v31, 16 }
 0x32e   : > { %v5152_v6 = vsel %vm3182_vm8, %v4873_v56, %v1082_v41  ;;  %v1042_v30 = vcvt.f32.s32 %v1041_v48  ;;  %v1113_v48 = vunpack.c.l.b16 %v1097_v60 }
 0x32f   : > { %v5154_v24 = vcvt.s32.f32 %v1271_v27 }
 0x330   : > { %v5156_v49 = vadd.s32 %v1044_v53, %v1042_v30  ;;  %3497 = vmatmul.msk.bf16.gmra.mxu2 %vm363_vm3, %v1118_v43  ;;  %v1195_v53 = vand.u32 65535, %v4999_v26 }
 0x331   : > { %1274 = vmax.xlane.f32.xlu2 %v5154_v24 }
 0x332   : > { %7817 = vst [vmem:[#allocation24_spill] sm:$0xff] %v5156_v49  ;;  %v1075_v51 = vand.u32 127, %v5156_v49  ;;  %vm1067_vm5 = vcmp.eq.s32.totalorder %v4892_v9, %v5156_v49  ;;  %v1197_v0 = vcvt.s32.f32 %v1195_v53 }
 0x333   : > { %v5167_v56 = vsel %vm1067_vm5, 2147483648, %v4892_v9  ;;  %vm1091_vm11 = vmpackc.low %vm1067_vm5, %vm1067_vm5 }
 0x334   : > { %v1083_v18 = vsub.s32 69, %v1075_v51  ;;  %v5171_v30 = vsel %vm363_vm3, %v5167_v56, 2147483648  ;;  %v1098_v51 = vsel %vm1090_vm6, %v4538_v19, 0  ;;  %v1099_v26 = vsel %vm1091_vm11, %v4607_v22, 0 }
 0x335   : > { %v1286_v34 = vshra.s32 %v5171_v30, 16  ;;  %vm3191_vm6 = vcmask 23552  }
 0x336   : > { %v5176_v11 = vsel %vm3182_vm8, %v4901_v36, %v1083_v18  ;;  %v1114_v36 = vunpack.c.l.b16 %v1098_v51  ;;  %v1059_v18 = vshll.u32 %v1058_v23, 16  ;;  %v1115_v23 = vunpack.c.l.b16 %v1099_v26 }
 0x337   : > { %v5182_v41 = vcvt.s32.f32 %v1286_v34  ;;  %v1255_v26 = vand.u32 65535, %v5108_v50 }
 0x338   : > { %v1119_v27 = vpack.c.b16 %v1114_v36, %v1113_v48  ;;  %v1240_v36 = vand.u32 65535, %v5041_v17 }
 0x339   : > { %1289 = vmax.xlane.f32.xlu2 %v5182_v41 }
 0x340   : > { %3498 = vmatmul.msk.bf16.gmra.mxu2 %vm363_vm3, %v1119_v27  ;;  %v1210_v27 = vand.u32 65535, %v5058_v40 }
 0x389   : > { %v1056_v43 = vpop.xlane.xlu2 %1055 }
 0x38a   : > { %v1057_v16 = vcvt.f32.s32 %v1056_v43  ;;  %v1200_v34 = vpop.xlane.xlu0 %1199 }
 0x38b   : > { %vm1201_vm9 = vcmp.eq.f32.partialorder %v5010_v47, %v1200_v34 }
 0x38c   : > { %v5199_v51 = vadd.s32 %v1059_v18, %v1057_v16  ;;  %v1202_v60 = vsel %vm1201_vm9, %v1197_v0, -inf  ;;  %v1242_v16 = vcvt.s32.f32 %v1240_v36 }
 0x38d   : > { %1203 = vmax.xlane.f32.xlu0 %v1202_v60 }
 0x38e   : > { %7818 = vst [vmem:[#allocation25_spill] sm:$0xff] %v5199_v51  ;;  %v1076_v59 = vand.u32 127, %v5199_v51  ;;  %vm1068_vm12 = vcmp.eq.s32.totalorder %v4935_v35, %v5199_v51  ;;  %v1212_v51 = vcvt.s32.f32 %v1210_v27  ;;  %v1257_v27 = vcvt.s32.f32 %v1255_v26 }
 0x38f   : > { %vm1092_vm13 = vmpackc.low %vm1068_vm12, %vm1068_vm12  ;;  %v5207_v47 = vsel %vm1068_vm12, 2147483648, %v4935_v35 }
 0x390   : > { %v1084_v9 = vsub.s32 69, %v1076_v59  ;;  %v1100_v48 = vsel %vm1092_vm13, %v4617_v15, 0  ;;  %v1299_v0 = vsel %vm363_vm3, %v5207_v47, 2147483648 }
 0x391   : > { %v1116_v53 = vunpack.c.l.b16 %v1100_v48  ;;  %v1301_v43 = vshra.s32 %v1299_v0, 16 }
 0x392   : > { %v5215_v18 = vsel %vm3182_vm8, %v4945_v37, %v1084_v9  ;;  %v1245_v17 = vpop.xlane.xlu0 %1244  ;;  %v1225_v37 = vand.u32 65535, %v5084_v45 }
 0x393   : > { %v1120_v60 = vpack.c.b16 %v1116_v53, %v1115_v23  ;;  %v1303_v35 = vcvt.s32.f32 %v1301_v43  ;;  %vm1246_vm14 = vcmp.eq.f32.partialorder %v5054_v32, %v1245_v17  ;;  %v1215_v49 = vpop.xlane.xlu1 %1214 }
 0x394   : > { %v1247_v59 = vsel %vm1246_vm14, %v1242_v16, -inf  ;;  %vm1216_vm15 = vcmp.eq.f32.partialorder %v5069_v52, %v1215_v49  ;;  %v1227_v9 = vcvt.s32.f32 %v1225_v37  ;;  %v1300_v37 = vand.u32 65535, %v1299_v0 }
 0x395   : > { %3499 = vmatmul.msk.bf16.gmra.mxu2 %vm363_vm3, %v1120_v60  ;;  %1304 = vmax.xlane.f32.xlu0 %v1303_v35  ;;  %v1217_v40 = vsel %vm1216_vm15, %v1212_v51, -inf  ;;  %v1270_v51 = vand.u32 65535, %v5146_v31  ;;  %v1206_v31 = vcvt.f32.s32 %v1200_v34 }
 0x396   : > { %1248 = vmax.xlane.f32.xlu2 %v1247_v59  ;;  %1218 = vmax.xlane.f32.xlu1 %v1217_v40 }
 0x397   : > { %v1272_v50 = vcvt.s32.f32 %v1270_v51  ;;  %v1207_v60 = vshll.u32 %v1206_v31, 16 }
 0x39b   : > { %v5222_v36 = vpop.xlane.xlu2 %1229 }
 0x39c   : > { %vm1231_vm0 = vcmp.eq.f32.partialorder %v5123_v44, %v5222_v36  ;;  %v1285_v44 = vand.u32 65535, %v5171_v30  ;;  %v1251_v30 = vcvt.f32.s32 %v1245_v17 }
 0x39d   : > { %v5226_v32 = vpop.xlane.xlu1 %1259  ;;  %v1232_v48 = vsel %vm1231_vm0, %v1227_v9, -inf  ;;  %v1221_v9 = vcvt.f32.s32 %v1215_v49 }
 0x39e   : > { %1233 = vmax.xlane.f32.xlu1 %v1232_v48  ;;  %vm1261_vm1 = vcmp.eq.f32.partialorder %v5132_v2, %v5226_v32  ;;  %v1287_v43 = vcvt.s32.f32 %v1285_v44  ;;  %v1302_v48 = vcvt.s32.f32 %v1300_v37  ;;  %v1252_v51 = vshll.u32 %v1251_v30, 16 }
 0x39f   : > { %v1262_v52 = vsel %vm1261_vm1, %v1257_v27, -inf  ;;  %v1222_v49 = vshll.u32 %v1221_v9, 16  ;;  %v1266_v30 = vcvt.f32.s32 %v5226_v32 }
 0x3a0   : > { %1263 = vmax.xlane.f32.xlu0 %v1262_v52 }
 0x3a4   : > { %v5231_v45 = vpop.xlane.xlu2 %1274 }
 0x3a5   : > { %vm1276_vm2 = vcmp.eq.f32.partialorder %v5154_v24, %v5231_v45 }
 0x3a6   : > { %v1277_v23 = vsel %vm1276_vm2, %v1272_v50, -inf }
 0x3a7   : > { %1278 = vmax.xlane.f32.xlu1 %v1277_v23 }
 0x3ac   : > { %v5236_v53 = vpop.xlane.xlu2 %1289 }
 0x3ad   : > { %vm1291_vm4 = vcmp.eq.f32.partialorder %v5182_v41, %v5236_v53 }
 0x3ae   : > { %v1292_v2 = vsel %vm1291_vm4, %v1287_v43, -inf }
 0x3af   : > { %1293 = vmax.xlane.f32.xlu2 %v1292_v2 }
 0x400   : > { %v1204_v16 = vpop.xlane.xlu0 %1203 }
 0x401   : > { %v1205_v59 = vcvt.f32.s32 %v1204_v16 }
 0x403   : > { %v5240_v40 = vadd.s32 %v1207_v60, %v1205_v59  ;;  %v1236_v60 = vcvt.f32.s32 %v5222_v36 }
 0x405   : > { %7819 = vst [vmem:[#allocation26_spill] sm:$0xff] %v5240_v40  ;;  %v1322_v24 = vand.u32 127, %v5240_v40  ;;  %vm1314_vm5 = vcmp.eq.s32.totalorder %v4994_v28, %v5240_v40 }
 0x406   : > { %v5249_v41 = vsel %vm1314_vm5, 2147483648, %v4994_v28  ;;  %vm5272_vm9 = vmpackc.low %vm1314_vm5, %vm1314_vm5 }
 0x407   : > { %v1330_v34 = vsub.s32 69, %v1322_v24  ;;  %v5253_v26 = vsel %vm363_vm3, %v5249_v41, 2147483648  ;;  %v1346_v24 = vsel %vm5272_vm9, %v4420_v7, 0 }
 0x408   : > { %v5255_v0 = vpop.xlane.xlu0 %1304  ;;  %v1449_v27 = vshra.s32 %v5253_v26, 16  ;;  %v1362_v32 = vunpack.c.l.b16 %v1346_v24 }
 0x409   : > { %v5260_v17 = vsel %vm3191_vm6, %v5006_v4, %v1330_v34  ;;  %v1249_v52 = vpop.xlane.xlu2 %1248  ;;  %vm1306_vm7 = vcmp.eq.f32.partialorder %v1303_v35, %v5255_v0  ;;  %v1219_v43 = vpop.xlane.xlu1 %1218 }
 0x40a   : > { %v1250_v50 = vcvt.f32.s32 %v1249_v52  ;;  %v1307_v23 = vsel %vm1306_vm7, %v1302_v48, -inf  ;;  %v5263_v44 = vcvt.s32.f32 %v1449_v27  ;;  %v1220_v2 = vcvt.f32.s32 %v1219_v43 }
 0x40b   : > { %1308 = vmax.xlane.f32.xlu0 %v1307_v23  ;;  %v1237_v23 = vshll.u32 %v1236_v60, 16 }
 0x40c   : > { %v5265_v31 = vadd.s32 %v1252_v51, %v1250_v50  ;;  %1452 = vmax.xlane.f32.xlu1 %v5263_v44  ;;  %v5276_v35 = vadd.s32 %v1222_v49, %v1220_v2 }
 0x40e   : > { %7820 = vst [vmem:[#allocation27_spill] sm:$0xff] %v5265_v31  ;;  %v1325_v16 = vand.u32 127, %v5265_v31  ;;  %vm1317_vm11 = vcmp.eq.s32.totalorder %v5033_v63, %v5265_v31  ;;  %v1323_v28 = vand.u32 127, %v5276_v35  ;;  %vm1315_vm12 = vcmp.eq.s32.totalorder %v5052_v33, %v5276_v35 }
 0x40f   : > { %v5286_v59 = vsel %vm1317_vm11, 2147483648, %v5033_v63  ;;  %vm1339_vm13 = vmpackc.low %vm1315_vm12, %vm1315_vm12  ;;  %v5296_v36 = vsel %vm1315_vm12, 2147483648, %v5052_v33 }
 0x410   : > { %v1333_v37 = vsub.s32 69, %v1325_v16  ;;  %v5300_v34 = vsel %vm363_vm3, %v5286_v59, 2147483648  ;;  %v1331_v9 = vsub.s32 69, %v1323_v28  ;;  %v1347_v27 = vsel %vm1339_vm13, %v4445_v1, 0  ;;  %vm5361_vm1 = vmpackc.low %vm1317_vm11, %vm1317_vm11 }
 0x411   : > { %v5309_v52 = vsel %vm363_vm3, %v5296_v36, 2147483648  ;;  %v1363_v51 = vunpack.c.l.b16 %v1347_v27  ;;  %v1494_v50 = vshra.s32 %v5300_v34, 16  ;;  %v1234_v49 = vpop.xlane.xlu1 %1233 }
 0x412   : > { %v5304_v48 = vsel %vm3191_vm6, %v5049_v46, %v1333_v37  ;;  %v1464_v33 = vshra.s32 %v5309_v52, 16  ;;  %v5315_v43 = vsel %vm3191_vm6, %v5063_v61, %v1331_v9  ;;  %v1235_v46 = vcvt.f32.s32 %v1234_v49 }
 0x413   : > { %v5319_v4 = vcvt.s32.f32 %v1494_v50  ;;  %v1370_v16 = vpack.c.b16 %v1363_v51, %v1362_v32  ;;  %v1264_v28 = vpop.xlane.xlu0 %1263  ;;  %v1267_v37 = vshll.u32 %v1266_v30, 16  ;;  %v1281_v61 = vcvt.f32.s32 %v5231_v45 }
 0x414   : > { %v5317_v2 = vcvt.s32.f32 %v1464_v33  ;;  %v5321_v24 = vadd.s32 %v1237_v23, %v1235_v46  ;;  %v1265_v27 = vcvt.f32.s32 %v1264_v28 }
 0x415   : > { %1497 = vmax.xlane.f32.xlu1 %v5319_v4  ;;  %3500 = vmatmul.msk.bf16.vlgmr.msrb.gmra.mxu3 %vm363_vm3, %v1370_v16  ;;  %v1282_v23 = vshll.u32 %v1281_v61, 16 }
 0x416   : > { %7823 = vst [vmem:[#allocation28_spill] sm:$0xff] %v5321_v24  ;;  %1467 = vmax.xlane.f32.xlu2 %v5317_v2  ;;  %v1324_v60 = vand.u32 127, %v5321_v24  ;;  %v5328_v9 = vadd.s32 %v1267_v37, %v1265_v27  ;;  %vm1316_vm14 = vcmp.eq.s32.totalorder %v5080_v3, %v5321_v24 }
 0x417   : > { %v5334_v51 = vsel %vm1316_vm14, 2147483648, %v5080_v3  ;;  %vm5342_vm0 = vmpackc.low %vm1316_vm14, %vm1316_vm14 }
 0x418   : > { %7824 = vst [vmem:[#allocation29_spill] sm:$0xff] %v5328_v9  ;;  %v1332_v32 = vsub.s32 69, %v1324_v60  ;;  %v1326_v30 = vand.u32 127, %v5328_v9  ;;  %v5338_v50 = vsel %vm363_vm3, %v5334_v51, 2147483648  ;;  %vm1318_vm15 = vcmp.eq.s32.totalorder %v5101_v55, %v5328_v9 }
 0x419   : > { %v1479_v16 = vshra.s32 %v5338_v50, 16  ;;  %v5355_v28 = vsel %vm1318_vm15, 2147483648, %v5101_v55  ;;  %v1348_v60 = vsel %vm5342_vm0, %v4510_v57, 0  ;;  %vm1342_vm7 = vmpackc.low %vm1318_vm15, %vm1318_vm15 }
 0x41a   : > { %v1279_v33 = vpop.xlane.xlu1 %1278  ;;  %v5348_v49 = vsel %vm3191_vm6, %v5089_v13, %v1332_v32  ;;  %v1334_v46 = vsub.s32 69, %v1326_v30  ;;  %v5373_v61 = vsel %vm363_vm3, %v5355_v28, 2147483648  ;;  %v1296_v30 = vcvt.f32.s32 %v5236_v53 }
 0x41b   : > { %v1280_v3 = vcvt.f32.s32 %v1279_v33  ;;  %v5378_v63 = vcvt.s32.f32 %v1479_v16  ;;  %v1509_v32 = vshra.s32 %v5373_v61, 16 }
 0x41c   : > { %v5367_v13 = vsel %vm3191_vm6, %v5120_v14, %v1334_v46  ;;  %v1349_v14 = vsel %vm5361_vm1, %v4525_v58, 0  ;;  %v1364_v46 = vunpack.c.l.b16 %v1348_v60 }
 0x41d   : > { %v5369_v27 = vadd.s32 %v1282_v23, %v1280_v3  ;;  %1482 = vmax.xlane.f32.xlu0 %v5378_v63  ;;  %v5387_v23 = vcvt.s32.f32 %v1509_v32  ;;  %v1365_v16 = vunpack.c.l.b16 %v1349_v14  ;;  %v1297_v32 = vshll.u32 %v1296_v30, 16 }
 0x41f   : > { %7829 = vst [vmem:[#allocation30_spill] sm:$0xff] %v5369_v27  ;;  %v1327_v33 = vand.u32 127, %v5369_v27  ;;  %vm1319_vm2 = vcmp.eq.s32.totalorder %v5142_v62, %v5369_v27  ;;  %1512 = vmax.xlane.f32.xlu2 %v5387_v23  ;;  %v1371_v40 = vpack.c.b16 %v1365_v16, %v1364_v46  ;;  %v1350_v16 = vsel %vm1342_vm7, %v4515_v5, 0 }
 0x420   : > { %v5395_v53 = vsel %vm1319_vm2, 2147483648, %v5142_v62  ;;  %vm1343_vm5 = vmpackc.low %vm1319_vm2, %vm1319_vm2 }
 0x421   : > { %v1335_v45 = vsub.s32 69, %v1327_v33  ;;  %v5400_v37 = vsel %vm363_vm3, %v5395_v53, 2147483648 }
 0x422   : > { %v1294_v3 = vpop.xlane.xlu2 %1293  ;;  %v1524_v31 = vshra.s32 %v5400_v37, 16 }
 0x423   : > { %v5404_v60 = vsel %vm3191_vm6, %v5152_v6, %v1335_v45  ;;  %v1295_v33 = vcvt.f32.s32 %v1294_v3  ;;  %v1351_v3 = vsel %vm1343_vm5, %v4538_v19, 0 }
 0x424   : > { %v5409_v10 = vcvt.s32.f32 %v1524_v31  ;;  %v1367_v62 = vunpack.c.l.b16 %v1351_v3 }
 0x425   : > { %v5407_v24 = vadd.s32 %v1297_v32, %v1295_v33  ;;  %3501 = vmatmul.msk.bf16.gmra.mxu3 %vm363_vm3, %v1371_v40  ;;  %v1366_v32 = vunpack.c.l.b16 %v1350_v16 }
 0x426   : > { %1527 = vmax.xlane.f32.xlu0 %v5409_v10 }
 0x427   : > { %7830 = vst [vmem:[#allocation31_spill] sm:$0xff] %v5407_v24  ;;  %v1328_v14 = vand.u32 127, %v5407_v24  ;;  %vm1320_vm4 = vcmp.eq.s32.totalorder %v5167_v56, %v5407_v24  ;;  %v1372_v33 = vpack.c.b16 %v1367_v62, %v1366_v32 }
 0x428   : > { %v5420_v6 = vsel %vm1320_vm4, 2147483648, %v5167_v56  ;;  %vm5455_vm11 = vmpackc.low %vm1320_vm4, %vm1320_vm4 }
 0x429   : > { %v1336_v30 = vsub.s32 69, %v1328_v14  ;;  %v5424_v31 = vsel %vm363_vm3, %v5420_v6, 2147483648  ;;  %v1448_v14 = vand.u32 65535, %v5253_v26  ;;  %v1352_v56 = vsel %vm5455_vm11, %v4607_v22, 0 }
 0x42a   : > { %v1539_v40 = vshra.s32 %v5424_v31, 16 }
 0x42b   : > { %v5433_v46 = vsel %vm3191_vm6, %v5176_v11, %v1336_v30  ;;  %v1311_v11 = vcvt.f32.s32 %v5255_v0  ;;  %v1450_v27 = vcvt.s32.f32 %v1448_v14  ;;  %v5459_v0 = vpop.f32.mrf.mxu3  ;;  %v1463_v14 = vand.u32 65535, %v5309_v52 }
 0x42c   : > { %v5435_v45 = vcvt.s32.f32 %v1539_v40  ;;  %7833 = vst [vmem:[#allocation32_spill] sm:$0xff] %v5459_v0 }
 0x42d   : > { %v1312_v40 = vshll.u32 %v1311_v11, 16  ;;  %v1465_v25 = vcvt.s32.f32 %v1463_v14 }
 0x42e   : > { %1542 = vmax.xlane.f32.xlu0 %v5435_v45 }
 0x435   : > { %3502 = vmatmul.msk.bf16.gmra.mxu3 %vm363_vm3, %v1372_v33  ;;  %v1493_v33 = vand.u32 65535, %v5300_v34  ;;  %v5486_v34 = vpop.f32.mrf.mxu3 }
 0x436   : > { %7835 = vst [vmem:[#allocation34_spill] sm:$0xff] %v5486_v34 }
 0x437   : > { %v1495_v24 = vcvt.s32.f32 %v1493_v33  ;;  %v1508_v33 = vand.u32 65535, %v5373_v61 }
 0x47e   : > { %v1309_v30 = vpop.xlane.xlu0 %1308 }
 0x47f   : > { %v1310_v55 = vcvt.f32.s32 %v1309_v30  ;;  %v5447_v9 = vpop.xlane.xlu1 %1452 }
 0x480   : > { %vm1454_vm9 = vcmp.eq.f32.partialorder %v5263_v44, %v5447_v9 }
 0x481   : > { %v5461_v26 = vadd.s32 %v1312_v40, %v1310_v55  ;;  %v1455_v16 = vsel %vm1454_vm9, %v1450_v27, -inf  ;;  %v1368_v40 = vunpack.c.l.b16 %v1352_v56  ;;  %v1478_v56 = vand.u32 65535, %v5338_v50 }
 0x482   : > { %1456 = vmax.xlane.f32.xlu1 %v1455_v16  ;;  %vm3200_vm9 = vcmask 31744  }
 0x483   : > { %7834 = vst [vmem:[#allocation33_spill] sm:$0xff] %v5461_v26  ;;  %v1329_v62 = vand.u32 127, %v5461_v26  ;;  %vm1321_vm12 = vcmp.eq.s32.totalorder %v5207_v47, %v5461_v26  ;;  %v1480_v14 = vcvt.s32.f32 %v1478_v56 }
 0x484   : > { %v5470_v44 = vsel %vm1321_vm12, 2147483648, %v5207_v47  ;;  %vm1345_vm13 = vmpackc.low %vm1321_vm12, %vm1321_vm12 }
 0x485   : > { %v1337_v32 = vsub.s32 69, %v1329_v62  ;;  %v5475_v27 = vsel %vm363_vm3, %v5470_v44, 2147483648  ;;  %v1353_v11 = vsel %vm1345_vm13, %v4617_v15, 0 }
 0x486   : > { %v1554_v30 = vshra.s32 %v5475_v27, 16  ;;  %v1369_v55 = vunpack.c.l.b16 %v1353_v11 }
 0x487   : > { %v5482_v47 = vsel %vm3191_vm6, %v5215_v18, %v1337_v32  ;;  %v5499_v32 = vpop.f32.mrf.mxu3 }
 0x488   : > { %v5484_v3 = vcvt.s32.f32 %v1554_v30  ;;  %v1373_v16 = vpack.c.b16 %v1369_v55, %v1368_v40  ;;  %v5490_v26 = vpop.xlane.xlu1 %1497  ;;  %7836 = vst [vmem:[#allocation35_spill] sm:$0xff] %v5499_v32  ;;  %v1510_v30 = vcvt.s32.f32 %v1508_v33  ;;  %v1538_v55 = vand.u32 65535, %v5424_v31 }
 0x489   : > { %v5488_v62 = vpop.xlane.xlu2 %1467  ;;  %vm1499_vm14 = vcmp.eq.f32.partialorder %v5319_v4, %v5490_v26  ;;  %v1424_v33 = vand.u32 4294967168, %v5276_v35  ;;  %v1459_v31 = vcvt.f32.s32 %v5447_v9 }
 0x48a   : > { %1557 = vmax.xlane.f32.xlu1 %v5484_v3  ;;  %3503 = vmatmul.msk.bf16.gmra.mxu3 %vm363_vm3, %v1373_v16  ;;  %vm1469_vm15 = vcmp.eq.f32.partialorder %v5317_v2, %v5488_v62  ;;  %v1500_v18 = vsel %vm1499_vm14, %v1495_v24, -inf  ;;  %v1523_v24 = vand.u32 65535, %v5400_v37  ;;  %v1540_v37 = vcvt.s32.f32 %v1538_v55 }
 0x48b   : > { %v1470_v52 = vsel %vm1469_vm15, %v1465_v25, -inf  ;;  %1501 = vmax.xlane.f32.xlu0 %v1500_v18 }
 0x48c   : > { %1471 = vmax.xlane.f32.xlu2 %v1470_v52  ;;  %v1525_v40 = vcvt.s32.f32 %v1523_v24 }
 0x490   : > { %v5502_v11 = vpop.xlane.xlu0 %1482 }
 0x491   : > { %vm1484_vm0 = vcmp.eq.f32.partialorder %v5378_v63, %v5502_v11 }
 0x492   : > { %v5506_v4 = vpop.xlane.xlu2 %1512  ;;  %v1485_v2 = vsel %vm1484_vm0, %v1480_v14, -inf }
 0x493   : > { %vm1514_vm1 = vcmp.eq.f32.partialorder %v5387_v23, %v5506_v4 }
 0x494   : > { %1486 = vmax.xlane.f32.xlu2 %v1485_v2  ;;  %v1515_v25 = vsel %vm1514_vm1, %v1510_v30, -inf }
 0x495   : > { %1516 = vmax.xlane.f32.xlu1 %v1515_v25  ;;  %v1460_v25 = vshll.u32 %v1459_v31, 16 }
 0x498   : > { %v5511_v50 = vpop.f32.mrf.mxu3 }
 0x499   : > { %7837 = vst [vmem:[#allocation36_spill] sm:$0xff] %v5511_v50  ;;  %v5513_v61 = vpop.xlane.xlu0 %1527 }
 0x49a   : > { %vm1529_vm2 = vcmp.eq.f32.partialorder %v5409_v10, %v5513_v61 }
 0x49b   : > { %v1530_v63 = vsel %vm1529_vm2, %v1525_v40, -inf }
 0x49c   : > { %1531 = vmax.xlane.f32.xlu2 %v1530_v63  ;;  %v1553_v63 = vand.u32 65535, %v5475_v27  ;;  %v1504_v27 = vcvt.f32.s32 %v5490_v26 }
 0x49e   : > { %v1505_v26 = vshll.u32 %v1504_v27, 16 }
 0x4a0   : > { %v1397_v16 = vpop.f32.mrf.mxu3 }
 0x4a1   : > { %vm3665_vm4 = vcmp.lt.s32.totalorder %v1397_v16, 0  ;;  %v3666_v23 = vceil.f32 %v1397_v16  ;;  %v3667_v18 = vfloor.f32 %v1397_v16  ;;  %v5518_v52 = vpop.xlane.xlu0 %1542  ;;  %v1474_v16 = vcvt.f32.s32 %v5488_v62 }
 0x4a2   : > { %vm1544_vm5 = vcmp.eq.f32.partialorder %v5435_v45, %v5518_v52 }
 0x4a3   : > { %v3668_v56 = vsel %vm3665_vm4, %v3666_v23, %v3667_v18  ;;  %v1545_v30 = vsel %vm1544_vm5, %v1540_v37, -inf  ;;  %v1555_v18 = vcvt.s32.f32 %v1553_v63  ;;  %v1475_v62 = vshll.u32 %v1474_v16, 16 }
 0x4a4   : > { %v3669_v14 = vcvt.f32.s32 %v3668_v56  ;;  %1546 = vmax.xlane.f32.xlu0 %v1545_v30 }
 0x4a6   : > { %v5523_v10 = vor.u32 %v3669_v14, %v1424_v33 }
 0x4a8   : > { %7838 = vst [vmem:[#allocation37_spill] sm:$0xff] %v5523_v10 }
 0x4f5   : > { %v1457_v2 = vpop.xlane.xlu1 %1456 }
 0x4f6   : > { %v1458_v24 = vcvt.f32.s32 %v1457_v2 }
 0x4f8   : > { %v5526_v40 = vadd.s32 %v1460_v25, %v1458_v24 }
 0x4fa   : > { %7839 = vst [vmem:[#allocation38_spill] sm:$0xff] %v5526_v40  ;;  %v1575_v55 = vand.u32 127, %v5526_v40  ;;  %vm1567_vm7 = vcmp.eq.s32.totalorder %v5249_v41, %v5526_v40 }
 0x4fb   : > { %v5536_v35 = vsel %vm1567_vm7, 2147483648, %v5249_v41  ;;  %vm1591_vm12 = vmpackc.low %vm1567_vm7, %vm1567_vm7 }
 0x4fc   : > { %v1583_v9 = vsub.s32 69, %v1575_v55  ;;  %v5540_v45 = vsel %vm363_vm3, %v5536_v35, 2147483648  ;;  %v1599_v55 = vsel %vm1591_vm12, %v4420_v7, 0 }
 0x4fd   : > { %v5544_v23 = vpop.xlane.xlu1 %1557  ;;  %v1702_v37 = vshra.s32 %v5540_v45, 16 }
 0x4fe   : > { %v5549_v56 = vsel %vm3200_vm9, %v5260_v17, %v1583_v9  ;;  %vm1559_vm11 = vcmp.eq.f32.partialorder %v5484_v3, %v5544_v23  ;;  %v1502_v31 = vpop.xlane.xlu0 %1501  ;;  %v1489_v9 = vcvt.f32.s32 %v5502_v11 }
 0x4ff   : > { %v1560_v33 = vsel %vm1559_vm11, %v1555_v18, -inf  ;;  %v5553_v14 = vcvt.s32.f32 %v1702_v37  ;;  %v1472_v30 = vpop.xlane.xlu2 %1471  ;;  %v1503_v25 = vcvt.f32.s32 %v1502_v31 }
 0x500   : > { %1561 = vmax.xlane.f32.xlu1 %v1560_v33  ;;  %v1473_v2 = vcvt.f32.s32 %v1472_v30  ;;  %v1615_v33 = vunpack.c.l.b16 %v1599_v55 }
 0x501   : > { %1705 = vmax.xlane.f32.xlu2 %v5553_v14  ;;  %v5562_v3 = vadd.s32 %v1505_v26, %v1503_v25 }
 0x502   : > { %v5560_v17 = vadd.s32 %v1475_v62, %v1473_v2  ;;  %v1519_v2 = vcvt.f32.s32 %v5506_v4  ;;  %v1534_v4 = vcvt.f32.s32 %v5513_v61 }
 0x503   : > { %7841 = vst [vmem:[#allocation40_spill] sm:$0xff] %v5562_v3  ;;  %v1578_v63 = vand.u32 127, %v5562_v3  ;;  %vm1570_vm15 = vcmp.eq.s32.totalorder %v5286_v59, %v5562_v3  ;;  %v1549_v3 = vcvt.f32.s32 %v5518_v52 }
 0x504   : > { %7840 = vst [vmem:[#allocation39_spill] sm:$0xff] %v5560_v17  ;;  %vm1568_vm13 = vcmp.eq.s32.totalorder %v5296_v36, %v5560_v17  ;;  %v1576_v24 = vand.u32 127, %v5560_v17  ;;  %vm5624_vm2 = vmpackc.low %vm1570_vm15, %vm1570_vm15 }
 0x505   : > { %vm1592_vm14 = vmpackc.low %vm1568_vm13, %vm1568_vm13  ;;  %v5571_v41 = vsel %vm1568_vm13, 2147483648, %v5296_v36  ;;  %v1586_v27 = vsub.s32 69, %v1578_v63  ;;  %v5585_v36 = vsel %vm1570_vm15, 2147483648, %v5286_v59 }
 0x506   : > { %v1584_v16 = vsub.s32 69, %v1576_v24  ;;  %v1600_v18 = vsel %vm1592_vm14, %v4445_v1, 0  ;;  %v5578_v37 = vsel %vm363_vm3, %v5571_v41, 2147483648  ;;  %v5597_v26 = vsel %vm363_vm3, %v5585_v36, 2147483648 }
 0x507   : > { %v1616_v30 = vunpack.c.l.b16 %v1600_v18  ;;  %v1717_v31 = vshra.s32 %v5578_v37, 16  ;;  %v5593_v62 = vsel %vm3200_vm9, %v5304_v48, %v1586_v27  ;;  %v1747_v63 = vshra.s32 %v5597_v26, 16  ;;  %v1487_v55 = vpop.xlane.xlu2 %1486 }
 0x508   : > { %v5589_v11 = vsel %vm3200_vm9, %v5315_v43, %v1584_v16  ;;  %v1490_v18 = vshll.u32 %v1489_v9, 16  ;;  %v1488_v10 = vcvt.f32.s32 %v1487_v55  ;;  %v1517_v43 = vpop.xlane.xlu1 %1516  ;;  %v1520_v16 = vshll.u32 %v1519_v2, 16 }
 0x509   : > { %v1623_v25 = vpack.c.b16 %v1616_v30, %v1615_v33  ;;  %v5600_v24 = vcvt.s32.f32 %v1717_v31  ;;  %v5605_v48 = vcvt.s32.f32 %v1747_v63  ;;  %v1518_v27 = vcvt.f32.s32 %v1517_v43 }
 0x50a   : > { %v5607_v17 = vadd.s32 %v1490_v18, %v1488_v10  ;;  %v1535_v10 = vshll.u32 %v1534_v4, 16 }
 0x50b   : > { %3504 = vmatmul.msk.bf16.vlgmr.msrb.gmra.mxu0 %vm363_vm3, %v1623_v25  ;;  %1720 = vmax.xlane.f32.xlu0 %v5600_v24  ;;  %v5611_v33 = vadd.s32 %v1520_v16, %v1518_v27  ;;  %v1602_v27 = vsel %vm5624_vm2, %v4525_v58, 0 }
 0x50c   : > { %1750 = vmax.xlane.f32.xlu2 %v5605_v48  ;;  %v1577_v9 = vand.u32 127, %v5607_v17  ;;  %vm1569_vm0 = vcmp.eq.s32.totalorder %v5334_v51, %v5607_v17 }
 0x50d   : > { %7842 = vst [vmem:[#allocation41_spill] sm:$0xff] %v5611_v33  ;;  %v5617_v30 = vsel %vm1569_vm0, 2147483648, %v5334_v51  ;;  %vm1593_vm1 = vmpackc.low %vm1569_vm0, %vm1569_vm0  ;;  %v1579_v31 = vand.u32 127, %v5611_v33  ;;  %vm1571_vm4 = vcmp.eq.s32.totalorder %v5355_v28, %v5611_v33 }
 0x50e   : > { %v1585_v2 = vsub.s32 69, %v1577_v9  ;;  %v5630_v63 = vsel %vm363_vm3, %v5617_v30, 2147483648  ;;  %v1601_v51 = vsel %vm1593_vm1, %v4510_v57, 0  ;;  %v5644_v16 = vsel %vm1571_vm4, 2147483648, %v5355_v28  ;;  %vm1595_vm12 = vmpackc.low %vm1571_vm4, %vm1571_vm4 }
 0x50f   : > { %v1532_v25 = vpop.xlane.xlu2 %1531  ;;  %v1587_v55 = vsub.s32 69, %v1579_v31  ;;  %v1732_v43 = vshra.s32 %v5630_v63, 16  ;;  %v1617_v4 = vunpack.c.l.b16 %v1601_v51  ;;  %v1564_v28 = vcvt.f32.s32 %v5544_v23 }
 0x510   : > { %v5637_v59 = vsel %vm3200_vm9, %v5348_v49, %v1585_v2  ;;  %v1533_v18 = vcvt.f32.s32 %v1532_v25  ;;  %v5659_v2 = vsel %vm363_vm3, %v5644_v16, 2147483648 }
 0x511   : > { %v5651_v9 = vsel %vm3200_vm9, %v5367_v13, %v1587_v55  ;;  %v5655_v31 = vcvt.s32.f32 %v1732_v43  ;;  %v1762_v25 = vshra.s32 %v5659_v2, 16  ;;  %v1618_v13 = vunpack.c.l.b16 %v1602_v27 }
 0x512   : > { %v5653_v49 = vadd.s32 %v1535_v10, %v1533_v18  ;;  %v1550_v27 = vshll.u32 %v1549_v3, 16  ;;  %v1565_v33 = vshll.u32 %v1564_v28, 16  ;;  %v1746_v28 = vand.u32 65535, %v5597_v26 }
 0x513   : > { %1735 = vmax.xlane.f32.xlu1 %v5655_v31  ;;  %v5667_v10 = vcvt.s32.f32 %v1762_v25  ;;  %v1624_v18 = vpack.c.b16 %v1618_v13, %v1617_v4 }
 0x514   : > { %7845 = vst [vmem:[#allocation42_spill] sm:$0xff] %v5653_v49  ;;  %v1580_v61 = vand.u32 127, %v5653_v49  ;;  %vm1572_vm5 = vcmp.eq.s32.totalorder %v5395_v53, %v5653_v49 }
 0x515   : > { %v5673_v51 = vsel %vm1572_vm5, 2147483648, %v5395_v53  ;;  %1765 = vmax.xlane.f32.xlu0 %v5667_v10  ;;  %vm1596_vm11 = vmpackc.low %vm1572_vm5, %vm1572_vm5 }
 0x516   : > { %v1588_v55 = vsub.s32 69, %v1580_v61  ;;  %v5677_v52 = vsel %vm363_vm3, %v5673_v51, 2147483648  ;;  %v1604_v3 = vsel %vm1596_vm11, %v4538_v19, 0 }
 0x517   : > { %v1547_v43 = vpop.xlane.xlu0 %1546  ;;  %v1777_v40 = vshra.s32 %v5677_v52, 16 }
 0x518   : > { %v5683_v25 = vsel %vm3200_vm9, %v5404_v60, %v1588_v55  ;;  %v1548_v50 = vcvt.f32.s32 %v1547_v43  ;;  %v1620_v55 = vunpack.c.l.b16 %v1604_v3 }
 0x519   : > { %v5686_v32 = vcvt.s32.f32 %v1777_v40 }
 0x51a   : > { %v5688_v61 = vadd.s32 %v1550_v27, %v1548_v50  ;;  %v1701_v27 = vand.u32 65535, %v5540_v45 }
 0x51b   : > { %3505 = vmatmul.msk.bf16.gmra.mxu0 %vm363_vm3, %v1624_v18  ;;  %1780 = vmax.xlane.f32.xlu1 %v5686_v32 }
 0x51c   : > { %7846 = vst [vmem:[#allocation43_spill] sm:$0xff] %v5688_v61  ;;  %v1581_v12 = vand.u32 127, %v5688_v61  ;;  %vm1573_vm7 = vcmp.eq.s32.totalorder %v5420_v6, %v5688_v61 }
 0x51d   : > { %v5702_v60 = vsel %vm1573_vm7, 2147483648, %v5420_v6  ;;  %vm1597_vm14 = vmpackc.low %vm1573_vm7, %vm1573_vm7 }
 0x51e   : > { %v1589_v50 = vsub.s32 69, %v1581_v12  ;;  %v5706_v40 = vsel %vm363_vm3, %v5702_v60, 2147483648  ;;  %v1603_v12 = vsel %vm1595_vm12, %v4515_v5, 0  ;;  %v1605_v23 = vsel %vm1597_vm14, %v4607_v22, 0 }
 0x51f   : > { %v1792_v53 = vshra.s32 %v5706_v40, 16  ;;  %v1619_v18 = vunpack.c.l.b16 %v1603_v12  ;;  %v1621_v12 = vunpack.c.l.b16 %v1605_v23  ;;  %vm3209_vm14 = vcmask 39936  }
 0x520   : > { %v5716_v4 = vsel %vm3200_vm9, %v5433_v46, %v1589_v50  ;;  %v1703_v50 = vcvt.s32.f32 %v1701_v27 }
 0x521   : > { %v5718_v13 = vcvt.s32.f32 %v1792_v53  ;;  %v1625_v43 = vpack.c.b16 %v1620_v55, %v1619_v18  ;;  %v1716_v18 = vand.u32 65535, %v5578_v37  ;;  %v5762_v37 = vpop.f32.mrf.mxu0 }
 0x522   : > { %7848 = vst [vmem:[#allocation45_spill] sm:$0xff] %v5762_v37 }
 0x523   : > { %1795 = vmax.xlane.f32.xlu1 %v5718_v13 }
 0x52b   : > { %3506 = vmatmul.msk.bf16.gmra.mxu0 %vm363_vm3, %v1625_v43 }
 0x573   : > { %v1562_v49 = vpop.xlane.xlu1 %1561 }
 0x574   : > { %v1563_v8 = vcvt.f32.s32 %v1562_v49  ;;  %v5725_v46 = vpop.xlane.xlu2 %1705 }
 0x575   : > { %vm1707_vm13 = vcmp.eq.f32.partialorder %v5553_v14, %v5725_v46 }
 0x576   : > { %v5733_v53 = vadd.s32 %v1565_v33, %v1563_v8  ;;  %v1708_v3 = vsel %vm1707_vm13, %v1703_v50, -inf }
 0x577   : > { %1709 = vmax.xlane.f32.xlu2 %v1708_v3  ;;  %v1718_v3 = vcvt.s32.f32 %v1716_v18 }
 0x578   : > { %7847 = vst [vmem:[#allocation44_spill] sm:$0xff] %v5733_v53  ;;  %v1582_v45 = vand.u32 127, %v5733_v53  ;;  %vm1574_vm15 = vcmp.eq.s32.totalorder %v5470_v44, %v5733_v53 }
 0x579   : > { %v5740_v49 = vsel %vm1574_vm15, 2147483648, %v5470_v44  ;;  %vm1598_vm0 = vmpackc.low %vm1574_vm15, %vm1574_vm15 }
 0x57a   : > { %v1590_v14 = vsub.s32 69, %v1582_v45  ;;  %v5744_v6 = vsel %vm363_vm3, %v5740_v49, 2147483648  ;;  %v1606_v8 = vsel %vm1598_vm0, %v4617_v15, 0 }
 0x57b   : > { %v1807_v33 = vshra.s32 %v5744_v6, 16  ;;  %v1622_v55 = vunpack.c.l.b16 %v1606_v8 }
 0x57c   : > { %v5751_v43 = vsel %vm3200_vm9, %v5482_v47, %v1590_v14  ;;  %v1748_v47 = vcvt.s32.f32 %v1746_v28  ;;  %v1731_v14 = vand.u32 65535, %v5630_v63  ;;  %v1776_v63 = vand.u32 65535, %v5677_v52 }
 0x57d   : > { %v5753_v44 = vcvt.s32.f32 %v1807_v33  ;;  %v1626_v27 = vpack.c.b16 %v1622_v55, %v1621_v12  ;;  %v1761_v33 = vand.u32 65535, %v5659_v2 }
 0x57e   : > { %v5756_v50 = vpop.xlane.xlu0 %1720 }
 0x57f   : > { %1810 = vmax.xlane.f32.xlu2 %v5753_v44  ;;  %3507 = vmatmul.msk.bf16.gmra.mxu0 %vm363_vm3, %v1626_v27  ;;  %vm1722_vm1 = vcmp.eq.f32.partialorder %v5600_v24, %v5756_v50  ;;  %v5764_v45 = vpop.xlane.xlu2 %1750  ;;  %v1733_v24 = vcvt.s32.f32 %v1731_v14 }
 0x580   : > { %v1723_v23 = vsel %vm1722_vm1, %v1718_v3, -inf  ;;  %vm1752_vm2 = vcmp.eq.f32.partialorder %v5605_v48, %v5764_v45  ;;  %v1763_v48 = vcvt.s32.f32 %v1761_v33  ;;  %v1778_v3 = vcvt.s32.f32 %v1776_v63 }
 0x581   : > { %1724 = vmax.xlane.f32.xlu0 %v1723_v23  ;;  %v1753_v26 = vsel %vm1752_vm2, %v1748_v47, -inf  ;;  %v1791_v47 = vand.u32 65535, %v5706_v40  ;;  %v1712_v40 = vcvt.f32.s32 %v5725_v46 }
 0x582   : > { %1754 = vmax.xlane.f32.xlu1 %v1753_v26 }
 0x583   : > { %v1793_v52 = vcvt.s32.f32 %v1791_v47  ;;  %v1806_v47 = vand.u32 65535, %v5744_v6 }
 0x586   : > { %v5772_v12 = vpop.xlane.xlu1 %1735 }
 0x587   : > { %vm1737_vm4 = vcmp.eq.f32.partialorder %v5655_v31, %v5772_v12 }
 0x588   : > { %v5769_v8 = vpop.f32.mrf.mxu0  ;;  %v1738_v55 = vsel %vm1737_vm4, %v1733_v24, -inf  ;;  %v5776_v18 = vpop.xlane.xlu0 %1765  ;;  %v1678_v24 = vand.u32 4294967168, %v5607_v17 }
 0x589   : > { %7849 = vst [vmem:[#allocation46_spill] sm:$0xff] %v5769_v8  ;;  %1739 = vmax.xlane.f32.xlu0 %v1738_v55  ;;  %vm1767_vm5 = vcmp.eq.f32.partialorder %v5667_v10, %v5776_v18 }
 0x58a   : > { %v1768_v28 = vsel %vm1767_vm5, %v1763_v48, -inf }
 0x58b   : > { %1769 = vmax.xlane.f32.xlu2 %v1768_v28  ;;  %v1713_v28 = vshll.u32 %v1712_v40, 16 }
 0x58e   : > { %v5783_v2 = vpop.xlane.xlu1 %1780 }
 0x58f   : > { %vm1782_vm7 = vcmp.eq.f32.partialorder %v5686_v32, %v5783_v2 }
 0x590   : > { %v5781_v27 = vpop.f32.mrf.mxu0  ;;  %v1783_v31 = vsel %vm1782_vm7, %v1778_v3, -inf }
 0x591   : > { %7850 = vst [vmem:[#allocation47_spill] sm:$0xff] %v5781_v27  ;;  %1784 = vmax.xlane.f32.xlu0 %v1783_v31 }
 0x596   : > { %v5788_v14 = vpop.xlane.xlu1 %1795 }
 0x597   : > { %vm1797_vm12 = vcmp.eq.f32.partialorder %v5718_v13, %v5788_v14 }
 0x598   : > { %v1653_v23 = vpop.f32.mrf.mxu0  ;;  %v1798_v48 = vsel %vm1797_vm12, %v1793_v52, -inf }
 0x599   : > { %vm3710_vm11 = vcmp.lt.s32.totalorder %v1653_v23, 0  ;;  %v3711_v26 = vceil.f32 %v1653_v23  ;;  %v3712_v10 = vfloor.f32 %v1653_v23  ;;  %1799 = vmax.xlane.f32.xlu1 %v1798_v48 }
 0x59b   : > { %v3713_v33 = vsel %vm3710_vm11, %v3711_v26, %v3712_v10  ;;  %v1727_v26 = vcvt.f32.s32 %v5756_v50  ;;  %v1808_v10 = vcvt.s32.f32 %v1806_v47 }
 0x59c   : > { %v3714_v55 = vcvt.f32.s32 %v3713_v33 }
 0x59d   : > { %v1728_v50 = vshll.u32 %v1727_v26, 16 }
 0x59e   : > { %v5793_v32 = vor.u32 %v3714_v55, %v1678_v24  ;;  %v1757_v24 = vcvt.f32.s32 %v5764_v45 }
 0x5a0   : > { %7851 = vst [vmem:[#allocation48_spill] sm:$0xff] %v5793_v32 }
 0x5ea   : > { %v1710_v63 = vpop.xlane.xlu2 %1709 }
 0x5eb   : > { %v1711_v3 = vcvt.f32.s32 %v1710_v63 }
 0x5ed   : > { %v5796_v31 = vadd.s32 %v1713_v28, %v1711_v3  ;;  %v1758_v3 = vshll.u32 %v1757_v24, 16 }
 0x5ef   : > { %v1828_v23 = vand.u32 127, %v5796_v31  ;;  %vm1820_vm13 = vcmp.eq.s32.totalorder %v5536_v35, %v5796_v31 }
 0x5f0   : > { %v5806_v17 = vsel %vm1820_vm13, 2147483648, %v5536_v35  ;;  %vm5835_vm0 = vmpackc.low %vm1820_vm13, %vm1820_vm13  ;;  %v1742_v35 = vcvt.f32.s32 %v5772_v12 }
 0x5f1   : > { %v1836_v13 = vsub.s32 69, %v1828_v23  ;;  %v5810_v46 = vsel %vm363_vm3, %v5806_v17, 2147483648 }
 0x5f2   : > { %v5813_v6 = vpop.xlane.xlu2 %1810  ;;  %v1955_v52 = vshra.s32 %v5810_v46, 16  ;;  %v1743_v32 = vshll.u32 %v1742_v35, 16 }
 0x5f3   : > { %v5818_v33 = vsel %vm3209_vm14, %v5549_v56, %v1836_v13  ;;  %vm1812_vm15 = vcmp.eq.f32.partialorder %v5753_v44, %v5813_v6 }
 0x5f4   : > { %v1813_v55 = vsel %vm1812_vm15, %v1808_v10, -inf  ;;  %v5823_v48 = vcvt.s32.f32 %v1955_v52  ;;  %v1725_v40 = vpop.xlane.xlu0 %1724  ;;  %v1852_v52 = vsel %vm5835_vm0, %v4420_v7, 0 }
 0x5f5   : > { %1814 = vmax.xlane.f32.xlu2 %v1813_v55  ;;  %v1726_v63 = vcvt.f32.s32 %v1725_v40  ;;  %v1755_v28 = vpop.xlane.xlu1 %1754 }
 0x5f6   : > { %1958 = vmax.xlane.f32.xlu0 %v5823_v48  ;;  %v1756_v47 = vcvt.f32.s32 %v1755_v28 }
 0x5f7   : > { %v5826_v23 = vadd.s32 %v1728_v50, %v1726_v63 }
 0x5f8   : > { %v5828_v56 = vadd.s32 %v1758_v3, %v1756_v47 }
 0x5f9   : > { %7852 = vst [vmem:[#allocation49_spill] sm:$0xff] %v5826_v23  ;;  %v1829_v44 = vand.u32 127, %v5826_v23  ;;  %vm1821_vm1 = vcmp.eq.s32.totalorder %v5571_v41, %v5826_v23 }
 0x5fa   : > { %v5842_v13 = vsel %vm1821_vm1, 2147483648, %v5571_v41  ;;  %v1831_v26 = vand.u32 127, %v5828_v56  ;;  %vm1823_vm2 = vcmp.eq.s32.totalorder %v5585_v36, %v5828_v56  ;;  %vm1845_vm4 = vmpackc.low %vm1821_vm1, %vm1821_vm1 }
 0x5fb   : > { %v1837_v10 = vsub.s32 69, %v1829_v44  ;;  %v5855_v24 = vsel %vm1823_vm2, 2147483648, %v5585_v36  ;;  %v5867_v12 = vsel %vm363_vm3, %v5842_v13, 2147483648  ;;  %v1853_v28 = vsel %vm1845_vm4, %v4445_v1, 0  ;;  %vm5921_vm12 = vmpackc.low %vm1823_vm2, %vm1823_vm2 }
 0x5fc   : > { %v1839_v41 = vsub.s32 69, %v1831_v26  ;;  %v5863_v40 = vsel %vm363_vm3, %v5855_v24, 2147483648  ;;  %v1970_v63 = vshra.s32 %v5867_v12, 16  ;;  %v1869_v47 = vunpack.c.l.b16 %v1853_v28  ;;  %v1740_v45 = vpop.xlane.xlu0 %1739 }
 0x5fd   : > { %v5859_v55 = vsel %vm3209_vm14, %v5589_v11, %v1837_v10  ;;  %v2000_v50 = vshra.s32 %v5863_v40, 16  ;;  %v1868_v11 = vunpack.c.l.b16 %v1852_v52  ;;  %v1772_v44 = vcvt.f32.s32 %v5776_v18 }
 0x5fe   : > { %v5874_v3 = vsel %vm3209_vm14, %v5593_v62, %v1839_v41  ;;  %v5879_v10 = vcvt.s32.f32 %v1970_v63  ;;  %v1741_v37 = vcvt.f32.s32 %v1740_v45  ;;  %v1770_v23 = vpop.xlane.xlu2 %1769  ;;  %v1787_v18 = vcvt.f32.s32 %v5783_v2 }
 0x5ff   : > { %v5877_v26 = vcvt.s32.f32 %v2000_v50  ;;  %v1876_v53 = vpack.c.b16 %v1869_v47, %v1868_v11  ;;  %v1773_v62 = vshll.u32 %v1772_v44, 16  ;;  %v1771_v52 = vcvt.f32.s32 %v1770_v23 }
 0x600   : > { %1973 = vmax.xlane.f32.xlu1 %v5879_v10  ;;  %v5883_v61 = vadd.s32 %v1743_v32, %v1741_v37  ;;  %v1788_v28 = vshll.u32 %v1787_v18, 16 }
 0x601   : > { %2003 = vmax.xlane.f32.xlu0 %v5877_v26  ;;  %3508 = vmatmul.msk.bf16.vlgmr.msrb.gmra.mxu1 %vm363_vm3, %v1876_v53  ;;  %v5890_v35 = vadd.s32 %v1773_v62, %v1771_v52 }
 0x602   : > { %7855 = vst [vmem:[#allocation50_spill] sm:$0xff] %v5883_v61  ;;  %v1830_v41 = vand.u32 127, %v5883_v61  ;;  %vm1822_vm5 = vcmp.eq.s32.totalorder %v5617_v30, %v5883_v61 }
 0x603   : > { %7856 = vst [vmem:[#allocation51_spill] sm:$0xff] %v5890_v35  ;;  %v5893_v50 = vsel %vm1822_vm5, 2147483648, %v5617_v30  ;;  %vm5899_vm7 = vmpackc.low %vm1822_vm5, %vm1822_vm5  ;;  %v1832_v2 = vand.u32 127, %v5890_v35  ;;  %vm1824_vm11 = vcmp.eq.s32.totalorder %v5644_v16, %v5890_v35 }
 0x604   : > { %v1838_v63 = vsub.s32 69, %v1830_v41  ;;  %v5897_v37 = vsel %vm363_vm3, %v5893_v50, 2147483648  ;;  %v1785_v32 = vpop.xlane.xlu0 %1784  ;;  %v5915_v47 = vsel %vm1824_vm11, 2147483648, %v5644_v16  ;;  %v1854_v52 = vsel %vm5899_vm7, %v4510_v57, 0  ;;  %vm1848_vm1 = vmpackc.low %vm1824_vm11, %vm1824_vm11 }
 0x605   : > { %v1985_v23 = vshra.s32 %v5897_v37, 16  ;;  %v1786_v11 = vcvt.f32.s32 %v1785_v32  ;;  %v1840_v45 = vsub.s32 69, %v1832_v2  ;;  %v1802_v41 = vcvt.f32.s32 %v5788_v14 }
 0x606   : > { %v5909_v30 = vsel %vm3209_vm14, %v5637_v59, %v1838_v63  ;;  %v5927_v59 = vsel %vm363_vm3, %v5915_v47, 2147483648  ;;  %v1855_v2 = vsel %vm5921_vm12, %v4525_v58, 0  ;;  %v1817_v16 = vcvt.f32.s32 %v5813_v6 }
 0x607   : > { %v5929_v62 = vcvt.s32.f32 %v1985_v23  ;;  %v5934_v18 = vadd.s32 %v1788_v28, %v1786_v11  ;;  %v2015_v36 = vshra.s32 %v5927_v59, 16  ;;  %v5940_v63 = vsel %vm3209_vm14, %v5651_v9, %v1840_v45 }
 0x608   : > { %v1870_v23 = vunpack.c.l.b16 %v1854_v52  ;;  %v1871_v28 = vunpack.c.l.b16 %v1855_v2  ;;  %v1803_v52 = vshll.u32 %v1802_v41, 16 }
 0x609   : > { %7861 = vst [vmem:[#allocation52_spill] sm:$0xff] %v5934_v18  ;;  %1988 = vmax.xlane.f32.xlu2 %v5929_v62  ;;  %v1833_v32 = vand.u32 127, %v5934_v18  ;;  %v5947_v53 = vcvt.s32.f32 %v2015_v36  ;;  %vm1825_vm13 = vcmp.eq.s32.totalorder %v5673_v51, %v5934_v18  ;;  %v1818_v18 = vshll.u32 %v1817_v16, 16 }
 0x60a   : > { %v5955_v9 = vsel %vm1825_vm13, 2147483648, %v5673_v51  ;;  %v1877_v27 = vpack.c.b16 %v1871_v28, %v1870_v23  ;;  %vm1849_vm0 = vmpackc.low %vm1825_vm13, %vm1825_vm13  ;;  %v1856_v51 = vsel %vm1848_vm1, %v4515_v5, 0 }
 0x60b   : > { %v1841_v14 = vsub.s32 69, %v1833_v32  ;;  %2018 = vmax.xlane.f32.xlu1 %v5947_v53  ;;  %v5960_v11 = vsel %vm363_vm3, %v5955_v9, 2147483648  ;;  %v1857_v28 = vsel %vm1849_vm0, %v4538_v19, 0 }
 0x60c   : > { %v1800_v44 = vpop.xlane.xlu1 %1799  ;;  %v2030_v45 = vshra.s32 %v5960_v11, 16 }
 0x60d   : > { %v5965_v36 = vsel %vm3209_vm14, %v5683_v25, %v1841_v14  ;;  %v1801_v61 = vcvt.f32.s32 %v1800_v44  ;;  %v1873_v44 = vunpack.c.l.b16 %v1857_v28 }
 0x60e   : > { %v5967_v8 = vcvt.s32.f32 %v2030_v45  ;;  %v1872_v45 = vunpack.c.l.b16 %v1856_v51 }
 0x60f   : > { %v5969_v32 = vadd.s32 %v1803_v52, %v1801_v61 }
 0x610   : > { %v1878_v52 = vpack.c.b16 %v1873_v44, %v1872_v45 }
 0x611   : > { %7862 = vst [vmem:[#allocation53_spill] sm:$0xff] %v5969_v32  ;;  %3509 = vmatmul.msk.bf16.gmra.mxu1 %vm363_vm3, %v1877_v27  ;;  %2033 = vmax.xlane.f32.xlu2 %v5967_v8  ;;  %v1834_v2 = vand.u32 127, %v5969_v32  ;;  %vm1826_vm15 = vcmp.eq.s32.totalorder %v5702_v60, %v5969_v32 }
 0x612   : > { %v5980_v25 = vsel %vm1826_vm15, 2147483648, %v5702_v60  ;;  %vm1850_vm4 = vmpackc.low %vm1826_vm15, %vm1826_vm15 }
 0x613   : > { %v1842_v41 = vsub.s32 69, %v1834_v2  ;;  %v5984_v61 = vsel %vm363_vm3, %v5980_v25, 2147483648  ;;  %v1858_v6 = vsel %vm1850_vm4, %v4607_v22, 0 }
 0x614   : > { %v2045_v27 = vshra.s32 %v5984_v61, 16 }
 0x615   : > { %v5993_v23 = vsel %vm3209_vm14, %v5716_v4, %v1842_v41  ;;  %v6005_v4 = vpop.f32.mrf.mxu1  ;;  %v1954_v41 = vand.u32 65535, %v5810_v46 }
 0x616   : > { %v5999_v14 = vcvt.s32.f32 %v2045_v27 }
 0x617   : > { %v1956_v0 = vcvt.s32.f32 %v1954_v41 }
 0x619   : > { %2048 = vmax.xlane.f32.xlu2 %v5999_v14 }
 0x61d   : > { %v6007_v2 = vpop.f32.mrf.mxu1 }
 0x621   : > { %3510 = vmatmul.msk.bf16.gmra.mxu1 %vm363_vm3, %v1878_v52 }
 0x668   : > { %v1815_v27 = vpop.xlane.xlu2 %1814 }
 0x669   : > { %v1816_v35 = vcvt.f32.s32 %v1815_v27  ;;  %v6011_v29 = vpop.xlane.xlu0 %1958 }
 0x66a   : > { %vm1960_vm2 = vcmp.eq.f32.partialorder %v5823_v48, %v6011_v29  ;;  %v6028_v48 = vpop.f32.mrf.mxu1 }
 0x66b   : > { %v6019_v28 = vadd.s32 %v1818_v18, %v1816_v35  ;;  %v1961_v51 = vsel %vm1960_vm2, %v1956_v0, -inf  ;;  %v1874_v35 = vunpack.c.l.b16 %v1858_v6 }
 0x66c   : > { %1962 = vmax.xlane.f32.xlu0 %v1961_v51  ;;  %v1999_v51 = vand.u32 65535, %v5863_v40  ;;  %v1984_v40 = vand.u32 65535, %v5897_v37  ;;  %v2029_v37 = vand.u32 65535, %v5960_v11 }
 0x66d   : > { %7863 = vst [vmem:[#allocation54_spill] sm:$0xff] %v6019_v28  ;;  %vm1827_vm5 = vcmp.eq.s32.totalorder %v5740_v49, %v6019_v28  ;;  %v1835_v46 = vand.u32 127, %v6019_v28 }
 0x66e   : > { %vm1851_vm7 = vmpackc.low %vm1827_vm5, %vm1827_vm5  ;;  %v6026_v44 = vsel %vm1827_vm5, 2147483648, %v5740_v49  ;;  %v1969_v49 = vand.u32 65535, %v5867_v12  ;;  %v2001_v32 = vcvt.s32.f32 %v1999_v51 }
 0x66f   : > { %v1843_v60 = vsub.s32 69, %v1835_v46  ;;  %v1859_v45 = vsel %vm1851_vm7, %v4617_v15, 0  ;;  %v6033_v0 = vsel %vm363_vm3, %v6026_v44, 2147483648  ;;  %vm3218_vm7 = vcmask 48128  }
 0x670   : > { %v1875_v18 = vunpack.c.l.b16 %v1859_v45  ;;  %v2060_v52 = vshra.s32 %v6033_v0, 16  ;;  %v1971_v45 = vcvt.s32.f32 %v1969_v49 }
 0x671   : > { %v6038_v16 = vsel %vm3209_vm14, %v5751_v43, %v1843_v60 }
 0x672   : > { %v1879_v41 = vpack.c.b16 %v1875_v18, %v1874_v35  ;;  %v6041_v27 = vcvt.s32.f32 %v2060_v52  ;;  %v6054_v60 = vpop.f32.mrf.mxu1  ;;  %v2014_v35 = vand.u32 65535, %v5927_v59  ;;  %v1986_v52 = vcvt.s32.f32 %v1984_v40 }
 0x673   : > { %v6046_v46 = vpop.xlane.xlu1 %1973  ;;  %v1929_v59 = vand.u32 4294967168, %v5796_v31 }
 0x674   : > { %3511 = vmatmul.msk.bf16.gmra.mxu1 %vm363_vm3, %v1879_v41  ;;  %2063 = vmax.xlane.f32.xlu0 %v6041_v27  ;;  %v6048_v6 = vpop.xlane.xlu0 %2003  ;;  %vm1975_vm11 = vcmp.eq.f32.partialorder %v5879_v10, %v6046_v46  ;;  %v2016_v51 = vcvt.s32.f32 %v2014_v35 }
 0x675   : > { %vm2005_vm12 = vcmp.eq.f32.partialorder %v5877_v26, %v6048_v6  ;;  %v1976_v43 = vsel %vm1975_vm11, %v1971_v45, -inf }
 0x676   : > { %v2006_v12 = vsel %vm2005_vm12, %v2001_v32, -inf  ;;  %1977 = vmax.xlane.f32.xlu1 %v1976_v43 }
 0x677   : > { %2007 = vmax.xlane.f32.xlu2 %v2006_v12 }
 0x67c   : > { %v6058_v18 = vpop.xlane.xlu2 %1988 }
 0x67d   : > { %vm1990_vm13 = vcmp.eq.f32.partialorder %v5929_v62, %v6058_v18 }
 0x67e   : > { %v1901_v49 = vpop.f32.mrf.mxu1  ;;  %v1991_v41 = vsel %vm1990_vm13, %v1986_v52, -inf  ;;  %v6062_v32 = vpop.xlane.xlu1 %2018  ;;  %v2031_v52 = vcvt.s32.f32 %v2029_v37 }
 0x67f   : > { %vm3740_vm15 = vcmp.lt.s32.totalorder %v1901_v49, 0  ;;  %v3741_v10 = vceil.f32 %v1901_v49  ;;  %v3742_v26 = vfloor.f32 %v1901_v49  ;;  %1992 = vmax.xlane.f32.xlu1 %v1991_v41  ;;  %vm2020_vm0 = vcmp.eq.f32.partialorder %v5947_v53, %v6062_v32 }
 0x680   : > { %v2021_v12 = vsel %vm2020_vm0, %v2016_v51, -inf  ;;  %v2044_v53 = vand.u32 65535, %v5984_v61  ;;  %v1965_v61 = vcvt.f32.s32 %v6011_v29 }
 0x681   : > { %v3743_v45 = vsel %vm3740_vm15, %v3741_v10, %v3742_v26  ;;  %2022 = vmax.xlane.f32.xlu0 %v2021_v12 }
 0x682   : > { %v3744_v43 = vcvt.f32.s32 %v3743_v45  ;;  %v2046_v31 = vcvt.s32.f32 %v2044_v53 }
 0x684   : > { %v6068_v62 = vor.u32 %v3744_v43, %v1929_v59  ;;  %v6070_v40 = vpop.xlane.xlu2 %2033 }
 0x685   : > { %vm2035_vm1 = vcmp.eq.f32.partialorder %v5967_v8, %v6070_v40  ;;  %v1932_v8 = vand.u32 4294967168, %v5828_v56  ;;  %v2040_v28 = vcvt.f32.s32 %v6070_v40 }
 0x686   : > { %7864 = vst [vmem:[#allocation55_spill] sm:$0xff] %v6068_v62  ;;  %v6072_v49 = vpop.f32.mrf.mxu1  ;;  %v2036_v35 = vsel %vm2035_vm1, %v2031_v52, -inf  ;;  %v1966_v52 = vshll.u32 %v1965_v61, 16 }
 0x687   : > { %7865 = vst [vmem:[#allocation56_spill] sm:$0xff] %v6072_v49  ;;  %2037 = vmax.xlane.f32.xlu1 %v2036_v35 }
 0x68c   : > { %v6077_v11 = vpop.xlane.xlu2 %2048 }
 0x68d   : > { %vm2050_vm2 = vcmp.eq.f32.partialorder %v5999_v14, %v6077_v11  ;;  %v2059_v14 = vand.u32 65535, %v6033_v0 }
 0x68e   : > { %v6079_v10 = vpop.f32.mrf.mxu1  ;;  %v2051_v26 = vsel %vm2050_vm2, %v2046_v31, -inf }
 0x68f   : > { %7866 = vst [vmem:[#allocation57_spill] sm:$0xff] %v6079_v10  ;;  %2052 = vmax.xlane.f32.xlu2 %v2051_v26  ;;  %v2061_v0 = vcvt.s32.f32 %v2059_v14 }
 0x696   : > { %v1908_v41 = vpop.f32.mrf.mxu1 }
 0x697   : > { %vm3755_vm4 = vcmp.lt.s32.totalorder %v1908_v41, 0  ;;  %v3756_v51 = vceil.f32 %v1908_v41  ;;  %v3757_v45 = vfloor.f32 %v1908_v41 }
 0x699   : > { %v3758_v37 = vsel %vm3755_vm4, %v3756_v51, %v3757_v45 }
 0x69a   : > { %v3759_v59 = vcvt.f32.s32 %v3758_v37  ;;  %v1980_v37 = vcvt.f32.s32 %v6046_v46 }
 0x69c   : > { %v6084_v43 = vor.u32 %v3759_v59, %v1932_v8  ;;  %v2010_v8 = vcvt.f32.s32 %v6048_v6 }
 0x69e   : > { %7867 = vst [vmem:[#allocation58_spill] sm:$0xff] %v6084_v43  ;;  %v2011_v14 = vshll.u32 %v2010_v8, 16 }
 0x6df   : > { %v1963_v12 = vpop.xlane.xlu0 %1962 }
 0x6e0   : > { %v1964_v35 = vcvt.f32.s32 %v1963_v12 }
 0x6e2   : > { %v6087_v53 = vadd.s32 %v1966_v52, %v1964_v35  ;;  %v1981_v35 = vshll.u32 %v1980_v37, 16 }
 0x6e4   : > { %7868 = vst [vmem:[#allocation59_spill] sm:$0xff] %v6087_v53  ;;  %v2081_v31 = vand.u32 127, %v6087_v53  ;;  %vm2073_vm5 = vcmp.eq.s32.totalorder %v5806_v17, %v6087_v53 }
 0x6e5   : > { %v6097_v56 = vsel %vm2073_vm5, 2147483648, %v5806_v17  ;;  %vm6125_vm12 = vmpackc.low %vm2073_vm5, %vm2073_vm5 }
 0x6e6   : > { %v2089_v29 = vsub.s32 69, %v2081_v31  ;;  %v6101_v26 = vsel %vm363_vm3, %v6097_v56, 2147483648 }
 0x6e7   : > { %v6103_v41 = vpop.xlane.xlu0 %2063  ;;  %v2208_v51 = vshra.s32 %v6101_v26, 16 }
 0x6e8   : > { %v6108_v45 = vsel %vm3218_vm7, %v5818_v33, %v2089_v29  ;;  %vm2065_vm11 = vcmp.eq.f32.partialorder %v6041_v27, %v6103_v41 }
 0x6e9   : > { %v2066_v59 = vsel %vm2065_vm11, %v2061_v0, -inf  ;;  %v6114_v61 = vcvt.s32.f32 %v2208_v51  ;;  %v1978_v12 = vpop.xlane.xlu1 %1977  ;;  %v1995_v0 = vcvt.f32.s32 %v6058_v18  ;;  %v2105_v51 = vsel %vm6125_vm12, %v4420_v7, 0 }
 0x6ea   : > { %2067 = vmax.xlane.f32.xlu0 %v2066_v59  ;;  %v2008_v52 = vpop.xlane.xlu2 %2007  ;;  %v1979_v31 = vcvt.f32.s32 %v1978_v12 }
 0x6eb   : > { %2211 = vmax.xlane.f32.xlu1 %v6114_v61  ;;  %v2009_v33 = vcvt.f32.s32 %v2008_v52 }
 0x6ec   : > { %v6117_v29 = vadd.s32 %v1981_v35, %v1979_v31  ;;  %v2121_v35 = vunpack.c.l.b16 %v2105_v51  ;;  %v2025_v31 = vcvt.f32.s32 %v6062_v32 }
 0x6ed   : > { %v6119_v43 = vadd.s32 %v2011_v14, %v2009_v33 }
 0x6ee   : > { %v2082_v46 = vand.u32 127, %v6117_v29  ;;  %vm2074_vm13 = vcmp.eq.s32.totalorder %v5842_v13, %v6117_v29  ;;  %v2026_v32 = vshll.u32 %v2025_v31, 16 }
 0x6ef   : > { %7869 = vst [vmem:[#allocation60_spill] sm:$0xff] %v6119_v43  ;;  %v2084_v6 = vand.u32 127, %v6119_v43  ;;  %vm2098_vm15 = vmpackc.low %vm2074_vm13, %vm2074_vm13  ;;  %v6138_v8 = vsel %vm2074_vm13, 2147483648, %v5842_v13  ;;  %vm2076_vm0 = vcmp.eq.s32.totalorder %v5855_v24, %v6119_v43 }
 0x6f0   : > { %v2090_v37 = vsub.s32 69, %v2082_v46  ;;  %v2106_v59 = vsel %vm2098_vm15, %v4445_v1, 0  ;;  %v6145_v18 = vsel %vm363_vm3, %v6138_v8, 2147483648  ;;  %v6151_v12 = vsel %vm2076_vm0, 2147483648, %v5855_v24  ;;  %vm6212_vm5 = vmpackc.low %vm2076_vm0, %vm2076_vm0 }
 0x6f1   : > { %v2092_v17 = vsub.s32 69, %v2084_v6  ;;  %v2122_v14 = vunpack.c.l.b16 %v2106_v59  ;;  %v2223_v27 = vshra.s32 %v6145_v18, 16  ;;  %v6165_v46 = vsel %vm363_vm3, %v6151_v12, 2147483648 }
 0x6f2   : > { %v6155_v52 = vsel %vm3218_vm7, %v5859_v55, %v2090_v37  ;;  %v1993_v33 = vpop.xlane.xlu1 %1992  ;;  %v1996_v6 = vshll.u32 %v1995_v0, 16  ;;  %v2253_v55 = vshra.s32 %v6165_v46, 16 }
 0x6f3   : > { %v6159_v13 = vsel %vm3218_vm7, %v5874_v3, %v2092_v17  ;;  %v1994_v62 = vcvt.f32.s32 %v1993_v33  ;;  %v2129_v53 = vpack.c.b16 %v2122_v14, %v2121_v35  ;;  %v6168_v37 = vcvt.s32.f32 %v2223_v27 }
 0x6f4   : > { %v2023_v51 = vpop.xlane.xlu0 %2022  ;;  %v6172_v17 = vcvt.s32.f32 %v2253_v55 }
 0x6f5   : > { %v6170_v3 = vadd.s32 %v1996_v6, %v1994_v62  ;;  %3512 = vmatmul.msk.bf16.vlgmr.msra.gmra.mxu2 %vm363_vm3, %v2129_v53  ;;  %v2024_v59 = vcvt.f32.s32 %v2023_v51  ;;  %2226 = vmax.xlane.f32.xlu2 %v6168_v37  ;;  %v2041_v6 = vshll.u32 %v2040_v28, 16 }
 0x6f6   : > { %2256 = vmax.xlane.f32.xlu1 %v6172_v17 }
 0x6f7   : > { %7872 = vst [vmem:[#allocation61_spill] sm:$0xff] %v6170_v3  ;;  %v2083_v0 = vand.u32 127, %v6170_v3  ;;  %vm2075_vm1 = vcmp.eq.s32.totalorder %v5893_v50, %v6170_v3  ;;  %v6181_v62 = vadd.s32 %v2026_v32, %v2024_v59 }
 0x6f8   : > { %v6184_v35 = vsel %vm2075_vm1, 2147483648, %v5893_v50  ;;  %vm6190_vm2 = vmpackc.low %vm2075_vm1, %vm2075_vm1 }
 0x6f9   : > { %7873 = vst [vmem:[#allocation62_spill] sm:$0xff] %v6181_v62  ;;  %v2091_v14 = vsub.s32 69, %v2083_v0  ;;  %v6188_v53 = vsel %vm363_vm3, %v6184_v35, 2147483648  ;;  %v2085_v40 = vand.u32 127, %v6181_v62  ;;  %vm2077_vm4 = vcmp.eq.s32.totalorder %v5915_v47, %v6181_v62 }
 0x6fa   : > { %v2038_v33 = vpop.xlane.xlu1 %2037  ;;  %v2238_v27 = vshra.s32 %v6188_v53, 16  ;;  %v6206_v51 = vsel %vm2077_vm4, 2147483648, %v5915_v47  ;;  %v2107_v0 = vsel %vm6190_vm2, %v4510_v57, 0  ;;  %vm2101_vm15 = vmpackc.low %vm2077_vm4, %vm2077_vm4 }
 0x6fb   : > { %v6200_v50 = vsel %vm3218_vm7, %v5909_v30, %v2091_v14  ;;  %v2039_v55 = vcvt.f32.s32 %v2038_v33  ;;  %v2093_v28 = vsub.s32 69, %v2085_v40  ;;  %v6220_v30 = vsel %vm363_vm3, %v6206_v51, 2147483648 }
 0x6fc   : > { %v6216_v59 = vcvt.s32.f32 %v2238_v27  ;;  %v2268_v24 = vshra.s32 %v6220_v30, 16  ;;  %v2055_v33 = vcvt.f32.s32 %v6077_v11  ;;  %v2108_v40 = vsel %vm6212_vm5, %v4525_v58, 0 }
 0x6fd   : > { %v6225_v14 = vadd.s32 %v2041_v6, %v2039_v55  ;;  %v6231_v43 = vsel %vm3218_vm7, %v5940_v63, %v2093_v28  ;;  %v2123_v6 = vunpack.c.l.b16 %v2107_v0  ;;  %v2124_v55 = vunpack.c.l.b16 %v2108_v40 }
 0x6fe   : > { %2241 = vmax.xlane.f32.xlu0 %v6216_v59  ;;  %v6238_v31 = vcvt.s32.f32 %v2268_v24  ;;  %v2056_v24 = vshll.u32 %v2055_v33, 16 }
 0x6ff   : > { %7878 = vst [vmem:[#allocation63_spill] sm:$0xff] %v6225_v14  ;;  %v2086_v27 = vand.u32 127, %v6225_v14  ;;  %vm2078_vm11 = vcmp.eq.s32.totalorder %v5955_v9, %v6225_v14  ;;  %v2130_v49 = vpack.c.b16 %v2124_v55, %v2123_v6  ;;  %v2070_v14 = vcvt.f32.s32 %v6103_v41 }
 0x700   : > { %v6246_v63 = vsel %vm2078_vm11, 2147483648, %v5955_v9  ;;  %2271 = vmax.xlane.f32.xlu2 %v6238_v31  ;;  %vm2102_vm13 = vmpackc.low %vm2078_vm11, %vm2078_vm11  ;;  %v2109_v9 = vsel %vm2101_vm15, %v4515_v5, 0 }
 0x701   : > { %v2094_v11 = vsub.s32 69, %v2086_v27  ;;  %v6251_v32 = vsel %vm363_vm3, %v6246_v63, 2147483648  ;;  %v2110_v55 = vsel %vm2102_vm13, %v4538_v19, 0 }
 0x702   : > { %v2053_v28 = vpop.xlane.xlu2 %2052  ;;  %v2283_v0 = vshra.s32 %v6251_v32, 16 }
 0x703   : > { %v6256_v3 = vsel %vm3218_vm7, %v5965_v36, %v2094_v11  ;;  %v2054_v10 = vcvt.f32.s32 %v2053_v28  ;;  %v2126_v28 = vunpack.c.l.b16 %v2110_v55  ;;  %v2207_v55 = vand.u32 65535, %v6101_v26 }
 0x704   : > { %v6258_v20 = vcvt.s32.f32 %v2283_v0  ;;  %v2125_v0 = vunpack.c.l.b16 %v2109_v9 }
 0x705   : > { %v6260_v27 = vadd.s32 %v2056_v24, %v2054_v10  ;;  %3513 = vmatmul.msk.bf16.gmra.mxu2 %vm363_vm3, %v2130_v49 }
 0x706   : > { %2286 = vmax.xlane.f32.xlu0 %v6258_v20  ;;  %v2131_v24 = vpack.c.b16 %v2126_v28, %v2125_v0  ;;  %v2071_v28 = vshll.u32 %v2070_v14, 16 }
 0x707   : > { %7879 = vst [vmem:[#allocation64_spill] sm:$0xff] %v6260_v27  ;;  %v2087_v40 = vand.u32 127, %v6260_v27  ;;  %vm2079_vm12 = vcmp.eq.s32.totalorder %v5980_v25, %v6260_v27  ;;  %v2222_v27 = vand.u32 65535, %v6145_v18 }
 0x708   : > { %v6271_v36 = vsel %vm2079_vm12, 2147483648, %v5980_v25  ;;  %vm2103_vm1 = vmpackc.low %vm2079_vm12, %vm2079_vm12 }
 0x709   : > { %v2095_v33 = vsub.s32 69, %v2087_v40  ;;  %v6275_v10 = vsel %vm363_vm3, %v6271_v36, 2147483648  ;;  %v2111_v14 = vsel %vm2103_vm1, %v4607_v22, 0 }
 0x70a   : > { %v2298_v49 = vshra.s32 %v6275_v10, 16 }
 0x70b   : > { %v6284_v6 = vsel %vm3218_vm7, %v5993_v23, %v2095_v33  ;;  %v6296_v23 = vpop.f32.mrf.mxu2 }
 0x70c   : > { %v6290_v11 = vcvt.s32.f32 %v2298_v49  ;;  %7880 = vst [vmem:[#allocation65_spill] sm:$0xff] %v6296_v23  ;;  %v2209_v23 = vcvt.s32.f32 %v2207_v55 }
 0x70e   : > { %2301 = vmax.xlane.f32.xlu0 %v6290_v11 }
 0x713   : > { %v6298_v40 = vpop.f32.mrf.mxu2 }
 0x714   : > { %7881 = vst [vmem:[#allocation66_spill] sm:$0xff] %v6298_v40 }
 0x715   : > { %3514 = vmatmul.msk.bf16.gmra.mxu2 %vm363_vm3, %v2131_v24 }
 0x71b   : > { %v6300_v47 = vpop.f32.mrf.mxu2 }
 0x71c   : > { %7882 = vst [vmem:[#allocation67_spill] sm:$0xff] %v6300_v47 }
 0x723   : > { %v6302_v33 = vpop.f32.mrf.mxu2 }
 0x724   : > { %7883 = vst [vmem:[#allocation68_spill] sm:$0xff] %v6302_v33 }
 0x72b   : > { %v6304_v49 = vpop.f32.mrf.mxu2 }
 0x72c   : > { %7884 = vst [vmem:[#allocation69_spill] sm:$0xff] %v6304_v49 }
 0x733   : > { %v6306_v62 = vpop.f32.mrf.mxu2 }
 0x734   : > { %7885 = vst [vmem:[#allocation70_spill] sm:$0xff] %v6306_v62 }
 0x73b   : > { %v6320_v41 = vpop.f32.mrf.mxu2 }
 0x73c   : > { %7887 = vst [vmem:[#allocation72_spill] sm:$0xff] %v6320_v41  ;;  %v2252_v41 = vand.u32 65535, %v6165_v46  ;;  %v2267_v46 = vand.u32 65535, %v6220_v30 }
 0x75d   : > { %v2068_v9 = vpop.xlane.xlu0 %2067 }
 0x75e   : > { %v2069_v0 = vcvt.f32.s32 %v2068_v9  ;;  %v6310_v24 = vpop.xlane.xlu1 %2211  ;;  %v2127_v9 = vunpack.c.l.b16 %v2111_v14  ;;  %v2224_v14 = vcvt.s32.f32 %v2222_v27 }
 0x75f   : > { %vm2213_vm0 = vcmp.eq.f32.partialorder %v6114_v61, %v6310_v24 }
 0x760   : > { %v6318_v33 = vadd.s32 %v2071_v28, %v2069_v0  ;;  %v2214_v62 = vsel %vm2213_vm0, %v2209_v23, -inf }
 0x761   : > { %2215 = vmax.xlane.f32.xlu1 %v2214_v62 }
 0x762   : > { %7886 = vst [vmem:[#allocation71_spill] sm:$0xff] %v6318_v33  ;;  %v2088_v26 = vand.u32 127, %v6318_v33  ;;  %vm2080_vm2 = vcmp.eq.s32.totalorder %v6026_v44, %v6318_v33 }
 0x763   : > { %v6327_v61 = vsel %vm2080_vm2, 2147483648, %v6026_v44  ;;  %vm2104_vm4 = vmpackc.low %vm2080_vm2, %vm2080_vm2 }
 0x764   : > { %v2096_v25 = vsub.s32 69, %v2088_v26  ;;  %v6331_v55 = vsel %vm363_vm3, %v6327_v61, 2147483648  ;;  %v2112_v62 = vsel %vm2104_vm4, %v4617_v15, 0  ;;  %v6344_v26 = vpop.f32.mrf.mxu2  ;;  %vm3227_vm4 = vcmask 56320  }
 0x765   : > { %v2313_v23 = vshra.s32 %v6331_v55, 16  ;;  %v2128_v28 = vunpack.c.l.b16 %v2112_v62  ;;  %7888 = vst [vmem:[#allocation73_spill] sm:$0xff] %v6344_v26 }
 0x766   : > { %v6337_v0 = vsel %vm3218_vm7, %v6038_v16, %v2096_v25  ;;  %v2254_v16 = vcvt.s32.f32 %v2252_v41 }
 0x767   : > { %v6339_v33 = vcvt.s32.f32 %v2313_v23  ;;  %v2132_v44 = vpack.c.b16 %v2128_v28, %v2127_v9  ;;  %v2237_v23 = vand.u32 65535, %v6188_v53  ;;  %v2282_v53 = vand.u32 65535, %v6251_v32 }
 0x768   : > { %v6347_v49 = vpop.xlane.xlu2 %2226 }
 0x769   : > { %2316 = vmax.xlane.f32.xlu1 %v6339_v33  ;;  %3515 = vmatmul.msk.bf16.gmra.mxu2 %vm363_vm3, %v2132_v44  ;;  %v6349_v62 = vpop.xlane.xlu1 %2256  ;;  %vm2228_vm5 = vcmp.eq.f32.partialorder %v6168_v37, %v6347_v49  ;;  %v2239_v28 = vcvt.s32.f32 %v2237_v23 }
 0x76a   : > { %vm2258_vm11 = vcmp.eq.f32.partialorder %v6172_v17, %v6349_v62  ;;  %v2229_v18 = vsel %vm2228_vm5, %v2224_v14, -inf  ;;  %v2269_v17 = vcvt.s32.f32 %v2267_v46 }
 0x76b   : > { %v2259_v25 = vsel %vm2258_vm11, %v2254_v16, -inf  ;;  %2230 = vmax.xlane.f32.xlu2 %v2229_v18  ;;  %v2284_v16 = vcvt.s32.f32 %v2282_v53  ;;  %v2297_v18 = vand.u32 65535, %v6275_v10  ;;  %v2218_v10 = vcvt.f32.s32 %v6310_v24 }
 0x76c   : > { %2260 = vmax.xlane.f32.xlu0 %v2259_v25  ;;  %v6356_v9 = vpop.f32.mrf.mxu2 }
 0x76d   : > { %7889 = vst [vmem:[#allocation74_spill] sm:$0xff] %v6356_v9  ;;  %v2299_v32 = vcvt.s32.f32 %v2297_v18  ;;  %v2312_v18 = vand.u32 65535, %v6331_v55 }
 0x76f   : > { %v2314_v55 = vcvt.s32.f32 %v2312_v18 }
 0x771   : > { %v6359_v27 = vpop.xlane.xlu0 %2241 }
 0x772   : > { %vm2243_vm12 = vcmp.eq.f32.partialorder %v6216_v59, %v6359_v27 }
 0x773   : > { %v2244_v37 = vsel %vm2243_vm12, %v2239_v28, -inf  ;;  %v6363_v41 = vpop.xlane.xlu2 %2271 }
 0x774   : > { %2245 = vmax.xlane.f32.xlu2 %v2244_v37  ;;  %vm2273_vm13 = vcmp.eq.f32.partialorder %v6238_v31, %v6363_v41 }
 0x775   : > { %v2274_v44 = vsel %vm2273_vm13, %v2269_v17, -inf  ;;  %v2183_v17 = vand.u32 4294967168, %v6117_v29 }
 0x776   : > { %2275 = vmax.xlane.f32.xlu1 %v2274_v44 }
 0x778   : > { %v6368_v14 = vpop.f32.mrf.mxu2 }
 0x779   : > { %7890 = vst [vmem:[#allocation75_spill] sm:$0xff] %v6368_v14  ;;  %v6370_v30 = vpop.xlane.xlu0 %2286 }
 0x77a   : > { %vm2288_vm15 = vcmp.eq.f32.partialorder %v6258_v20, %v6370_v30 }
 0x77b   : > { %v2289_v59 = vsel %vm2288_vm15, %v2284_v16, -inf  ;;  %v2219_v16 = vshll.u32 %v2218_v10, 16 }
 0x77c   : > { %2290 = vmax.xlane.f32.xlu2 %v2289_v59 }
 0x780   : > { %v2156_v25 = vpop.f32.mrf.mxu2 }
 0x781   : > { %vm3785_vm0 = vcmp.lt.s32.totalorder %v2156_v25, 0  ;;  %v3786_v23 = vceil.f32 %v2156_v25  ;;  %v3787_v31 = vfloor.f32 %v2156_v25  ;;  %v6375_v46 = vpop.xlane.xlu0 %2301 }
 0x782   : > { %vm2303_vm1 = vcmp.eq.f32.partialorder %v6290_v11, %v6375_v46 }
 0x783   : > { %v3788_v28 = vsel %vm3785_vm0, %v3786_v23, %v3787_v31  ;;  %v2304_v37 = vsel %vm2303_vm1, %v2299_v32, -inf }
 0x784   : > { %v3789_v53 = vcvt.f32.s32 %v3788_v28  ;;  %2305 = vmax.xlane.f32.xlu0 %v2304_v37 }
 0x786   : > { %v6380_v20 = vor.u32 %v3789_v53, %v2183_v17  ;;  %v2263_v17 = vcvt.f32.s32 %v6349_v62  ;;  %v2248_v62 = vcvt.f32.s32 %v6359_v27 }
 0x788   : > { %7891 = vst [vmem:[#allocation76_spill] sm:$0xff] %v6380_v20 }
 0x7d4   : > { %v2216_v44 = vpop.xlane.xlu1 %2215 }
 0x7d5   : > { %v2217_v59 = vcvt.f32.s32 %v2216_v44 }
 0x7d7   : > { %v6383_v25 = vadd.s32 %v2219_v16, %v2217_v59 }
 0x7d9   : > { %7892 = vst [vmem:[#allocation77_spill] sm:$0xff] %v6383_v25  ;;  %v2334_v14 = vand.u32 127, %v6383_v25  ;;  %vm2326_vm2 = vcmp.eq.s32.totalorder %v6097_v56, %v6383_v25 }
 0x7da   : > { %v6393_v29 = vsel %vm2326_vm2, 2147483648, %v6097_v56  ;;  %vm2350_vm11 = vmpackc.low %vm2326_vm2, %vm2326_vm2 }
 0x7db   : > { %v2342_v11 = vsub.s32 69, %v2334_v14  ;;  %v6397_v24 = vsel %vm363_vm3, %v6393_v29, 2147483648  ;;  %v2233_v14 = vcvt.f32.s32 %v6347_v49  ;;  %v2358_v18 = vsel %vm2350_vm11, %v4420_v7, 0 }
 0x7dc   : > { %v6399_v23 = vpop.xlane.xlu1 %2316  ;;  %v2461_v31 = vshra.s32 %v6397_v24, 16 }
 0x7dd   : > { %v6404_v32 = vsel %vm3227_vm4, %v6108_v45, %v2342_v11  ;;  %vm2318_vm5 = vcmp.eq.f32.partialorder %v6339_v33, %v6399_v23  ;;  %v2234_v45 = vshll.u32 %v2233_v14, 16  ;;  %v2264_v33 = vshll.u32 %v2263_v17, 16 }
 0x7de   : > { %v2319_v28 = vsel %vm2318_vm5, %v2314_v55, -inf  ;;  %v6408_v37 = vcvt.s32.f32 %v2461_v31  ;;  %v2231_v53 = vpop.xlane.xlu2 %2230  ;;  %v2278_v11 = vcvt.f32.s32 %v6363_v41  ;;  %v2374_v31 = vunpack.c.l.b16 %v2358_v18 }
 0x7df   : > { %2320 = vmax.xlane.f32.xlu1 %v2319_v28  ;;  %v2232_v10 = vcvt.f32.s32 %v2231_v53  ;;  %v2261_v44 = vpop.xlane.xlu0 %2260 }
 0x7e0   : > { %2464 = vmax.xlane.f32.xlu2 %v6408_v37  ;;  %v2262_v16 = vcvt.f32.s32 %v2261_v44 }
 0x7e1   : > { %v6417_v59 = vadd.s32 %v2234_v45, %v2232_v10 }
 0x7e2   : > { %v6420_v49 = vadd.s32 %v2264_v33, %v2262_v16  ;;  %v2249_v33 = vshll.u32 %v2248_v62, 16  ;;  %v2279_v62 = vshll.u32 %v2278_v11, 16 }
 0x7e3   : > { %7893 = vst [vmem:[#allocation78_spill] sm:$0xff] %v6417_v59  ;;  %vm2327_vm12 = vcmp.eq.s32.totalorder %v6138_v8, %v6417_v59  ;;  %v2335_v56 = vand.u32 127, %v6417_v59 }
 0x7e4   : > { %7894 = vst [vmem:[#allocation79_spill] sm:$0xff] %v6420_v49  ;;  %vm2351_vm13 = vmpackc.low %vm2327_vm12, %vm2327_vm12  ;;  %v2337_v55 = vand.u32 127, %v6420_v49  ;;  %v6429_v28 = vsel %vm2327_vm12, 2147483648, %v6138_v8  ;;  %vm2329_vm15 = vcmp.eq.s32.totalorder %v6151_v12, %v6420_v49  ;;  %vm3585_vm12 = vcmp.lt.s32.totalorder %v6007_v2, 0 }
 0x7e5   : > { %v2343_v14 = vsub.s32 69, %v2335_v56  ;;  %v2359_v41 = vsel %vm2351_vm13, %v4445_v1, 0  ;;  %v6436_v27 = vsel %vm363_vm3, %v6429_v28, 2147483648  ;;  %v6442_v17 = vsel %vm2329_vm15, 2147483648, %v6151_v12  ;;  %vm6508_vm5 = vmpackc.low %vm2329_vm15, %vm2329_vm15 }
 0x7e6   : > { %v2375_v53 = vunpack.c.l.b16 %v2359_v41  ;;  %v2345_v45 = vsub.s32 69, %v2337_v55  ;;  %v2476_v10 = vshra.s32 %v6436_v27, 16  ;;  %v6447_v44 = vsel %vm363_vm3, %v6442_v17, 2147483648 }
 0x7e7   : > { %v2246_v8 = vpop.xlane.xlu2 %2245  ;;  %v6451_v16 = vsel %vm3227_vm4, %v6155_v52, %v2343_v14  ;;  %v2506_v56 = vshra.s32 %v6447_v44, 16  ;;  %v2293_v52 = vcvt.f32.s32 %v6370_v30  ;;  %v2308_v12 = vcvt.f32.s32 %v6375_v46 }
 0x7e8   : > { %v2247_v18 = vcvt.f32.s32 %v2246_v8  ;;  %v6456_v20 = vsel %vm3227_vm4, %v6159_v13, %v2345_v45  ;;  %v2382_v55 = vpack.c.b16 %v2375_v53, %v2374_v31  ;;  %v6458_v41 = vcvt.s32.f32 %v2476_v10 }
 0x7e9   : > { %v2276_v59 = vpop.xlane.xlu1 %2275  ;;  %v6462_v26 = vcvt.s32.f32 %v2506_v56  ;;  %vm3590_vm15 = vcmp.lt.s32.totalorder %v6028_v48, 0 }
 0x7ea   : > { %v6460_v25 = vadd.s32 %v2249_v33, %v2247_v18  ;;  %v2277_v9 = vcvt.f32.s32 %v2276_v59  ;;  %3516 = vmatmul.msk.bf16.vlgmr.msra.gmra.mxu3 %vm363_vm3, %v2382_v55  ;;  %2479 = vmax.xlane.f32.xlu0 %v6458_v41 }
 0x7eb   : > { %2509 = vmax.xlane.f32.xlu2 %v6462_v26 }
 0x7ec   : > { %v2336_v14 = vand.u32 127, %v6460_v25  ;;  %vm2328_vm0 = vcmp.eq.s32.totalorder %v6184_v35, %v6460_v25  ;;  %v6471_v13 = vadd.s32 %v2279_v62, %v2277_v9  ;;  %v2294_v9 = vshll.u32 %v2293_v52, 16 }
 0x7ed   : > { %v6474_v31 = vsel %vm2328_vm0, 2147483648, %v6184_v35  ;;  %vm6484_vm2 = vmpackc.low %vm2328_vm0, %vm2328_vm0 }
 0x7ee   : > { %7895 = vst [vmem:[#allocation80_spill] sm:$0xff] %v6471_v13  ;;  %v2344_v11 = vsub.s32 69, %v2336_v14  ;;  %v6478_v59 = vsel %vm363_vm3, %v6474_v31, 2147483648  ;;  %v2338_v53 = vand.u32 127, %v6471_v13  ;;  %vm2330_vm1 = vcmp.eq.s32.totalorder %v6206_v51, %v6471_v13 }
 0x7ef   : > { %v2291_v30 = vpop.xlane.xlu2 %2290  ;;  %v2491_v45 = vshra.s32 %v6478_v59, 16  ;;  %v6496_v33 = vsel %vm2330_vm1, 2147483648, %v6206_v51  ;;  %v2360_v14 = vsel %vm6484_vm2, %v4510_v57, 0  ;;  %vm3595_vm2 = vcmp.lt.s32.totalorder %v6054_v60, 0 }
 0x7f0   : > { %v6490_v35 = vsel %vm3227_vm4, %v6200_v50, %v2344_v11  ;;  %v2292_v10 = vcvt.f32.s32 %v2291_v30  ;;  %v2346_v18 = vsub.s32 69, %v2338_v53  ;;  %v6502_v55 = vsel %vm363_vm3, %v6496_v33, 2147483648 }
 0x7f1   : > { %v6498_v56 = vcvt.s32.f32 %v2491_v45  ;;  %v2521_v52 = vshra.s32 %v6502_v55, 16  ;;  %v2361_v45 = vsel %vm6508_vm5, %v4525_v58, 0  ;;  %v2376_v8 = vunpack.c.l.b16 %v2360_v14  ;;  %vm2354_vm5 = vmpackc.low %vm2330_vm1, %vm2330_vm1 }
 0x7f2   : > { %v6512_v62 = vadd.s32 %v2294_v9, %v2292_v10  ;;  %v6520_v11 = vsel %vm3227_vm4, %v6231_v43, %v2346_v18  ;;  %v3586_v9 = vceil.f32 %v6007_v2  ;;  %v3587_v10 = vfloor.f32 %v6007_v2 }
 0x7f3   : > { %2494 = vmax.xlane.f32.xlu1 %v6498_v56  ;;  %v6525_v30 = vcvt.s32.f32 %v2521_v52  ;;  %v2377_v52 = vunpack.c.l.b16 %v2361_v45  ;;  %v2309_v14 = vshll.u32 %v2308_v12, 16  ;;  %v3592_v12 = vfloor.f32 %v6028_v48 }
 0x7f4   : > { %7900 = vst [vmem:[#allocation81_spill] sm:$0xff] %v6512_v62  ;;  %v2339_v53 = vand.u32 127, %v6512_v62  ;;  %vm2331_vm11 = vcmp.eq.s32.totalorder %v6246_v63, %v6512_v62  ;;  %v3588_v57 = vsel %vm3585_vm12, %v3586_v9, %v3587_v10  ;;  %vm3580_vm1 = vcmp.lt.s32.totalorder %v6005_v4, 0 }
 0x7f5   : > { %2524 = vmax.xlane.f32.xlu0 %v6525_v30  ;;  %v6538_v46 = vsel %vm2331_vm11, 2147483648, %v6246_v63  ;;  %v2383_v47 = vpack.c.b16 %v2377_v52, %v2376_v8  ;;  %v3596_v8 = vceil.f32 %v6054_v60  ;;  %vm2355_vm0 = vmpackc.low %vm2331_vm11, %vm2331_vm11 }
 0x7f6   : > { %v2347_v43 = vsub.s32 69, %v2339_v53  ;;  %v6544_v50 = vsel %vm363_vm3, %v6538_v46, 2147483648  ;;  %v2363_v63 = vsel %vm2355_vm0, %v4538_v19, 0 }
 0x7f7   : > { %v2306_v18 = vpop.xlane.xlu0 %2305  ;;  %v2536_v40 = vshra.s32 %v6544_v50, 16 }
 0x7f8   : > { %v6548_v53 = vsel %vm3227_vm4, %v6256_v3, %v2347_v43  ;;  %v2307_v49 = vcvt.f32.s32 %v2306_v18  ;;  %v3591_v3 = vceil.f32 %v6028_v48  ;;  %v3597_v43 = vfloor.f32 %v6054_v60 }
 0x7f9   : > { %v6553_v58 = vcvt.s32.f32 %v2536_v40  ;;  %v918_v48 = vand.u32 4294967168, %v4723_v38  ;;  %v2362_v38 = vsel %vm2354_vm5, %v4515_v5, 0 }
 0x7fa   : > { %v6551_v34 = vadd.s32 %v2309_v14, %v2307_v49  ;;  %3517 = vmatmul.msk.bf16.gmra.mxu3 %vm363_vm3, %v2383_v47  ;;  %v3589_v47 = vcvt.f32.s32 %v3588_v57  ;;  %v3593_v10 = vsel %vm3590_vm15, %v3591_v3, %v3592_v12  ;;  %v3598_v14 = vsel %vm3595_vm2, %v3596_v8, %v3597_v43 }
 0x7fb   : > { %2539 = vmax.xlane.f32.xlu1 %v6553_v58  ;;  %v3594_v60 = vcvt.f32.s32 %v3593_v10  ;;  %v3599_v3 = vcvt.f32.s32 %v3598_v14  ;;  %v2378_v12 = vunpack.c.l.b16 %v2362_v38  ;;  %v3581_v43 = vceil.f32 %v6005_v4 }
 0x7fc   : > { %7901 = vst [vmem:[#allocation82_spill] sm:$0xff] %v6551_v34  ;;  %v2340_v45 = vand.u32 127, %v6551_v34  ;;  %vm2332_vm13 = vcmp.eq.s32.totalorder %v6271_v36, %v6551_v34  ;;  %v926_v52 = vor.u32 %v3589_v47, %v918_v48  ;;  %v917_v10 = vand.u32 4294967168, %v4681_v42 }
 0x7fd   : > { %v6568_v40 = vsel %vm2332_vm13, 2147483648, %v6271_v36  ;;  %vm2356_vm11 = vmpackc.low %vm2332_vm13, %vm2332_vm13 }
 0x7fe   : > { %v2348_v2 = vsub.s32 69, %v2340_v45  ;;  %v6573_v49 = vsel %vm363_vm3, %v6568_v40, 2147483648  ;;  %v919_v45 = vand.u32 4294967168, %v4773_v21 }
 0x7ff   : > { %v2551_v9 = vshra.s32 %v6573_v49, 16 }
 0x800   : > { %v6585_v57 = vsel %vm3227_vm4, %v6284_v6, %v2348_v2  ;;  %v2379_v6 = vunpack.c.l.b16 %v2363_v63  ;;  %v927_v51 = vor.u32 %v3594_v60, %v919_v45  ;;  %v920_v2 = vand.u32 4294967168, %v4711_v54  ;;  %v6608_v54 = vpop.f32.mrf.mxu3 }
 0x801   : > { %v6588_v18 = vcvt.s32.f32 %v2551_v9  ;;  %v3582_v9 = vfloor.f32 %v6005_v4  ;;  %v2323_v60 = vcvt.f32.s32 %v6399_v23 }
 0x802   : > { %v2384_v47 = vpack.c.b16 %v2379_v6, %v2378_v12  ;;  %v928_v8 = vor.u32 %v3599_v3, %v920_v2  ;;  %v2364_v3 = vsel %vm2356_vm11, %v4607_v22, 0 }
 0x803   : > { %2959 = vrot.lane.b32.xlu2 %v926_v52, %s4001_s22  ;;  %2554 = vmax.xlane.f32.xlu1 %v6588_v18  ;;  %v3583_v21 = vsel %vm3580_vm1, %v3581_v43, %v3582_v9  ;;  %v2324_v6 = vshll.u32 %v2323_v60, 16  ;;  %v2380_v43 = vunpack.c.l.b16 %v2364_v3  ;;  %v2460_v60 = vand.u32 65535, %v6397_v24 }
 0x804   : > { %v3584_v48 = vcvt.f32.s32 %v3583_v21 }
 0x805   : > { %v2462_v3 = vcvt.s32.f32 %v2460_v60 }
 0x806   : > { %v925_v52 = vor.u32 %v3584_v48, %v917_v10  ;;  %v2475_v10 = vand.u32 65535, %v6436_v27 }
 0x808   : > { %v6610_v63 = vpop.f32.mrf.mxu3 }
 0x809   : > { %2961 = vrot.lane.b32.xlu0 %v927_v51, %s4001_s22 }
 0x80a   : > { %3518 = vmatmul.msk.bf16.gmra.mxu3 %vm363_vm3, %v2384_v47 }
 0x80b   : > { %2963 = vrot.lane.b32.xlu2 %v928_v8, %s4001_s22 }
 0x810   : > { %v6612_v14 = vpop.f32.mrf.mxu3 }
 0x818   : > { %v6625_v12 = vpop.f32.mrf.mxu3 }
 0x81c   : > { %2957 = vrot.lane.b32.xlu1 %v925_v52, %s4001_s22  ;;  %v2505_v52 = vand.u32 65535, %v6447_v44 }
 0x852   : > { %v2321_v38 = vpop.xlane.xlu1 %2320 }
 0x853   : > { %v2322_v45 = vcvt.f32.s32 %v2321_v38  ;;  %v6630_v2 = vpop.xlane.xlu2 %2464  ;;  %v6649_v38 = vpop.f32.mrf.mxu3 }
 0x854   : > { %vm2466_vm13 = vcmp.eq.f32.partialorder %v6408_v37, %v6630_v2  ;;  %v2520_v37 = vand.u32 65535, %v6502_v55 }
 0x855   : > { %v6619_v42 = vadd.s32 %v2324_v6, %v2322_v45  ;;  %v2477_v45 = vcvt.s32.f32 %v2475_v10  ;;  %v2467_v44 = vsel %vm2466_vm13, %v2462_v3, -inf }
 0x856   : > { %v2522_v10 = vcvt.s32.f32 %v2520_v37 }
 0x857   : > { %7902 = vst [vmem:[#allocation83_spill] sm:$0xff] %v6619_v42  ;;  %v2341_v4 = vand.u32 127, %v6619_v42  ;;  %vm2333_vm12 = vcmp.eq.s32.totalorder %v6327_v61, %v6619_v42 }
 0x858   : > { %v6628_v23 = vsel %vm2333_vm12, 2147483648, %v6327_v61  ;;  %vm2357_vm15 = vmpackc.low %vm2333_vm12, %vm2333_vm12 }
 0x859   : > { %v2349_v51 = vsub.s32 69, %v2341_v4  ;;  %v6634_v36 = vsel %vm363_vm3, %v6628_v23, 2147483648  ;;  %v2365_v47 = vsel %vm2357_vm15, %v4617_v15, 0  ;;  %v2507_v4 = vcvt.s32.f32 %v2505_v52 }
 0x85a   : > { %v2566_v8 = vshra.s32 %v6634_v36, 16  ;;  %v2381_v9 = vunpack.c.l.b16 %v2365_v47 }
 0x85b   : > { %v6640_v21 = vsel %vm3227_vm4, %v6337_v0, %v2349_v51  ;;  %v2490_v51 = vand.u32 65535, %v6478_v59  ;;  %v6663_v47 = vpop.f32.mrf.mxu3  ;;  %v2535_v59 = vand.u32 65535, %v6544_v50 }
 0x85c   : > { %v6642_v61 = vcvt.s32.f32 %v2566_v8  ;;  %v2385_v48 = vpack.c.b16 %v2381_v9, %v2380_v43 }
 0x85d   : > { %v6651_v6 = vpop.xlane.xlu0 %2479  ;;  %v2492_v43 = vcvt.s32.f32 %v2490_v51 }
 0x85e   : > { %2569 = vmax.xlane.f32.xlu2 %v6642_v61  ;;  %3519 = vmatmul.msk.bf16.gmra.mxu3 %vm363_vm3, %v2385_v48  ;;  %v6655_v0 = vpop.xlane.xlu2 %2509  ;;  %vm2481_vm0 = vcmp.eq.f32.partialorder %v6458_v41, %v6651_v6 }
 0x85f   : > { %vm2511_vm2 = vcmp.eq.f32.partialorder %v6462_v26, %v6655_v0  ;;  %v2482_v27 = vsel %vm2481_vm0, %v2477_v45, -inf  ;;  %v2550_v45 = vand.u32 65535, %v6573_v49 }
 0x860   : > { %v2512_v24 = vsel %vm2511_vm2, %v2507_v4, -inf  ;;  %2483 = vmax.xlane.f32.xlu0 %v2482_v27  ;;  %vm7749_vm2 = vcmask 64512  }
 0x861   : > { %2513 = vmax.xlane.f32.xlu1 %v2512_v24 }
 0x866   : > { %2468 = vmax.xlane.f32.xlu2 %v2467_v44  ;;  %v2495_v8 = vpop.xlane.xlu1 %2494  ;;  %v2960_v9 = vpop.permute.xlu2 %2959 }
 0x867   : > { %vm2496_vm5 = vcmp.eq.f32.partialorder %v6498_v56, %v2495_v8  ;;  %v6668_v26 = vsel %vm3173_vm10, %v4671_v39, %v2960_v9  ;;  %v2537_v56 = vcvt.s32.f32 %v2535_v59  ;;  %v2565_v9 = vand.u32 65535, %v6634_v36 }
 0x868   : > { %v2497_v41 = vsel %vm2496_vm5, %v2492_v43, -inf  ;;  %v6670_v48 = vpop.xlane.xlu0 %2524 }
 0x869   : > { %2498 = vmax.xlane.f32.xlu0 %v2497_v41  ;;  %vm2526_vm1 = vcmp.eq.f32.partialorder %v6525_v30, %v6670_v48  ;;  %v2552_v30 = vcvt.s32.f32 %v2550_v45  ;;  %v2567_v59 = vcvt.s32.f32 %v2565_v9 }
 0x86a   : > { %v2527_v55 = vsel %vm2526_vm1, %v2522_v10, -inf }
 0x86d   : > { %v6675_v52 = vpop.f32.mrf.mxu3 }
 0x86e   : > { %2528 = vmax.xlane.f32.xlu2 %v2527_v55  ;;  %v6677_v60 = vpop.xlane.xlu1 %2539  ;;  %v6691_v49 = vpop.permute.xlu2 %2963 }
 0x86f   : > { %vm2541_vm11 = vcmp.eq.f32.partialorder %v6553_v58, %v6677_v60  ;;  %v2437_v58 = vand.u32 4294967168, %v6460_v25  ;;  %7904 = vst [vmem:[#allocation85_spill] sm:$0xff] %v6691_v49  ;;  %v2471_v25 = vcvt.f32.s32 %v6630_v2 }
 0x870   : > { %v2542_v39 = vsel %vm2541_vm11, %v2537_v56, -inf  ;;  %v2486_v56 = vcvt.f32.s32 %v6651_v6 }
 0x871   : > { %2543 = vmax.xlane.f32.xlu0 %v2542_v39  ;;  %v2516_v39 = vcvt.f32.s32 %v6655_v0  ;;  %v2472_v36 = vshll.u32 %v2471_v25, 16 }
 0x875   : > { %v6682_v4 = vpop.f32.mrf.mxu3 }
 0x876   : > { %v6684_v3 = vpop.xlane.xlu1 %2554 }
 0x877   : > { %vm2556_vm12 = vcmp.eq.f32.partialorder %v6588_v18, %v6684_v3 }
 0x878   : > { %v2557_v50 = vsel %vm2556_vm12, %v2552_v30, -inf  ;;  %v2487_v30 = vshll.u32 %v2486_v56, 16 }
 0x879   : > { %2558 = vmax.xlane.f32.xlu1 %v2557_v50 }
 0x87b   : > { %v6694_v41 = vpop.permute.xlu0 %2961 }
 0x87c   : > { %7905 = vst [vmem:[#allocation86_spill] sm:$0xff] %v6694_v41 }
 0x87d   : > { %v2412_v27 = vpop.f32.mrf.mxu3 }
 0x87e   : > { %vm3830_vm15 = vcmp.lt.s32.totalorder %v2412_v27, 0  ;;  %v3831_v24 = vceil.f32 %v2412_v27  ;;  %v3832_v44 = vfloor.f32 %v2412_v27 }
 0x880   : > { %v3833_v51 = vsel %vm3830_vm15, %v3831_v24, %v3832_v44  ;;  %v2517_v44 = vshll.u32 %v2516_v39, 16 }
 0x881   : > { %v3834_v37 = vcvt.f32.s32 %v3833_v51  ;;  %v2501_v51 = vcvt.f32.s32 %v2495_v8  ;;  %v2531_v8 = vcvt.f32.s32 %v6670_v48 }
 0x883   : > { %v6689_v43 = vor.u32 %v3834_v37, %v2437_v58  ;;  %v2502_v6 = vshll.u32 %v2501_v51, 16 }
 0x885   : > { %7903 = vst [vmem:[#allocation84_spill] sm:$0xff] %v6689_v43 }
 0x88e   : > { %v6696_v10 = vpop.permute.xlu1 %2957 }
 0x88f   : > { %7906 = vst [vmem:[#allocation87_spill] sm:$0xff] %v6696_v10 }
 0x8d1   : > { %v6698_v18 = vpop.xlane.xlu2 %2569 }
 0x8d2   : > { %vm2571_vm13 = vcmp.eq.f32.partialorder %v6642_v61, %v6698_v18 }
 0x8d3   : > { %v2572_v55 = vsel %vm2571_vm13, %v2567_v59, -inf  ;;  %v2484_v45 = vpop.xlane.xlu0 %2483 }
 0x8d4   : > { %2573 = vmax.xlane.f32.xlu2 %v2572_v55  ;;  %v2514_v50 = vpop.xlane.xlu1 %2513  ;;  %v2485_v27 = vcvt.f32.s32 %v2484_v45 }
 0x8d5   : > { %v2515_v58 = vcvt.f32.s32 %v2514_v50 }
 0x8d6   : > { %v6705_v9 = vadd.s32 %v2487_v30, %v2485_v27 }
 0x8d7   : > { %v6707_v61 = vadd.s32 %v2517_v44, %v2515_v58 }
 0x8d8   : > { %7907 = vst [vmem:[#allocation88_spill] sm:$0xff] %v6705_v9  ;;  %vm2580_vm0 = vcmp.eq.s32.totalorder %v6429_v28, %v6705_v9  ;;  %v2588_v2 = vand.u32 127, %v6705_v9 }
 0x8d9   : > { %v2469_v24 = vpop.xlane.xlu2 %2468  ;;  %v2590_v0 = vand.u32 127, %v6707_v61  ;;  %vm2604_vm5 = vmpackc.low %vm2580_vm0, %vm2580_vm0  ;;  %v6733_v48 = vsel %vm2580_vm0, 2147483648, %v6429_v28  ;;  %vm2582_vm12 = vcmp.eq.s32.totalorder %v6442_v17, %v6707_v61 }
 0x8da   : > { %v2470_v37 = vcvt.f32.s32 %v2469_v24  ;;  %v2596_v55 = vsub.s32 69, %v2588_v2  ;;  %v2612_v25 = vsel %vm2604_vm5, %v4445_v1, 0  ;;  %v6747_v58 = vsel %vm363_vm3, %v6733_v48, 2147483648  ;;  %vm6827_vm5 = vmpackc.low %vm2582_vm12, %vm2582_vm12 }
 0x8db   : > { %v2598_v39 = vsub.s32 69, %v2590_v0  ;;  %v2628_v45 = vunpack.c.l.b16 %v2612_v25  ;;  %v2729_v2 = vshra.s32 %v6747_v58, 16 }
 0x8dc   : > { %v6709_v59 = vadd.s32 %v2472_v36, %v2470_v37  ;;  %v2499_v30 = vpop.xlane.xlu0 %2498  ;;  %v6737_v50 = vsel %vm7749_vm2, %v6451_v16, %v2596_v55  ;;  %v2532_v55 = vshll.u32 %v2531_v8, 16 }
 0x8dd   : > { %v2500_v44 = vcvt.f32.s32 %v2499_v30  ;;  %v6743_v51 = vsel %vm7749_vm2, %v6456_v20, %v2598_v39 }
 0x8de   : > { %vm2579_vm1 = vcmp.eq.s32.totalorder %v6393_v29, %v6709_v59  ;;  %v2587_v56 = vand.u32 127, %v6709_v59 }
 0x8df   : > { %vm2603_vm11 = vmpackc.low %vm2579_vm1, %vm2579_vm1  ;;  %v6753_v16 = vadd.s32 %v2502_v6, %v2500_v44  ;;  %v6760_v20 = vsel %vm2579_vm1, 2147483648, %v6393_v29  ;;  %v6766_v6 = vcvt.s32.f32 %v2729_v2 }
 0x8e0   : > { %v2611_v36 = vsel %vm2603_vm11, %v4420_v7, 0  ;;  %v2595_v27 = vsub.s32 69, %v2587_v56  ;;  %v2546_v56 = vcvt.f32.s32 %v6677_v60  ;;  %v6773_v8 = vsel %vm363_vm3, %v6760_v20, 2147483648 }
 0x8e1   : > { %v2627_v24 = vunpack.c.l.b16 %v2611_v36  ;;  %7908 = vst [vmem:[#allocation89_spill] sm:$0xff] %v6753_v16  ;;  %v2529_v0 = vpop.xlane.xlu2 %2528  ;;  %vm2581_vm15 = vcmp.eq.s32.totalorder %v6474_v31, %v6753_v16  ;;  %v6785_v60 = vsel %vm2582_vm12, 2147483648, %v6442_v17  ;;  %2732 = vmax.xlane.f32.xlu1 %v6766_v6  ;;  %v2714_v36 = vshra.s32 %v6773_v8, 16 }
 0x8e2   : > { %v6751_v37 = vsel %vm7749_vm2, %v6404_v32, %v2595_v27  ;;  %v2530_v25 = vcvt.f32.s32 %v2529_v0  ;;  %v2589_v32 = vand.u32 127, %v6753_v16  ;;  %v6779_v29 = vsel %vm2581_vm15, 2147483648, %v6474_v31  ;;  %vm6817_vm0 = vmpackc.low %vm2581_vm15, %vm2581_vm15 }
 0x8e3   : > { %v2635_v28 = vpack.c.b16 %v2628_v45, %v2627_v24  ;;  %v6791_v30 = vsel %vm363_vm3, %v6779_v29, 2147483648  ;;  %v6801_v2 = vcvt.s32.f32 %v2714_v36  ;;  %v6805_v0 = vsel %vm363_vm3, %v6785_v60, 2147483648 }
 0x8e4   : > { %v6769_v39 = vadd.s32 %v2532_v55, %v2530_v25  ;;  %v2597_v45 = vsub.s32 69, %v2589_v32  ;;  %v2744_v24 = vshra.s32 %v6791_v30, 16  ;;  %v2547_v25 = vshll.u32 %v2546_v56, 16 }
 0x8e5   : > { %3520 = vmatmul.msk.bf16.vlgmr.msra.gmra.mxu0 %vm363_vm3, %v2635_v28  ;;  %v2544_v28 = vpop.xlane.xlu0 %2543  ;;  %2717 = vmax.xlane.f32.xlu0 %v6801_v2  ;;  %v2759_v31 = vshra.s32 %v6805_v0, 16 }
 0x8e6   : > { %7909 = vst [vmem:[#allocation90_spill] sm:$0xff] %v6769_v39  ;;  %vm2583_vm13 = vcmp.eq.s32.totalorder %v6496_v33, %v6769_v39  ;;  %v2591_v27 = vand.u32 127, %v6769_v39  ;;  %v6799_v44 = vsel %vm7749_vm2, %v6490_v35, %v2597_v45  ;;  %v2545_v45 = vcvt.f32.s32 %v2544_v28 }
 0x8e7   : > { %v6811_v55 = vsel %vm2583_vm13, 2147483648, %v6496_v33  ;;  %v6821_v36 = vcvt.s32.f32 %v2744_v24  ;;  %v7915_v24 = vld [vmem:[#allocation3_spill] sm:$0xff]  ;;  %vm6852_vm1 = vmpackc.low %vm2583_vm13, %vm2583_vm13 }
 0x8e8   : > { %v2599_v32 = vsub.s32 69, %v2591_v27  ;;  %v6835_v43 = vsel %vm363_vm3, %v6811_v55, 2147483648  ;;  %v6841_v27 = vadd.s32 %v2547_v25, %v2545_v45  ;;  %v2613_v28 = vsel %vm6817_vm0, %v7915_v24, 0 }
 0x8e9   : > { %2747 = vmax.xlane.f32.xlu2 %v6821_v36  ;;  %v2774_v17 = vshra.s32 %v6835_v43, 16  ;;  %v2561_v45 = vcvt.f32.s32 %v6684_v3  ;;  %v2615_v62 = vsel %vm6852_vm1, %v4515_v5, 0 }
 0x8ea   : > { %v6839_v56 = vsel %vm7749_vm2, %v6520_v11, %v2599_v32  ;;  %7914 = vst [vmem:[#allocation91_spill] sm:$0xff] %v6841_v27  ;;  %v7918_v11 = vld [vmem:[#allocation4_spill] sm:$0xff]  ;;  %v2629_v32 = vunpack.c.l.b16 %v2613_v28  ;;  %vm2584_vm11 = vcmp.eq.s32.totalorder %v6538_v46, %v6841_v27  ;;  %v2592_v35 = vand.u32 127, %v6841_v27 }
 0x8eb   : > { %v2614_v25 = vsel %vm6827_vm5, %v7918_v11, 0  ;;  %v6863_v41 = vcvt.s32.f32 %v2774_v17  ;;  %v6866_v33 = vsel %vm2584_vm11, 2147483648, %v6538_v46  ;;  %vm2608_vm12 = vmpackc.low %vm2584_vm11, %vm2584_vm11  ;;  %v6871_v28 = vcvt.s32.f32 %v2759_v31 }
 0x8ec   : > { %v2630_v39 = vunpack.c.l.b16 %v2614_v25  ;;  %v2600_v42 = vsub.s32 69, %v2592_v35  ;;  %v6875_v3 = vsel %vm363_vm3, %v6866_v33, 2147483648  ;;  %v2616_v27 = vsel %vm2608_vm12, %v4538_v19, 0  ;;  %v2559_v17 = vpop.xlane.xlu1 %2558 }
 0x8ed   : > { %2777 = vmax.xlane.f32.xlu1 %v6863_v41  ;;  %v2789_v46 = vshra.s32 %v6875_v3, 16  ;;  %v2631_v9 = vunpack.c.l.b16 %v2615_v62  ;;  %v2632_v13 = vunpack.c.l.b16 %v2616_v27  ;;  %v2562_v34 = vshll.u32 %v2561_v45, 16  ;;  %2762 = vmax.xlane.f32.xlu0 %v6871_v28 }
 0x8ee   : > { %v2636_v25 = vpack.c.b16 %v2630_v39, %v2629_v32  ;;  %v6882_v16 = vsel %vm7749_vm2, %v6548_v53, %v2600_v42  ;;  %v2560_v31 = vcvt.f32.s32 %v2559_v17  ;;  %v7923_v32 = vld [vmem:[#allocation34_spill] sm:$0xff] }
 0x8ef   : > { %7919 = vst [vmem:[#allocation3_spill] sm:$0xff] %v6882_v16  ;;  %v6885_v35 = vcvt.s32.f32 %v2789_v46  ;;  %v2637_v49 = vpack.c.b16 %v2632_v13, %v2631_v9  ;;  %v3611_v45 = vceil.f32 %v7923_v32  ;;  %v3612_v62 = vfloor.f32 %v7923_v32 }
 0x8f0   : > { %v6887_v10 = vadd.s32 %v2562_v34, %v2560_v31  ;;  %vm3610_vm13 = vcmp.lt.s32.totalorder %v7923_v32, 0 }
 0x8f1   : > { %2792 = vmax.xlane.f32.xlu2 %v6885_v35  ;;  %v3613_v17 = vsel %vm3610_vm13, %v3611_v45, %v3612_v62 }
 0x8f2   : > { %7920 = vst [vmem:[#allocation4_spill] sm:$0xff] %v6887_v10  ;;  %vm2585_vm15 = vcmp.eq.s32.totalorder %v6568_v40, %v6887_v10  ;;  %v2593_v39 = vand.u32 127, %v6887_v10  ;;  %v3614_v46 = vcvt.f32.s32 %v3613_v17 }
 0x8f3   : > { %v6898_v53 = vsel %vm2585_vm15, 2147483648, %v6568_v40  ;;  %vm2609_vm0 = vmpackc.low %vm2585_vm15, %vm2585_vm15 }
 0x8f4   : > { %7921 = vst [vmem:[#allocation92_spill] sm:$0xff] %v6898_v53  ;;  %v2601_v42 = vsub.s32 69, %v2593_v39  ;;  %v6902_v34 = vsel %vm363_vm3, %v6898_v53, 2147483648  ;;  %v2617_v62 = vsel %vm2609_vm0, %v4607_v22, 0 }
 0x8f5   : > { %3521 = vmatmul.msk.bf16.gmra.mxu0 %vm363_vm3, %v2636_v25  ;;  %v2804_v13 = vshra.s32 %v6902_v34, 16  ;;  %v7924_v25 = vld [vmem:[#allocation15_spill] sm:$0xff] }
 0x8f6   : > { %v6907_v9 = vsel %vm7749_vm2, %v6585_v57, %v2601_v42  ;;  %v923_v31 = vand.u32 4294967168, %v7924_v25  ;;  %v6918_v57 = vpop.f32.mrf.mxu0 }
 0x8f7   : > { %7922 = vst [vmem:[#allocation93_spill] sm:$0xff] %v6907_v9  ;;  %v6909_v27 = vcvt.s32.f32 %v2804_v13  ;;  %v2576_v13 = vcvt.f32.s32 %v6698_v18 }
 0x8f8   : > { %v931_v39 = vor.u32 %v3614_v46, %v923_v31 }
 0x8f9   : > { %2807 = vmax.xlane.f32.xlu2 %v6909_v27  ;;  %v2577_v9 = vshll.u32 %v2576_v13, 16 }
 0x8fe   : > { %v6920_v42 = vpop.f32.mrf.mxu0 }
 0x905   : > { %3522 = vmatmul.msk.bf16.gmra.mxu0 %vm363_vm3, %v2637_v49 }
 0x906   : > { %v6923_v53 = vpop.f32.mrf.mxu0 }
 0x90e   : > { %v6944_v31 = vpop.f32.mrf.mxu0 }
 0x911   : > { %2969 = vrot.lane.b32.xlu2 %v931_v39, %s4001_s22 }
 0x947   : > { %v2574_v49 = vpop.xlane.xlu2 %2573 }
 0x948   : > { %v2575_v16 = vcvt.f32.s32 %v2574_v49  ;;  %v2728_v49 = vand.u32 65535, %v6747_v58 }
 0x94a   : > { %v6929_v32 = vadd.s32 %v2577_v9, %v2575_v16  ;;  %v2633_v9 = vunpack.c.l.b16 %v2617_v62  ;;  %v2730_v62 = vcvt.s32.f32 %v2728_v49  ;;  %v2758_v49 = vand.u32 65535, %v6805_v0 }
 0x94c   : > { %vm2586_vm5 = vcmp.eq.s32.totalorder %v6628_v23, %v6929_v32  ;;  %v2594_v45 = vand.u32 127, %v6929_v32 }
 0x94d   : > { %v6936_v18 = vsel %vm2586_vm5, 2147483648, %v6628_v23  ;;  %vm2610_vm1 = vmpackc.low %vm2586_vm5, %vm2586_vm5 }
 0x94e   : > { %7925 = vst [vmem:[#allocation34_spill] sm:$0xff] %v6936_v18  ;;  %v2602_v17 = vsub.s32 69, %v2594_v45  ;;  %v6940_v46 = vsel %vm363_vm3, %v6936_v18, 2147483648  ;;  %v2618_v40 = vsel %vm2610_vm1, %v4617_v15, 0  ;;  %v6955_v45 = vpop.f32.mrf.mxu0  ;;  %v2760_v15 = vcvt.s32.f32 %v2758_v49 }
 0x94f   : > { %v2819_v16 = vshra.s32 %v6940_v46, 16  ;;  %v2634_v25 = vunpack.c.l.b16 %v2618_v40  ;;  %v2713_v40 = vand.u32 65535, %v6773_v8 }
 0x950   : > { %v6948_v39 = vsel %vm7749_vm2, %v6640_v21, %v2602_v17  ;;  %v2743_v17 = vand.u32 65535, %v6791_v30  ;;  %vm3730_vm2 = vcmp.lt.s32.totalorder %v6944_v31, 0 }
 0x951   : > { %7926 = vst [vmem:[#allocation15_spill] sm:$0xff] %v6948_v39  ;;  %v6950_v23 = vcvt.s32.f32 %v2819_v16  ;;  %v2638_v13 = vpack.c.b16 %v2634_v25, %v2633_v9  ;;  %v2715_v9 = vcvt.s32.f32 %v2713_v40 }
 0x952   : > { %v2745_v58 = vcvt.s32.f32 %v2743_v17 }
 0x953   : > { %2822 = vmax.xlane.f32.xlu0 %v6950_v23  ;;  %3523 = vmatmul.msk.bf16.gmra.mxu0 %vm363_vm3, %v2638_v13 }
 0x954   : > { %v6957_v10 = vpop.xlane.xlu1 %2732 }
 0x955   : > { %vm2734_vm11 = vcmp.eq.f32.partialorder %v6766_v6, %v6957_v10 }
 0x956   : > { %v2735_v21 = vsel %vm2734_vm11, %v2730_v62, -inf }
 0x957   : > { %2736 = vmax.xlane.f32.xlu1 %v2735_v21  ;;  %v2688_v21 = vand.u32 4294967168, %v6709_v59 }
 0x958   : > { %v6963_v16 = vpop.xlane.xlu0 %2717 }
 0x959   : > { %vm2719_vm12 = vcmp.eq.f32.partialorder %v6801_v2, %v6963_v16 }
 0x95a   : > { %v2720_v8 = vsel %vm2719_vm12, %v2715_v9, -inf }
 0x95b   : > { %2721 = vmax.xlane.f32.xlu0 %v2720_v8 }
 0x95c   : > { %v6965_v25 = vpop.xlane.xlu2 %2747 }
 0x95d   : > { %vm2749_vm15 = vcmp.eq.f32.partialorder %v6821_v36, %v6965_v25  ;;  %v7927_v36 = vld [vmem:[#allocation32_spill] sm:$0xff] }
 0x95e   : > { %v2750_v13 = vsel %vm2749_vm15, %v2745_v58, -inf  ;;  %v3606_v17 = vceil.f32 %v7927_v36  ;;  %v3607_v9 = vfloor.f32 %v7927_v36  ;;  %vm3605_vm5 = vcmp.lt.s32.totalorder %v7927_v36, 0 }
 0x95f   : > { %2751 = vmax.xlane.f32.xlu1 %v2750_v13 }
 0x960   : > { %v6973_v39 = vpop.xlane.xlu0 %2762  ;;  %v3608_v59 = vsel %vm3605_vm5, %v3606_v17, %v3607_v9  ;;  %v7931_v9 = vld [vmem:[#allocation20_spill] sm:$0xff] }
 0x961   : > { %vm2764_vm0 = vcmp.eq.f32.partialorder %v6871_v28, %v6973_v39  ;;  %v3609_v13 = vcvt.f32.s32 %v3608_v59  ;;  %v7930_v28 = vld [vmem:[#allocation67_spill] sm:$0xff] }
 0x962   : > { %v2660_v6 = vpop.f32.mrf.mxu0  ;;  %v2765_v58 = vsel %vm2764_vm0, %v2760_v15, -inf  ;;  %v3627_v22 = vfloor.f32 %v7930_v28  ;;  %vm3625_vm1 = vcmp.lt.s32.totalorder %v7930_v28, 0 }
 0x963   : > { %vm3860_vm13 = vcmp.lt.s32.totalorder %v2660_v6, 0  ;;  %v3861_v30 = vceil.f32 %v2660_v6  ;;  %v3862_v62 = vfloor.f32 %v2660_v6  ;;  %2766 = vmax.xlane.f32.xlu2 %v2765_v58  ;;  %v7929_v6 = vld [vmem:[#allocation13_spill] sm:$0xff]  ;;  %v1171_v58 = vand.u32 4294967168, %v7931_v9 }
 0x965   : > { %v3863_v40 = vsel %vm3860_vm13, %v3861_v30, %v3862_v62  ;;  %v922_v30 = vand.u32 4294967168, %v7929_v6  ;;  %v2691_v6 = vand.u32 4294967168, %v6707_v61 }
 0x966   : > { %v3864_v2 = vcvt.f32.s32 %v3863_v40  ;;  %v3626_v40 = vceil.f32 %v7930_v28  ;;  %v7001_v28 = vpop.xlane.xlu2 %2792 }
 0x967   : > { %v930_v62 = vor.u32 %v3609_v13, %v922_v30  ;;  %v7932_v13 = vld [vmem:[#allocation17_spill] sm:$0xff]  ;;  %vm2794_vm15 = vcmp.eq.f32.partialorder %v6885_v35, %v7001_v28 }
 0x968   : > { %v6979_v0 = vor.u32 %v3864_v2, %v2688_v21  ;;  %v3628_v15 = vsel %vm3625_vm1, %v3626_v40, %v3627_v22  ;;  %v6998_v22 = vpop.xlane.xlu1 %2777 }
 0x969   : > { %v3629_v2 = vcvt.f32.s32 %v3628_v15  ;;  %vm2779_vm12 = vcmp.eq.f32.partialorder %v6863_v41, %v6998_v22  ;;  %v2788_v15 = vand.u32 65535, %v6875_v3 }
 0x96a   : > { %7928 = vst [vmem:[#allocation32_spill] sm:$0xff] %v6979_v0  ;;  %v6982_v8 = vpop.f32.mrf.mxu0 }
 0x96b   : > { %v1179_v0 = vor.u32 %v3629_v2, %v1171_v58  ;;  %v2803_v2 = vand.u32 65535, %v6902_v34 }
 0x96d   : > { %v2805_v9 = vcvt.s32.f32 %v2803_v2 }
 0x96f   : > { %2967 = vrot.lane.b32.xlu0 %v930_v62, %s4001_s22  ;;  %v2773_v62 = vand.u32 65535, %v6835_v43 }
 0x971   : > { %v2775_v61 = vcvt.s32.f32 %v2773_v62 }
 0x972   : > { %v6985_v49 = vpop.f32.mrf.mxu0 }
 0x973   : > { %v2780_v40 = vsel %vm2779_vm12, %v2775_v61, -inf }
 0x978   : > { %2965 = vrot.lane.b32.xlu1 %v7932_v13, %s4001_s22  ;;  %v7936_v13 = vld [vmem:[#allocation18_spill] sm:$0xff] }
 0x97a   : > { %v2667_v21 = vpop.f32.mrf.mxu0 }
 0x97b   : > { %vm3875_vm11 = vcmp.lt.s32.totalorder %v2667_v21, 0  ;;  %v3876_v36 = vceil.f32 %v2667_v21  ;;  %v3877_v17 = vfloor.f32 %v2667_v21  ;;  %2983 = vrot.lane.b32.xlu2 %v1179_v0, %s4002_s23  ;;  %v7006_v21 = vpop.xlane.xlu2 %2807  ;;  %v2790_v0 = vcvt.s32.f32 %v2788_v15 }
 0x97c   : > { %vm2809_vm13 = vcmp.eq.f32.partialorder %v6909_v27, %v7006_v21  ;;  %v7937_v27 = vld [vmem:[#allocation35_spill] sm:$0xff] }
 0x97d   : > { %v3878_v59 = vsel %vm3875_vm11, %v3876_v36, %v3877_v17  ;;  %v7934_v36 = vld [vmem:[#allocation66_spill] sm:$0xff]  ;;  %v2795_v41 = vsel %vm2794_vm15, %v2790_v0, -inf  ;;  %v2810_v3 = vsel %vm2809_vm13, %v2805_v9, -inf  ;;  %v3617_v15 = vfloor.f32 %v7937_v27 }
 0x97e   : > { %v3879_v30 = vcvt.f32.s32 %v3878_v59  ;;  %v3621_v43 = vceil.f32 %v7934_v36  ;;  %v3622_v17 = vfloor.f32 %v7934_v36  ;;  %vm3620_vm0 = vcmp.lt.s32.totalorder %v7934_v36, 0  ;;  %v7935_v59 = vld [vmem:[#allocation69_spill] sm:$0xff]  ;;  %v7938_v0 = vld [vmem:[#allocation70_spill] sm:$0xff] }
 0x97f   : > { %v3637_v35 = vfloor.f32 %v7935_v59  ;;  %vm3635_vm5 = vcmp.lt.s32.totalorder %v7935_v59, 0  ;;  %vm3615_vm1 = vcmp.lt.s32.totalorder %v7937_v27, 0  ;;  %v3641_v36 = vceil.f32 %v7938_v0 }
 0x980   : > { %v6995_v18 = vor.u32 %v3879_v30, %v2691_v6  ;;  %v3623_v58 = vsel %vm3620_vm0, %v3621_v43, %v3622_v17  ;;  %v3636_v6 = vceil.f32 %v7935_v59  ;;  %v1170_v30 = vand.u32 4294967168, %v7936_v13  ;;  %v7939_v17 = vld [vmem:[#allocation19_spill] sm:$0xff]  ;;  %v7940_v59 = vld [vmem:[#allocation68_spill] sm:$0xff] }
 0x981   : > { %v3624_v34 = vcvt.f32.s32 %v3623_v58  ;;  %v3642_v43 = vfloor.f32 %v7938_v0  ;;  %vm3640_vm11 = vcmp.lt.s32.totalorder %v7938_v0, 0  ;;  %vm3630_vm12 = vcmp.lt.s32.totalorder %v7940_v59, 0 }
 0x982   : > { %7933 = vst [vmem:[#allocation13_spill] sm:$0xff] %v6995_v18  ;;  %v3638_v61 = vsel %vm3635_vm5, %v3636_v6, %v3637_v35  ;;  %v3631_v6 = vceil.f32 %v7940_v59  ;;  %v3632_v35 = vfloor.f32 %v7940_v59  ;;  %vm3670_vm0 = vcmp.lt.s32.totalorder %v6608_v54, 0 }
 0x983   : > { %v1178_v62 = vor.u32 %v3624_v34, %v1170_v30  ;;  %v3639_v2 = vcvt.f32.s32 %v3638_v61  ;;  %v7941_v30 = vld [vmem:[#allocation16_spill] sm:$0xff]  ;;  %v7942_v61 = vld [vmem:[#allocation74_spill] sm:$0xff] }
 0x984   : > { %v3657_v0 = vfloor.f32 %v7942_v61  ;;  %vm3655_vm15 = vcmp.lt.s32.totalorder %v7942_v61, 0 }
 0x999   : > { %2781 = vmax.xlane.f32.xlu0 %v2780_v40  ;;  %v3616_v40 = vceil.f32 %v7937_v27  ;;  %v3656_v27 = vceil.f32 %v7942_v61  ;;  %v3671_v61 = vceil.f32 %v6608_v54 }
 0x99b   : > { %v3618_v9 = vsel %vm3615_vm1, %v3616_v40, %v3617_v15  ;;  %vm3685_vm1 = vcmp.lt.s32.totalorder %v6625_v12, 0 }
 0x99c   : > { %v3619_v34 = vcvt.f32.s32 %v3618_v9  ;;  %v7944_v9 = vld [vmem:[#allocation72_spill] sm:$0xff] }
 0x99d   : > { %vm3645_vm13 = vcmp.lt.s32.totalorder %v7944_v9, 0 }
 0x9a2   : > { %2796 = vmax.xlane.f32.xlu1 %v2795_v41  ;;  %v1173_v41 = vand.u32 4294967168, %v7939_v17  ;;  %v7943_v17 = vld [vmem:[#allocation22_spill] sm:$0xff] }
 0x9a3   : > { %v1174_v40 = vand.u32 4294967168, %v7943_v17 }
 0x9a4   : > { %2811 = vmax.xlane.f32.xlu2 %v2810_v3  ;;  %v3643_v3 = vsel %vm3640_vm11, %v3641_v36, %v3642_v43  ;;  %v1181_v58 = vor.u32 %v3639_v2, %v1173_v41  ;;  %v3633_v2 = vsel %vm3630_vm12, %v3631_v6, %v3632_v35  ;;  %v3658_v43 = vsel %vm3655_vm15, %v3656_v27, %v3657_v0  ;;  %v7946_v6 = vld [vmem:[#allocation25_spill] sm:$0xff] }
 0x9a5   : > { %v3644_v13 = vcvt.f32.s32 %v3643_v3  ;;  %v3634_v41 = vcvt.f32.s32 %v3633_v2  ;;  %v3646_v3 = vceil.f32 %v7944_v9  ;;  %v3659_v59 = vcvt.f32.s32 %v3658_v43 }
 0x9a6   : > { %v1177_v35 = vand.u32 4294967168, %v7946_v6  ;;  %vm3675_vm11 = vcmp.lt.s32.totalorder %v6610_v63, 0 }
 0x9a7   : > { %v1182_v36 = vor.u32 %v3644_v13, %v1174_v40 }
 0x9a8   : > { %v1185_v27 = vor.u32 %v3659_v59, %v1177_v35 }
 0x9ad   : > { %2981 = vrot.lane.b32.xlu0 %v1178_v62, %s4002_s23  ;;  %v924_v62 = vand.u32 4294967168, %v7941_v30  ;;  %v7945_v30 = vld [vmem:[#allocation21_spill] sm:$0xff] }
 0x9ae   : > { %v1172_v18 = vand.u32 4294967168, %v7945_v30 }
 0x9af   : > { %v932_v15 = vor.u32 %v3619_v34, %v924_v62  ;;  %v3672_v34 = vfloor.f32 %v6608_v54  ;;  %v3686_v54 = vceil.f32 %v6625_v12 }
 0x9b0   : > { %v1180_v13 = vor.u32 %v3634_v41, %v1172_v18  ;;  %v3687_v18 = vfloor.f32 %v6625_v12  ;;  %v7948_v41 = vld [vmem:[#allocation23_spill] sm:$0xff]  ;;  %v7950_v12 = vld [vmem:[#allocation12_spill] sm:$0xff] }
 0x9b1   : > { %v3673_v0 = vsel %vm3670_vm0, %v3671_v61, %v3672_v34  ;;  %v3676_v61 = vceil.f32 %v6610_v63  ;;  %v3677_v34 = vfloor.f32 %v6610_v63  ;;  %vm3565_vm12 = vcmp.lt.s32.totalorder %v7950_v12, 0 }
 0x9b2   : > { %v3674_v43 = vcvt.f32.s32 %v3673_v0  ;;  %v3688_v35 = vsel %vm3685_vm1, %v3686_v54, %v3687_v18  ;;  %v2724_v0 = vcvt.f32.s32 %v6963_v16  ;;  %v7952_v16 = vld [vmem:[#allocation46_spill] sm:$0xff]  ;;  %vm3245_vm0 = vcmask 72704  }
 0x9b3   : > { %v7069_v63 = vsel %vm3675_vm11, %v3676_v61, %v3677_v34  ;;  %v3689_v54 = vcvt.f32.s32 %v3688_v35  ;;  %vm3700_vm15 = vcmp.lt.s32.totalorder %v7952_v16, 0  ;;  %v3701_v18 = vceil.f32 %v7952_v16 }
 0x9b4   : > { %vm3254_vm1 = vcmask 80896  }
 0x9b5   : > { %2987 = vrot.lane.b32.xlu0 %v1181_v58, %s4002_s23  ;;  %v3647_v58 = vfloor.f32 %v7944_v9  ;;  %v1175_v9 = vand.u32 4294967168, %v7948_v41 }
 0x9b7   : > { %v3648_v62 = vsel %vm3645_vm13, %v3646_v3, %v3647_v58  ;;  %v2739_v3 = vcvt.f32.s32 %v6957_v10  ;;  %v7949_v58 = vld [vmem:[#allocation28_spill] sm:$0xff]  ;;  %v3566_v10 = vceil.f32 %v7950_v12 }
 0x9b8   : > { %v3649_v40 = vcvt.f32.s32 %v3648_v62  ;;  %v1425_v59 = vand.u32 4294967168, %v7949_v58  ;;  %v7078_v58 = vpop.permute.xlu2 %2969 }
 0x9ba   : > { %v1183_v6 = vor.u32 %v3649_v40, %v1175_v9  ;;  %v1433_v62 = vor.u32 %v3674_v43, %v1425_v59  ;;  %v7951_v40 = vld [vmem:[#allocation26_spill] sm:$0xff]  ;;  %v3702_v9 = vfloor.f32 %v7952_v16 }
 0x9bb   : > { %2971 = vrot.lane.b32.xlu1 %v932_v15, %s4001_s22  ;;  %v7947_v15 = vld [vmem:[#allocation36_spill] sm:$0xff]  ;;  %v1423_v41 = vand.u32 4294967168, %v7951_v40  ;;  %v7957_v16 = vld [vmem:[#allocation38_spill] sm:$0xff] }
 0x9bc   : > { %2989 = vrot.lane.b32.xlu2 %v1182_v36, %s4002_s23  ;;  %v3661_v2 = vceil.f32 %v7947_v15  ;;  %v3662_v36 = vfloor.f32 %v7947_v15  ;;  %vm3660_vm5 = vcmp.lt.s32.totalorder %v7947_v15, 0  ;;  %v3703_v40 = vsel %vm3700_vm15, %v3701_v18, %v3702_v9 }
 0x9bd   : > { %v1676_v18 = vand.u32 4294967168, %v7957_v16  ;;  %vm3690_vm15 = vcmp.lt.s32.totalorder %v6649_v38, 0  ;;  %v3691_v9 = vceil.f32 %v6649_v38 }
 0x9be   : > { %v3663_v30 = vsel %vm3660_vm5, %v3661_v2, %v3662_v36  ;;  %v3567_v2 = vfloor.f32 %v7950_v12 }
 0x9bf   : > { %v3664_v36 = vcvt.f32.s32 %v3663_v30  ;;  %v2725_v30 = vshll.u32 %v2724_v0, 16 }
 0x9c3   : > { %2985 = vrot.lane.b32.xlu1 %v1180_v13, %s4002_s23 }
 0x9c4   : > { %2995 = vrot.lane.b32.xlu2 %v1185_v27, %s4002_s23  ;;  %v2740_v27 = vshll.u32 %v2739_v3, 16  ;;  %v2754_v3 = vcvt.f32.s32 %v6965_v25  ;;  %v1431_v25 = vor.u32 %v3664_v36, %v1423_v41 }
 0x9c6   : > { %v7049_v17 = vpop.xlane.xlu0 %2822 }
 0x9ca   : > { %v2737_v13 = vpop.xlane.xlu1 %2736 }
 0x9cb   : > { %v2738_v15 = vcvt.f32.s32 %v2737_v13  ;;  %2991 = vrot.lane.b32.xlu1 %v1183_v6, %s4002_s23  ;;  %v7953_v6 = vld [vmem:[#allocation27_spill] sm:$0xff]  ;;  %v7954_v13 = vld [vmem:[#allocation30_spill] sm:$0xff] }
 0x9cc   : > { %3009 = vrot.lane.b32.xlu2 %v1433_v62, %s4003_s24  ;;  %v1426_v35 = vand.u32 4294967168, %v7953_v6  ;;  %v1428_v62 = vand.u32 4294967168, %v7954_v13 }
 0x9cd   : > { %v7071_v43 = vadd.s32 %v2740_v27, %v2738_v15  ;;  %v3679_v15 = vcvt.f32.s32 %v7069_v63 }
 0x9ce   : > { %v2722_v59 = vpop.xlane.xlu0 %2721  ;;  %v1436_v63 = vor.u32 %v3689_v54, %v1428_v62 }
 0x9cf   : > { %vm2833_vm13 = vcmp.eq.s32.totalorder %v6733_v48, %v7071_v43  ;;  %v2841_v61 = vand.u32 127, %v7071_v43  ;;  %v2723_v34 = vcvt.f32.s32 %v2722_v59  ;;  %v2755_v59 = vshll.u32 %v2754_v3, 16 }
 0x9d0   : > { %vm7085_vm5 = vmpackc.low %vm2833_vm13, %vm2833_vm13 }
 0x9d1   : > { %v2849_v48 = vsub.s32 69, %v2841_v61  ;;  %v7096_v0 = vadd.s32 %v2725_v30, %v2723_v34  ;;  %v2865_v36 = vsel %vm7085_vm5, %v4445_v1, 0  ;;  %v2769_v1 = vcvt.f32.s32 %v6973_v39 }
 0x9d2   : > { %v2752_v41 = vpop.xlane.xlu1 %2751  ;;  %v3704_v61 = vcvt.f32.s32 %v3703_v40  ;;  %vm3715_vm5 = vcmp.lt.s32.totalorder %v6918_v57, 0  ;;  %v2881_v34 = vunpack.c.l.b16 %v2865_v36  ;;  %v3716_v39 = vceil.f32 %v6918_v57 }
 0x9d3   : > { %v3328_v6 = vsel %vm3245_vm0, %v6737_v50, %v2849_v48  ;;  %v2753_v13 = vcvt.f32.s32 %v2752_v41  ;;  %vm2832_vm11 = vcmp.eq.s32.totalorder %v6760_v20, %v7096_v0  ;;  %v2840_v30 = vand.u32 127, %v7096_v0  ;;  %3005 = vrot.lane.b32.xlu1 %v1431_v25, %s4003_s24 }
 0x9d4   : > { %3336 = vst.msk [vmem:[%s7094_s27 + $0x8] sm:$0xff] %vm3254_vm1, %v3328_v6  ;;  %vm2856_vm13 = vmpackc.low %vm2832_vm11, %vm2832_vm11  ;;  %3015 = vrot.lane.b32.xlu2 %v1436_v63, %s4003_s24  ;;  %v3692_v50 = vfloor.f32 %v6649_v38  ;;  %v3717_v25 = vfloor.f32 %v6918_v57  ;;  %v2770_v63 = vshll.u32 %v2769_v1, 16  ;;  %v2818_v40 = vand.u32 65535, %v6940_v46 }
 0x9d5   : > { %v7117_v20 = vadd.s32 %v2755_v59, %v2753_v13  ;;  %v2848_v54 = vsub.s32 69, %v2840_v30  ;;  %v2864_v3 = vsel %vm2856_vm13, %v4420_v7, 0  ;;  %v7126_v59 = vpop.f32.mrf.mxu1  ;;  %v3568_v36 = vsel %vm3565_vm12, %v3566_v10, %v3567_v2  ;;  %v7958_v10 = vld [vmem:[#allocation5_spill] sm:$0xff] }
 0x9d6   : > { %v2880_v62 = vunpack.c.l.b16 %v2864_v3  ;;  %v2767_v27 = vpop.xlane.xlu2 %2766  ;;  %v1434_v30 = vor.u32 %v3679_v15, %v1426_v35  ;;  %v1684_v1 = vor.u32 %v3704_v61, %v1676_v18  ;;  %v3718_v46 = vsel %vm3715_vm5, %v3716_v39, %v3717_v25  ;;  %v7959_v15 = vld [vmem:[#allocation31_spill] sm:$0xff] }
 0x9d7   : > { %v2842_v48 = vand.u32 127, %v7117_v20  ;;  %v3327_v41 = vsel %vm3245_vm0, %v6751_v37, %v2848_v54  ;;  %v2768_v7 = vcvt.f32.s32 %v2767_v27  ;;  %v3693_v37 = vsel %vm3690_vm15, %v3691_v9, %v3692_v50 }
 0x9d8   : > { %v2888_v6 = vpack.c.b16 %v2881_v34, %v2880_v62  ;;  %3335 = vst.msk [vmem:[%s7094_s27] sm:$0xff] %vm3254_vm1, %v3327_v41  ;;  %vm2824_vm11 = vcmp.eq.f32.partialorder %v6950_v23, %v7049_v17  ;;  %v661_v2 = vand.u32 4294967168, %v7958_v10  ;;  %v3569_v38 = vcvt.f32.s32 %v3568_v36 }
 0x9d9   : > { %v2850_v13 = vsub.s32 69, %v2842_v48  ;;  %v7139_v16 = vadd.s32 %v2770_v63, %v2768_v7  ;;  %v2820_v57 = vcvt.s32.f32 %v2818_v40  ;;  %v1429_v18 = vand.u32 4294967168, %v7959_v15  ;;  %v7963_v48 = vld [vmem:[#allocation40_spill] sm:$0xff]  ;;  %v7967_v15 = vld [vmem:[#allocation39_spill] sm:$0xff] }
 0x9da   : > { %3524 = vmatmul.msk.bf16.vlgmr.msra.gmra.mxu1 %vm363_vm3, %v2888_v6  ;;  %v3694_v9 = vcvt.f32.s32 %v3693_v37  ;;  %vm2834_vm15 = vcmp.eq.s32.totalorder %v6779_v29, %v7117_v20  ;;  %v3719_v3 = vcvt.f32.s32 %v3718_v46  ;;  %v3731_v27 = vceil.f32 %v6944_v31  ;;  %v7971_v6 = vld [vmem:[#allocation24_spill] sm:$0xff] }
 0x9db   : > { %v3329_v12 = vsel %vm3245_vm0, %v6799_v44, %v2850_v13  ;;  %3011 = vrot.lane.b32.xlu1 %v1434_v30, %s4003_s24  ;;  %vm2835_vm12 = vcmp.eq.s32.totalorder %v6785_v60, %v7139_v16  ;;  %v2843_v35 = vand.u32 127, %v7139_v16  ;;  %v7960_v44 = vld [vmem:[#allocation47_spill] sm:$0xff]  ;;  %v2825_v34 = vsel %vm2824_vm11, %v2820_v57, -inf  ;;  %vm7183_vm11 = vmpackc.low %vm2834_vm15, %vm2834_vm15 }
 0x9dc   : > { %3337 = vst.msk [vmem:[%s7094_s27 + $0x10] sm:$0xff] %vm3254_vm1, %v3329_v12  ;;  %3029 = vrot.lane.b32.xlu2 %v1684_v1, %s4004_s28  ;;  %v3706_v50 = vceil.f32 %v7960_v44  ;;  %v3707_v54 = vfloor.f32 %v7960_v44  ;;  %vm7164_vm13 = vmpackc.low %vm2835_vm12, %vm2835_vm12  ;;  %vm3705_vm5 = vcmp.lt.s32.totalorder %v7960_v44, 0  ;;  %v3732_v39 = vfloor.f32 %v6944_v31  ;;  %v7966_v1 = vld [vmem:[#allocation73_spill] sm:$0xff] }
 0x9dd   : > { %v2851_v61 = vsub.s32 69, %v2843_v35  ;;  %v1679_v41 = vand.u32 4294967168, %v7963_v48  ;;  %v669_v63 = vor.u32 %v3569_v38, %v661_v2  ;;  %v2867_v31 = vsel %vm7164_vm13, %v7918_v11, 0  ;;  %v7192_v36 = vpop.f32.mrf.mxu1  ;;  %v7207_v35 = vpop.f32.mrf.mxu2  ;;  %v7970_v48 = vld [vmem:[#allocation11_spill] sm:$0xff] }
 0x9de   : > { %v2984_v60 = vpop.permute.xlu2 %2983  ;;  %v3708_v40 = vsel %vm3705_vm5, %v3706_v50, %v3707_v54  ;;  %v3733_v13 = vsel %vm3730_vm2, %v3731_v27, %v3732_v39  ;;  %v2866_v30 = vsel %vm7183_vm11, %v7915_v24, 0  ;;  %v2883_v37 = vunpack.c.l.b16 %v2867_v31  ;;  %v7969_v50 = vld [vmem:[#allocation43_spill] sm:$0xff] }
 0x9df   : > { %v7173_v25 = vsel %vm3182_vm8, %v6668_v26, %v2984_v60  ;;  %2826 = vmax.xlane.f32.xlu0 %v2825_v34  ;;  %v3330_v23 = vsel %vm3245_vm0, %v6743_v51, %v2851_v61  ;;  %v1437_v26 = vor.u32 %v3694_v9, %v1429_v18  ;;  %v1687_v29 = vor.u32 %v3719_v3, %v1679_v41  ;;  %v7968_v18 = vld [vmem:[#allocation56_spill] sm:$0xff] }
 0x9e0   : > { %3338 = vst.msk [vmem:[%s7094_s27 + $0x18] sm:$0xff] %vm3254_vm1, %v3330_v23  ;;  %vm3650_vm12 = vcmp.lt.s32.totalorder %v7966_v1, 0  ;;  %v3651_v11 = vceil.f32 %v7966_v1  ;;  %v3652_v46 = vfloor.f32 %v7966_v1  ;;  %v3709_v12 = vcvt.f32.s32 %v3708_v40  ;;  %v7973_v1 = vld [vmem:[#allocation49_spill] sm:$0xff] }
 0x9e1   : > { %v2968_v7 = vpop.permute.xlu0 %2967  ;;  %v3721_v10 = vceil.f32 %v6920_v42  ;;  %v3722_v2 = vfloor.f32 %v6920_v42  ;;  %v3734_v38 = vcvt.f32.s32 %v3733_v13  ;;  %v2882_v57 = vunpack.c.l.b16 %v2866_v30 }
 0x9e2   : > { %v7195_v51 = vsel %vm3173_vm10, %v669_v63, %v2968_v7  ;;  %v1677_v24 = vand.u32 4294967168, %v7967_v15  ;;  %vm3720_vm2 = vcmp.lt.s32.totalorder %v6920_v42, 0  ;;  %v3746_v9 = vceil.f32 %v7968_v18 }
 0x9e3   : > { %3017 = vrot.lane.b32.xlu1 %v1437_v26, %s4003_s24  ;;  %v3747_v44 = vfloor.f32 %v7968_v18  ;;  %v1682_v54 = vand.u32 4294967168, %v7969_v50  ;;  %vm3745_vm15 = vcmp.lt.s32.totalorder %v7968_v18, 0  ;;  %v2889_v3 = vpack.c.b16 %v2883_v37, %v2882_v57  ;;  %v7974_v18 = vld [vmem:[#allocation57_spill] sm:$0xff] }
 0x9e4   : > { %3035 = vrot.lane.b32.xlu2 %v1687_v29, %s4004_s28  ;;  %v1685_v61 = vor.u32 %v3709_v12, %v1677_v24  ;;  %v3653_v60 = vsel %vm3650_vm12, %v3651_v11, %v3652_v46  ;;  %v3723_v34 = vsel %vm3720_vm2, %v3721_v10, %v3722_v2  ;;  %v1176_v26 = vand.u32 4294967168, %v7971_v6  ;;  %v7972_v29 = vld [vmem:[#allocation41_spill] sm:$0xff] }
 0x9e5   : > { %v7217_v62 = vpop.f32.mrf.mxu1  ;;  %v1690_v42 = vor.u32 %v3734_v38, %v1682_v54  ;;  %v3748_v39 = vsel %vm3745_vm15, %v3746_v9, %v3747_v44  ;;  %v3654_v23 = vcvt.f32.s32 %v3653_v60  ;;  %v3724_v63 = vcvt.f32.s32 %v3723_v34  ;;  %v7235_v46 = vpop.f32.mrf.mxu2  ;;  %v7975_v54 = vld [vmem:[#allocation44_spill] sm:$0xff]  ;;  %v7976_v34 = vld [vmem:[#allocation51_spill] sm:$0xff]  ;;  %v7977_v6 = vld [vmem:[#allocation37_spill] sm:$0xff] }
 0x9e6   : > { %v3736_v7 = vceil.f32 %v6955_v45  ;;  %v3737_v31 = vfloor.f32 %v6955_v45  ;;  %v3749_v40 = vcvt.f32.s32 %v3748_v39  ;;  %v1680_v13 = vand.u32 4294967168, %v7972_v29 }
 0x9e7   : > { %vm3735_vm13 = vcmp.lt.s32.totalorder %v6955_v45, 0  ;;  %v3761_v30 = vceil.f32 %v7126_v59  ;;  %v3762_v37 = vfloor.f32 %v7126_v59  ;;  %v1930_v11 = vand.u32 4294967168, %v7973_v1 }
 0x9e8   : > { %vm3760_vm5 = vcmp.lt.s32.totalorder %v7126_v59, 0  ;;  %v1688_v12 = vor.u32 %v3724_v63, %v1680_v13  ;;  %v1184_v10 = vor.u32 %v3654_v23, %v1176_v26  ;;  %v3738_v2 = vsel %vm3735_vm13, %v3736_v7, %v3737_v31  ;;  %v7978_v26 = vld [vmem:[#allocation29_spill] sm:$0xff] }
 0x9e9   : > { %v1938_v38 = vor.u32 %v3749_v40, %v1930_v11  ;;  %v3763_v57 = vsel %vm3760_vm5, %v3761_v30, %v3762_v37  ;;  %vm3680_vm11 = vcmp.lt.s32.totalorder %v6612_v14, 0  ;;  %v3681_v15 = vceil.f32 %v6612_v14  ;;  %v7979_v11 = vld [vmem:[#allocation50_spill] sm:$0xff] }
 0x9ea   : > { %v2966_v27 = vpop.permute.xlu1 %2965  ;;  %3525 = vmatmul.msk.bf16.gmra.mxu1 %vm363_vm3, %v2889_v3  ;;  %v3739_v59 = vcvt.f32.s32 %v3738_v2  ;;  %v3682_v24 = vfloor.f32 %v6612_v14  ;;  %v3751_v9 = vceil.f32 %v7974_v18  ;;  %v3752_v44 = vfloor.f32 %v7974_v18 }
 0x9eb   : > { %v7222_v41 = vsel %vm3173_vm10, %v7970_v48, %v2966_v27  ;;  %3031 = vrot.lane.b32.xlu1 %v1685_v61, %s4004_s28  ;;  %v3764_v50 = vcvt.f32.s32 %v3763_v57  ;;  %v1683_v3 = vand.u32 4294967168, %v7975_v54  ;;  %vm3750_vm12 = vcmp.lt.s32.totalorder %v7974_v18, 0 }
 0x9ec   : > { %3041 = vrot.lane.b32.xlu2 %v1690_v42, %s4004_s28  ;;  %v1933_v27 = vand.u32 4294967168, %v7976_v34  ;;  %v3683_v39 = vsel %vm3680_vm11, %v3681_v15, %v3682_v24  ;;  %v3753_v48 = vsel %vm3750_vm12, %v3751_v9, %v3752_v44  ;;  %v1427_v7 = vand.u32 4294967168, %v7978_v26 }
 0x9ed   : > { %v1918_v45 = vpop.f32.mrf.mxu1  ;;  %v1691_v42 = vor.u32 %v3739_v59, %v1683_v3  ;;  %v7248_v23 = vpop.f32.mrf.mxu2  ;;  %v3684_v31 = vcvt.f32.s32 %v3683_v39  ;;  %vm3695_vm15 = vcmp.lt.s32.totalorder %v6663_v47, 0  ;;  %v3696_v40 = vceil.f32 %v6663_v47 }
 0x9ee   : > { %v3776_v61 = vceil.f32 %v1918_v45  ;;  %v3777_v60 = vfloor.f32 %v1918_v45  ;;  %vm3775_vm2 = vcmp.lt.s32.totalorder %v1918_v45, 0  ;;  %v1941_v14 = vor.u32 %v3764_v50, %v1933_v27  ;;  %v7266_v45 = vpop.f32.mrf.mxu3  ;;  %v7983_v27 = vld [vmem:[#allocation52_spill] sm:$0xff] }
 0x9ef   : > { %v3754_v29 = vcvt.f32.s32 %v3753_v48  ;;  %v3697_v13 = vfloor.f32 %v6663_v47  ;;  %v3766_v30 = vceil.f32 %v7192_v36  ;;  %v3767_v37 = vfloor.f32 %v7192_v36 }
 0x9f0   : > { %v3778_v63 = vsel %vm3775_vm2, %v3776_v61, %v3777_v60  ;;  %vm3765_vm13 = vcmp.lt.s32.totalorder %v7192_v36, 0  ;;  %v3792_v2 = vfloor.f32 %v7207_v35  ;;  %vm3790_vm5 = vcmp.lt.s32.totalorder %v7207_v35, 0  ;;  %v7982_v60 = vld [vmem:[#allocation33_spill] sm:$0xff] }
 0x9f1   : > { %v3779_v1 = vcvt.f32.s32 %v3778_v63  ;;  %v1435_v59 = vor.u32 %v3684_v31, %v1427_v7  ;;  %v3698_v24 = vsel %vm3695_vm15, %v3696_v40, %v3697_v13  ;;  %v3768_v18 = vsel %vm3765_vm13, %v3766_v30, %v3767_v37  ;;  %v7985_v13 = vld [vmem:[#allocation45_spill] sm:$0xff] }
 0x9f2   : > { %v3699_v50 = vcvt.f32.s32 %v3698_v24  ;;  %v3769_v54 = vcvt.f32.s32 %v3768_v18  ;;  %v1430_v34 = vand.u32 4294967168, %v7982_v60  ;;  %v2784_v26 = vcvt.f32.s32 %v6998_v22 }
 0x9f3   : > { %3037 = vrot.lane.b32.xlu1 %v1688_v12, %s4004_s28  ;;  %2993 = vrot.lane.b32.xlu0 %v1184_v10, %s4002_s23  ;;  %v1931_v12 = vand.u32 4294967168, %v7979_v11  ;;  %v3791_v10 = vceil.f32 %v7207_v35  ;;  %v7981_v35 = vld [vmem:[#allocation75_spill] sm:$0xff]  ;;  %vm3555_vm2 = vcmp.lt.s32.totalorder %v7985_v13, 0  ;;  %v3556_v30 = vceil.f32 %v7985_v13 }
 0x9f4   : > { %3055 = vrot.lane.b32.xlu2 %v1938_v38, %s4005_s29  ;;  %v7980_v38 = vld [vmem:[#allocation54_spill] sm:$0xff]  ;;  %v3781_v3 = vceil.f32 %v7981_v35  ;;  %v3782_v61 = vfloor.f32 %v7981_v35  ;;  %vm3780_vm11 = vcmp.lt.s32.totalorder %v7981_v35, 0  ;;  %v1438_v31 = vor.u32 %v3699_v50, %v1430_v34  ;;  %v7987_v35 = vld [vmem:[#allocation63_spill] sm:$0xff] }
 0x9f5   : > { %v1936_v57 = vand.u32 4294967168, %v7980_v38  ;;  %v1939_v15 = vor.u32 %v3754_v29, %v1931_v12  ;;  %v3793_v44 = vsel %vm3790_vm5, %v3791_v10, %v3792_v2  ;;  %v2166_v36 = vpop.f32.mrf.mxu2  ;;  %v3557_v37 = vfloor.f32 %v7985_v13 }
 0x9f6   : > { %v3794_v47 = vcvt.f32.s32 %v3793_v44  ;;  %v3806_v39 = vceil.f32 %v2166_v36  ;;  %v3807_v48 = vfloor.f32 %v2166_v36  ;;  %vm3805_vm12 = vcmp.lt.s32.totalorder %v2166_v36, 0  ;;  %v7280_v40 = vpop.f32.mrf.mxu3 }
 0x9f7   : > { %v1944_v9 = vor.u32 %v3779_v1, %v1936_v57  ;;  %vm3725_vm15 = vcmp.lt.s32.totalorder %v6923_v53, 0  ;;  %v3726_v22 = vceil.f32 %v6923_v53  ;;  %v3727_v11 = vfloor.f32 %v6923_v53  ;;  %v7988_v53 = vld [vmem:[#allocation48_spill] sm:$0xff] }
 0x9f8   : > { %v3808_v1 = vsel %vm3805_vm12, %v3806_v39, %v3807_v48  ;;  %v3796_v2 = vceil.f32 %v7235_v46  ;;  %v3797_v38 = vfloor.f32 %v7235_v46  ;;  %v2785_v57 = vshll.u32 %v2784_v26, 16 }
 0x9f9   : > { %vm3795_vm13 = vcmp.lt.s32.totalorder %v7235_v46, 0  ;;  %v3821_v24 = vceil.f32 %v6675_v52  ;;  %v3822_v18 = vfloor.f32 %v6675_v52  ;;  %vm3820_vm5 = vcmp.lt.s32.totalorder %v6675_v52, 0 }
 0x9fa   : > { %v7302_v50 = vsel %vm3555_vm2, %v3556_v30, %v3557_v37  ;;  %v2187_v46 = vand.u32 4294967168, %v7987_v35  ;;  %v2814_v26 = vcvt.f32.s32 %v7006_v21  ;;  %v3836_v13 = vceil.f32 %v7266_v45  ;;  %v7989_v21 = vld [vmem:[#allocation42_spill] sm:$0xff] }
 0x9fb   : > { %3043 = vrot.lane.b32.xlu1 %v1691_v42, %s4004_s28  ;;  %3007 = vrot.lane.b32.xlu0 %v7977_v6, %s4003_s24  ;;  %v1934_v42 = vand.u32 4294967168, %v7983_v27  ;;  %v3783_v6 = vsel %vm3780_vm11, %v3781_v3, %v3782_v61  ;;  %v3798_v3 = vsel %vm3795_vm13, %v3796_v2, %v3797_v38  ;;  %v3823_v34 = vsel %vm3820_vm5, %v3821_v24, %v3822_v18 }
 0x9fc   : > { %3061 = vrot.lane.b32.xlu2 %v1941_v14, %s4005_s29  ;;  %v7984_v14 = vld [vmem:[#allocation61_spill] sm:$0xff]  ;;  %v3784_v12 = vcvt.f32.s32 %v3783_v6  ;;  %v2799_v27 = vcvt.f32.s32 %v7001_v28  ;;  %v3837_v30 = vfloor.f32 %v7266_v45  ;;  %vm3835_vm2 = vcmp.lt.s32.totalorder %v7266_v45, 0 }
 0x9fd   : > { %v2184_v63 = vand.u32 4294967168, %v7984_v14  ;;  %v1942_v7 = vor.u32 %v3769_v54, %v1934_v42  ;;  %v3728_v54 = vsel %vm3725_vm15, %v3726_v22, %v3727_v11  ;;  %v2169_v61 = vpop.f32.mrf.mxu2  ;;  %v3559_v42 = vcvt.f32.s32 %v7302_v50  ;;  %v7990_v11 = vld [vmem:[#allocation60_spill] sm:$0xff] }
 0x9fe   : > { %v3729_v39 = vcvt.f32.s32 %v3728_v54  ;;  %v3799_v14 = vcvt.f32.s32 %v3798_v3  ;;  %vm3810_vm11 = vcmp.lt.s32.totalorder %v2169_v61, 0  ;;  %v7313_v6 = vpop.f32.mrf.mxu3  ;;  %v3812_v28 = vfloor.f32 %v2169_v61 }
 0x9ff   : > { %v2192_v29 = vor.u32 %v3794_v47, %v2184_v63  ;;  %v3811_v63 = vceil.f32 %v2169_v61  ;;  %v2800_v37 = vshll.u32 %v2799_v27, 16  ;;  %v1681_v22 = vand.u32 4294967168, %v7989_v21  ;;  %v7996_v27 = vld [vmem:[#allocation79_spill] sm:$0xff] }
 0xa01   : > { %v1689_v54 = vor.u32 %v3729_v39, %v1681_v22 }
 0xa03   : > { %3057 = vrot.lane.b32.xlu1 %v1939_v15, %s4005_s29  ;;  %3013 = vrot.lane.b32.xlu0 %v1435_v59, %s4003_s24  ;;  %v3809_v59 = vcvt.f32.s32 %v3808_v1 }
 0xa04   : > { %3067 = vrot.lane.b32.xlu2 %v1944_v9, %s4005_s29  ;;  %v7986_v9 = vld [vmem:[#allocation59_spill] sm:$0xff] }
 0xa05   : > { %v2182_v44 = vand.u32 4294967168, %v7986_v9  ;;  %v2195_v52 = vor.u32 %v3809_v59, %v2187_v46  ;;  %v7330_v59 = vpop.f32.mrf.mxu0  ;;  %v3838_v46 = vsel %vm3835_vm2, %v3836_v13, %v3837_v30 }
 0xa07   : > { %v2190_v60 = vor.u32 %v3784_v12, %v2182_v44  ;;  %v2185_v12 = vand.u32 4294967168, %v7990_v11  ;;  %v3813_v44 = vsel %vm3810_vm11, %v3811_v63, %v3812_v28  ;;  %vm3825_vm11 = vcmp.lt.s32.totalorder %v6682_v4, 0 }
 0xa08   : > { %v3814_v39 = vcvt.f32.s32 %v3813_v44  ;;  %v3826_v63 = vceil.f32 %v6682_v4  ;;  %v3839_v28 = vcvt.f32.s32 %v3838_v46  ;;  %v8003_v44 = vld [vmem:[#allocation2_spill] sm:$0xff] }
 0xa09   : > { %v2193_v45 = vor.u32 %v3799_v14, %v2185_v12 }
 0xa0b   : > { %3063 = vrot.lane.b32.xlu1 %v1942_v7, %s4005_s29  ;;  %3019 = vrot.lane.b32.xlu0 %v1438_v31, %s4003_s24  ;;  %v3824_v7 = vcvt.f32.s32 %v3823_v34 }
 0xa0c   : > { %3081 = vrot.lane.b32.xlu2 %v2192_v29, %s4006_s30  ;;  %v2782_v10 = vpop.xlane.xlu0 %2781 }
 0xa0d   : > { %v2783_v15 = vcvt.f32.s32 %v2782_v10  ;;  %v7991_v10 = vld [vmem:[#allocation77_spill] sm:$0xff] }
 0xa0e   : > { %v2435_v2 = vand.u32 4294967168, %v7991_v10 }
 0xa0f   : > { %v7298_v36 = vadd.s32 %v2785_v57, %v2783_v15  ;;  %v7992_v57 = vld [vmem:[#allocation65_spill] sm:$0xff]  ;;  %v2815_v15 = vshll.u32 %v2814_v26, 16  ;;  %v3827_v26 = vfloor.f32 %v6682_v4  ;;  %v3771_v4 = vceil.f32 %v7217_v62 }
 0xa10   : > { %v2443_v35 = vor.u32 %v3824_v7, %v2435_v2  ;;  %v7999_v7 = vld [vmem:[#allocation3_spill] sm:$0xff]  ;;  %v8002_v2 = vld [vmem:[#allocation93_spill] sm:$0xff]  ;;  %vm3575_vm2 = vcmp.lt.s32.totalorder %v7992_v57, 0 }
 0xa11   : > { %v2844_v47 = vand.u32 127, %v7298_v36  ;;  %vm2836_vm12 = vcmp.eq.s32.totalorder %v6811_v55, %v7298_v36  ;;  %v3577_v55 = vfloor.f32 %v7992_v57 }
 0xa12   : > { %vm7338_vm15 = vmpackc.low %vm2836_vm12, %vm2836_vm12 }
 0xa13   : > { %v2852_v48 = vsub.s32 69, %v2844_v47  ;;  %3077 = vrot.lane.b32.xlu1 %v2190_v60, %s4006_s30  ;;  %3033 = vrot.lane.b32.xlu0 %v7988_v53, %s4004_s28  ;;  %v7995_v60 = vld [vmem:[#allocation64_spill] sm:$0xff] }
 0xa14   : > { %3087 = vrot.lane.b32.xlu2 %v2195_v52, %s4006_s30  ;;  %v2188_v34 = vand.u32 4294967168, %v7995_v60  ;;  %v2438_v52 = vand.u32 4294967168, %v7996_v27 }
 0xa15   : > { %v3331_v31 = vsel %vm3245_vm0, %v6839_v56, %v2852_v48  ;;  %v2797_v29 = vpop.xlane.xlu1 %2796  ;;  %v3576_v56 = vceil.f32 %v7992_v57  ;;  %v2422_v48 = vpop.f32.mrf.mxu3 }
 0xa16   : > { %3339 = vst.msk [vmem:[%s7094_s27 + $0x20] sm:$0xff] %vm3254_vm1, %v3331_v31  ;;  %v2798_v1 = vcvt.f32.s32 %v2797_v29  ;;  %vm3850_vm12 = vcmp.lt.s32.totalorder %v2422_v48, 0  ;;  %v3851_v22 = vceil.f32 %v2422_v48  ;;  %v3852_v11 = vfloor.f32 %v2422_v48 }
 0xa17   : > { %v2812_v38 = vpop.xlane.xlu2 %2811  ;;  %v2196_v9 = vor.u32 %v3814_v39, %v2188_v34  ;;  %v2446_v46 = vor.u32 %v3839_v28, %v2438_v52  ;;  %v3578_v57 = vsel %vm3575_vm2, %v3576_v56, %v3577_v55  ;;  %v3772_v34 = vfloor.f32 %v7217_v62  ;;  %v8005_v52 = vld [vmem:[#allocation78_spill] sm:$0xff]  ;;  %v8006_v56 = vld [vmem:[#allocation85_spill] sm:$0xff] }
 0xa18   : > { %v7332_v24 = vadd.s32 %v2800_v37, %v2798_v1  ;;  %v2813_v18 = vcvt.f32.s32 %v2812_v38  ;;  %v8000_v37 = vld [vmem:[#allocation87_spill] sm:$0xff]  ;;  %v8001_v1 = vld [vmem:[#allocation9_spill] sm:$0xff]  ;;  %v2436_v61 = vand.u32 4294967168, %v8005_v52  ;;  %v3842_v39 = vfloor.f32 %v7280_v40 }
 0xa19   : > { %v3174_v21 = vsel %vm3173_vm10, %v8001_v1, %v8000_v37  ;;  %v3867_v55 = vfloor.f32 %v6982_v8  ;;  %vm3800_vm2 = vcmp.lt.s32.totalorder %v7248_v23, 0 }
 0xa1a   : > { %vm2837_vm13 = vcmp.eq.s32.totalorder %v6866_v33, %v7332_v24  ;;  %v2845_v3 = vand.u32 127, %v7332_v24  ;;  %v7346_v47 = vadd.s32 %v2815_v15, %v2813_v18  ;;  %v2868_v33 = vsel %vm7338_vm15, %v4515_v5, 0 }
 0xa1b   : > { %3083 = vrot.lane.b32.xlu1 %v2193_v45, %s4006_s30  ;;  %3039 = vrot.lane.b32.xlu0 %v1689_v54, %s4004_s28  ;;  %vm7353_vm5 = vmpackc.low %vm2837_vm13, %vm2837_vm13  ;;  %v2884_v13 = vunpack.c.l.b16 %v2868_v33  ;;  %v659_v45 = vand.u32 4294967168, %v8003_v44  ;;  %v3828_v54 = vsel %vm3825_vm11, %v3826_v63, %v3827_v26  ;;  %vm3770_vm15 = vcmp.lt.s32.totalorder %v7217_v62, 0  ;;  %v8007_v26 = vld [vmem:[#allocation82_spill] sm:$0xff] }
 0xa1c   : > { %v2853_v53 = vsub.s32 69, %v2845_v3  ;;  %v2846_v14 = vand.u32 127, %v7346_v47  ;;  %3101 = vrot.lane.b32.xlu2 %v2443_v35, %s4007_s4  ;;  %v2869_v5 = vsel %vm7353_vm5, %v4538_v19, 0  ;;  %v7390_v35 = vpop.f32.mrf.mxu0  ;;  %v8004_v3 = vld [vmem:[#allocation55_spill] sm:$0xff]  ;;  %v3829_v27 = vcvt.f32.s32 %v3828_v54 }
 0xa1d   : > { %v2885_v30 = vunpack.c.l.b16 %v2869_v5  ;;  %v667_v60 = vor.u32 %v3559_v42, %v659_v45  ;;  %v3841_v33 = vceil.f32 %v7280_v40  ;;  %vm3840_vm13 = vcmp.lt.s32.totalorder %v7280_v40, 0  ;;  %v2424_v1 = vpop.f32.mrf.mxu3 }
 0xa1e   : > { %v3332_v31 = vsel %vm3245_vm0, %v7999_v7, %v2853_v53  ;;  %v2854_v29 = vsub.s32 69, %v2846_v14  ;;  %v3866_v42 = vceil.f32 %v6982_v8  ;;  %v3579_v63 = vcvt.f32.s32 %v3578_v57 }
 0xa1f   : > { %3340 = vst.msk [vmem:[%s7094_s27 + $0x28] sm:$0xff] %vm3254_vm1, %v3332_v31  ;;  %v2990_v12 = vpop.permute.xlu2 %2989  ;;  %v2982_v10 = vpop.permute.xlu0 %2981  ;;  %v2890_v38 = vpack.c.b16 %v2885_v30, %v2884_v13  ;;  %v3177_v50 = vsel %vm3173_vm10, %v667_v60, %v8006_v56  ;;  %v2441_v28 = vand.u32 4294967168, %v8007_v26  ;;  %vm3865_vm5 = vcmp.lt.s32.totalorder %v6982_v8, 0  ;;  %v8008_v13 = vld [vmem:[#allocation8_spill] sm:$0xff] }
 0xa20   : > { %v3333_v19 = vsel %vm3245_vm0, %v8002_v2, %v2854_v29  ;;  %v7379_v15 = vsel %vm3182_vm8, %v7222_v41, %v2990_v12  ;;  %v7382_v18 = vsel %vm3182_vm8, %v3174_v21, %v2982_v10  ;;  %v3853_v41 = vsel %vm3850_vm12, %v3851_v22, %v3852_v11  ;;  %v8009_v22 = vld [vmem:[#allocation58_spill] sm:$0xff]  ;;  %v8010_v11 = vld [vmem:[#allocation53_spill] sm:$0xff]  ;;  %v8011_v10 = vld [vmem:[#allocation80_spill] sm:$0xff] }
 0xa21   : > { %3341 = vst.msk [vmem:[%s7094_s27 + $0x30] sm:$0xff] %vm3254_vm1, %v3333_v19  ;;  %3526 = vmatmul.msk.bf16.gmra.mxu1 %vm363_vm3, %v2890_v38  ;;  %v3854_v48 = vcvt.f32.s32 %v3853_v41  ;;  %v2444_v7 = vor.u32 %v3829_v27, %v2436_v61  ;;  %v3773_v31 = vsel %vm3770_vm15, %v3771_v4, %v3772_v34  ;;  %v3843_v29 = vsel %vm3840_vm13, %v3841_v33, %v3842_v39  ;;  %v8012_v60 = vld [vmem:[#allocation88_spill] sm:$0xff] }
 0xa22   : > { %v663_v30 = vand.u32 4294967168, %v8008_v13  ;;  %v3868_v21 = vsel %vm3865_vm5, %v3866_v42, %v3867_v55  ;;  %v1935_v12 = vand.u32 4294967168, %v8010_v11  ;;  %v3774_v62 = vcvt.f32.s32 %v3773_v31  ;;  %v8014_v42 = vld [vmem:[#allocation86_spill] sm:$0xff]  ;;  %v2171_v11 = vpop.f32.mrf.mxu2 }
 0xa23   : > { %3089 = vrot.lane.b32.xlu1 %v2196_v9, %s4006_s30  ;;  %3053 = vrot.lane.b32.xlu0 %v8004_v3, %s4005_s29  ;;  %v2449_v37 = vor.u32 %v3854_v48, %v2441_v28  ;;  %v2439_v2 = vand.u32 4294967168, %v8011_v10  ;;  %v3844_v19 = vcvt.f32.s32 %v3843_v29  ;;  %v3856_v9 = vceil.f32 %v2424_v1  ;;  %v8015_v55 = vld [vmem:[#allocation10_spill] sm:$0xff] }
 0xa24   : > { %3107 = vrot.lane.b32.xlu2 %v2446_v46, %s4007_s4  ;;  %v7418_v40 = vpop.f32.mrf.mxu0  ;;  %v671_v8 = vor.u32 %v3579_v63, %v663_v30  ;;  %v3857_v44 = vfloor.f32 %v2424_v1  ;;  %v3869_v45 = vcvt.f32.s32 %v3868_v21  ;;  %vm3855_vm11 = vcmp.lt.s32.totalorder %v2424_v1, 0  ;;  %v8016_v1 = vld [vmem:[#allocation90_spill] sm:$0xff] }
 0xa25   : > { %v3881_v46 = vceil.f32 %v7330_v59  ;;  %v3882_v41 = vfloor.f32 %v7330_v59  ;;  %v2689_v4 = vand.u32 4294967168, %v8012_v60  ;;  %vm3880_vm12 = vcmp.lt.s32.totalorder %v7330_v59, 0  ;;  %v8013_v59 = vld [vmem:[#allocation83_spill] sm:$0xff]  ;;  %v8019_v60 = vld [vmem:[#allocation89_spill] sm:$0xff] }
 0xa26   : > { %v2447_v34 = vor.u32 %v3844_v19, %v2439_v2  ;;  %v1943_v27 = vor.u32 %v3774_v62, %v1935_v12  ;;  %v3858_v52 = vsel %vm3855_vm11, %v3856_v9, %v3857_v44  ;;  %v3801_v39 = vceil.f32 %v7248_v23  ;;  %v8018_v2 = vld [vmem:[#allocation62_spill] sm:$0xff] }
 0xa27   : > { %v2996_v53 = vpop.permute.xlu2 %2995  ;;  %v2988_v14 = vpop.permute.xlu0 %2987  ;;  %v2697_v61 = vor.u32 %v3869_v45, %v2689_v4  ;;  %v3883_v33 = vsel %vm3880_vm12, %v3881_v46, %v3882_v41  ;;  %v3802_v56 = vfloor.f32 %v7248_v23  ;;  %v3871_v26 = vceil.f32 %v6985_v49 }
 0xa28   : > { %v7414_v5 = vsel %vm3182_vm8, %v3177_v50, %v2988_v14  ;;  %v2442_v50 = vand.u32 4294967168, %v8013_v59  ;;  %v3859_v14 = vcvt.f32.s32 %v3858_v52  ;;  %v3872_v28 = vfloor.f32 %v6985_v49 }
 0xa29   : > { %vm3870_vm15 = vcmp.lt.s32.totalorder %v6985_v49, 0  ;;  %v2692_v21 = vand.u32 4294967168, %v8016_v1  ;;  %v8017_v49 = vld [vmem:[#allocation76_spill] sm:$0xff]  ;;  %v2186_v19 = vand.u32 4294967168, %v8018_v2  ;;  %v3816_v9 = vceil.f32 %v2171_v11 }
 0xa2a   : > { %v3873_v12 = vsel %vm3870_vm15, %v3871_v26, %v3872_v28  ;;  %v3817_v44 = vfloor.f32 %v2171_v11  ;;  %v3886_v23 = vceil.f32 %v7390_v35  ;;  %v3887_v46 = vfloor.f32 %v7390_v35 }
 0xa2b   : > { %3103 = vrot.lane.b32.xlu1 %v2444_v7, %s4007_s4  ;;  %3059 = vrot.lane.b32.xlu0 %v8009_v22, %s4005_s29  ;;  %v3884_v7 = vcvt.f32.s32 %v3883_v33  ;;  %v2450_v22 = vor.u32 %v3859_v14, %v2442_v50  ;;  %v3874_v45 = vcvt.f32.s32 %v3873_v12  ;;  %vm3815_vm5 = vcmp.lt.s32.totalorder %v2171_v11, 0 }
 0xa2c   : > { %3113 = vrot.lane.b32.xlu2 %v2449_v37, %s4007_s4  ;;  %v2677_v48 = vpop.f32.mrf.mxu0  ;;  %v2690_v4 = vand.u32 4294967168, %v8019_v60  ;;  %vm3885_vm11 = vcmp.lt.s32.totalorder %v7390_v35, 0  ;;  %v2695_v52 = vand.u32 4294967168, %v6929_v32  ;;  %v8021_v32 = vld [vmem:[#allocation91_spill] sm:$0xff]  ;;  %vm3845_vm12 = vcmp.lt.s32.totalorder %v7313_v6, 0 }
 0xa2d   : > { %v2972_v38 = vpop.permute.xlu1 %2971  ;;  %v3896_v29 = vceil.f32 %v2677_v48  ;;  %v3897_v13 = vfloor.f32 %v2677_v48  ;;  %vm3895_vm13 = vcmp.lt.s32.totalorder %v2677_v48, 0  ;;  %v2700_v62 = vor.u32 %v3884_v7, %v2692_v21  ;;  %v8022_v21 = vld [vmem:[#allocation92_spill] sm:$0xff] }
 0xa2e   : > { %v3181_v54 = vsel %vm3173_vm10, %v671_v8, %v2972_v38  ;;  %v3803_v8 = vsel %vm3800_vm2, %v3801_v39, %v3802_v56  ;;  %v3818_v39 = vsel %vm3815_vm5, %v3816_v9, %v3817_v44  ;;  %v3888_v48 = vsel %vm3885_vm11, %v3886_v23, %v3887_v46  ;;  %v8028_v44 = vld [vmem:[#allocation6_spill] sm:$0xff] }
 0xa2f   : > { %v3010_v3 = vpop.permute.xlu2 %3009  ;;  %v7431_v57 = vsel %vm3182_vm8, %v3181_v54, %v2996_v53  ;;  %v3176_v53 = vsel %vm3173_vm10, %v8015_v55, %v8014_v42  ;;  %v3898_v10 = vsel %vm3895_vm13, %v3896_v29, %v3897_v13  ;;  %v3804_v38 = vcvt.f32.s32 %v3803_v8  ;;  %v8020_v42 = vld [vmem:[#allocation71_spill] sm:$0xff] }
 0xa30   : > { %v3899_v41 = vcvt.f32.s32 %v3898_v10  ;;  %v3889_v59 = vcvt.f32.s32 %v3888_v48  ;;  %v2189_v55 = vand.u32 4294967168, %v8020_v42  ;;  %v3847_v29 = vfloor.f32 %v7313_v6  ;;  %v8031_v42 = vld [vmem:[#allocation32_spill] sm:$0xff] }
 0xa31   : > { %v2194_v33 = vor.u32 %v3804_v38, %v2186_v19  ;;  %v2829_v13 = vcvt.f32.s32 %v7049_v17  ;;  %vm2838_vm2 = vcmp.eq.s32.totalorder %v8022_v21, %v7346_v47  ;;  %v8027_v19 = vld [vmem:[#allocation34_spill] sm:$0xff] }
 0xa32   : > { %v2703_v56 = vor.u32 %v3899_v41, %v2695_v52  ;;  %vm7495_vm15 = vmpackc.low %vm2838_vm2, %vm2838_vm2 }
 0xa33   : > { %3109 = vrot.lane.b32.xlu1 %v2447_v34, %s4007_s4  ;;  %3065 = vrot.lane.b32.xlu0 %v1943_v27, %s4005_s29  ;;  %v2830_v11 = vshll.u32 %v2829_v13, 16 }
 0xa34   : > { %3127 = vrot.lane.b32.xlu2 %v2697_v61, %s4008_s5  ;;  %v2698_v61 = vor.u32 %v3874_v45, %v2690_v4  ;;  %v2870_v45 = vsel %vm7495_vm15, %v8028_v44, 0  ;;  %vm8035_vm15 = vcmask 64512  }
 0xa35   : > { %v2986_v63 = vpop.permute.xlu1 %2985  ;;  %v2886_v52 = vunpack.c.l.b16 %v2870_v45 }
 0xa36   : > { %v3185_v31 = vsel %vm3182_vm8, %v3176_v53, %v2986_v63  ;;  %v2693_v53 = vand.u32 4294967168, %v8021_v32 }
 0xa37   : > { %v3016_v30 = vpop.permute.xlu2 %3015  ;;  %v7450_v37 = vsel %vm3191_vm6, %v3185_v31, %v3010_v3  ;;  %v3846_v31 = vceil.f32 %v7313_v6 }
 0xa38   : > { %v2701_v28 = vor.u32 %v3889_v59, %v2693_v53 }
 0xa3b   : > { %3115 = vrot.lane.b32.xlu1 %v2450_v22, %s4007_s4  ;;  %3079 = vrot.lane.b32.xlu0 %v8017_v49, %s4006_s30  ;;  %v3848_v22 = vsel %vm3845_vm12, %v3846_v31, %v3847_v29  ;;  %v8026_v49 = vld [vmem:[#allocation81_spill] sm:$0xff] }
 0xa3c   : > { %3133 = vrot.lane.b32.xlu2 %v2700_v62, %s4008_s5  ;;  %v8023_v62 = vld [vmem:[#allocation84_spill] sm:$0xff]  ;;  %v3849_v6 = vcvt.f32.s32 %v3848_v22  ;;  %v2440_v2 = vand.u32 4294967168, %v8026_v49 }
 0xa3d   : > { %v2992_v54 = vpop.permute.xlu1 %2991 }
 0xa3e   : > { %v3188_v3 = vsel %vm3182_vm8, %v7195_v51, %v2992_v54  ;;  %v3819_v51 = vcvt.f32.s32 %v3818_v39  ;;  %v2448_v41 = vor.u32 %v3849_v6, %v2440_v2  ;;  %v8030_v39 = vld [vmem:[#allocation15_spill] sm:$0xff] }
 0xa3f   : > { %v3030_v34 = vpop.permute.xlu2 %3029  ;;  %v7467_v27 = vsel %vm3191_vm6, %v3188_v3, %v3016_v30  ;;  %v8029_v3 = vld [vmem:[#allocation7_spill] sm:$0xff] }
 0xa40   : > { %v2197_v26 = vor.u32 %v3819_v51, %v2189_v55  ;;  %v8032_v55 = vld [vmem:[#allocation14_spill] sm:$0xff] }
 0xa41   : > { %v3180_v32 = vsel %vm3173_vm10, %v8032_v55, %v7078_v58 }
 0xa43   : > { %3129 = vrot.lane.b32.xlu1 %v2698_v61, %s4008_s5  ;;  %3085 = vrot.lane.b32.xlu0 %v2194_v33, %s4006_s30  ;;  %v2941_v33 = vand.u32 4294967168, %v7096_v0 }
 0xa44   : > { %3139 = vrot.lane.b32.xlu2 %v2703_v56, %s4008_s5 }
 0xa45   : > { %v3006_v35 = vpop.permute.xlu1 %3005 }
 0xa46   : > { %v3192_v50 = vsel %vm3191_vm6, %v7382_v18, %v3006_v35 }
 0xa47   : > { %v3036_v14 = vpop.permute.xlu2 %3035  ;;  %v7478_v63 = vsel %vm3200_vm9, %v3192_v50, %v3030_v34 }
 0xa4b   : > { %3135 = vrot.lane.b32.xlu1 %v2701_v28, %s4008_s5  ;;  %3091 = vrot.lane.b32.xlu0 %v2197_v26, %s4006_s30  ;;  %v3891_v26 = vceil.f32 %v7418_v40  ;;  %v3892_v28 = vfloor.f32 %v7418_v40 }
 0xa4d   : > { %v3012_v7 = vpop.permute.xlu1 %3011 }
 0xa4e   : > { %v3195_v18 = vsel %vm3191_vm6, %v7414_v5, %v3012_v7 }
 0xa4f   : > { %v7489_v30 = vsel %vm3200_vm9, %v3195_v18, %v3036_v14  ;;  %v3042_v1 = vpop.permute.xlu2 %3041 }
 0xa52   : > { %v2827_v8 = vpop.xlane.xlu0 %2826 }
 0xa53   : > { %v2828_v12 = vcvt.f32.s32 %v2827_v8  ;;  %3105 = vrot.lane.b32.xlu0 %v8023_v62, %s4007_s4  ;;  %v2943_v8 = vand.u32 4294967168, %v7117_v20 }
 0xa55   : > { %v3018_v17 = vpop.permute.xlu1 %3017  ;;  %v7499_v10 = vadd.s32 %v2830_v11, %v2828_v12  ;;  %v8033_v12 = vld [vmem:[#allocation13_spill] sm:$0xff] }
 0xa57   : > { %vm2839_vm13 = vcmp.eq.s32.totalorder %v8027_v19, %v7499_v10  ;;  %v2847_v38 = vand.u32 127, %v7499_v10  ;;  %v2913_v9 = vpop.f32.mrf.mxu1  ;;  %v3056_v4 = vpop.permute.xlu2 %3055  ;;  %v8034_v19 = vld [vmem:[#allocation4_spill] sm:$0xff] }
 0xa58   : > { %vm3900_vm5 = vcmp.lt.s32.totalorder %v2913_v9, 0  ;;  %v3901_v54 = vceil.f32 %v2913_v9  ;;  %v3902_v23 = vfloor.f32 %v2913_v9  ;;  %vm2863_vm11 = vmpackc.low %vm2839_vm13, %vm2839_vm13 }
 0xa59   : > { %v2855_v46 = vsub.s32 69, %v2847_v38  ;;  %v2871_v60 = vsel %vm2863_vm11, %v8029_v3, 0  ;;  %vm8036_vm13 = vmmov %vm8035_vm15 }
 0xa5a   : > { %v3903_v34 = vsel %vm3900_vm5, %v3901_v54, %v3902_v23  ;;  %v2887_v61 = vunpack.c.l.b16 %v2871_v60 }
 0xa5b   : > { %v3334_v48 = vsel %vm3245_vm0, %v8030_v39, %v2855_v46  ;;  %v3904_v56 = vcvt.f32.s32 %v3903_v34  ;;  %3111 = vrot.lane.b32.xlu0 %v2448_v41, %s4007_s4  ;;  %v2942_v39 = vand.u32 4294967168, %v7071_v43 }
 0xa5c   : > { %3342 = vst.msk [vmem:[%s7094_s27 + $0x38] sm:$0xff] %vm3254_vm1, %v3334_v48  ;;  %v2891_v51 = vpack.c.b16 %v2887_v61, %v2886_v52 }
 0xa5d   : > { %v3032_v59 = vpop.permute.xlu1 %3031  ;;  %v2949_v35 = vor.u32 %v3904_v56, %v2941_v33 }
 0xa5e   : > { %3527 = vmatmul.msk.bf16.gmra.mxu1 %vm363_vm3, %v2891_v51  ;;  %vm3890_vm3 = vcmp.lt.s32.totalorder %v7418_v40, 0 }
 0xa5f   : > { %3149 = vrot.lane.b32.xlu1 %v2949_v35, %s4009_s6  ;;  %v2915_v50 = vpop.f32.mrf.mxu1  ;;  %v3062_v0 = vpop.permute.xlu2 %3061  ;;  %v3893_v58 = vsel %vm3890_vm3, %v3891_v26, %v3892_v28 }
 0xa60   : > { %v3894_v62 = vcvt.f32.s32 %v3893_v58  ;;  %v3907_v49 = vfloor.f32 %v2915_v50  ;;  %vm3905_vm10 = vcmp.lt.s32.totalorder %v2915_v50, 0 }
 0xa63   : > { %3125 = vrot.lane.b32.xlu0 %v8031_v42, %s4008_s5 }
 0xa65   : > { %v3038_v53 = vpop.permute.xlu1 %3037  ;;  %v2994_v14 = vpop.permute.xlu0 %2993 }
 0xa66   : > { %v3189_v7 = vsel %vm3182_vm8, %v3180_v32, %v2994_v14 }
 0xa67   : > { %v3198_v31 = vsel %vm3191_vm6, %v3189_v7, %v3018_v17  ;;  %v2918_v29 = vpop.f32.mrf.mxu1  ;;  %v3906_v17 = vceil.f32 %v2915_v50  ;;  %v3068_v38 = vpop.permute.xlu2 %3067 }
 0xa68   : > { %vm3910_vm12 = vcmp.lt.s32.totalorder %v2918_v29, 0  ;;  %v3911_v18 = vceil.f32 %v2918_v29  ;;  %v3912_v13 = vfloor.f32 %v2918_v29  ;;  %v7528_v21 = vsel %vm3200_vm9, %v3198_v31, %v3042_v1 }
 0xa69   : > { %v2694_v1 = vand.u32 4294967168, %v8034_v19  ;;  %v3908_v46 = vsel %vm3905_vm10, %v3906_v17, %v3907_v49 }
 0xa6a   : > { %v3913_v22 = vsel %vm3910_vm12, %v3911_v18, %v3912_v13  ;;  %v3909_v60 = vcvt.f32.s32 %v3908_v46 }
 0xa6b   : > { %v3914_v11 = vcvt.f32.s32 %v3913_v22  ;;  %3131 = vrot.lane.b32.xlu0 %v8033_v12, %s4008_s5  ;;  %v2702_v23 = vor.u32 %v3894_v62, %v2694_v1  ;;  %v2945_v62 = vand.u32 4294967168, %v7298_v36  ;;  %v2946_v36 = vand.u32 4294967168, %v7332_v24 }
 0xa6c   : > { %v2950_v56 = vor.u32 %v3909_v60, %v2942_v39 }
 0xa6d   : > { %v3044_v5 = vpop.permute.xlu1 %3043  ;;  %v3008_v40 = vpop.permute.xlu0 %3007  ;;  %v2951_v6 = vor.u32 %v3914_v11, %v2943_v8 }
 0xa6e   : > { %v3193_v2 = vsel %vm3191_vm6, %v7173_v25, %v3008_v40  ;;  %v2944_v25 = vand.u32 4294967168, %v7139_v16 }
 0xa6f   : > { %v3202_v9 = vsel %vm3200_vm9, %v3193_v2, %v3032_v59  ;;  %3153 = vrot.lane.b32.xlu2 %v2951_v6, %s4009_s6  ;;  %v2920_v20 = vpop.f32.mrf.mxu1  ;;  %v7551_v16 = vpop.permute.xlu2 %3081 }
 0xa70   : > { %vm3915_vm8 = vcmp.lt.s32.totalorder %v2920_v20, 0  ;;  %v3916_v44 = vceil.f32 %v2920_v20  ;;  %v3917_v45 = vfloor.f32 %v2920_v20  ;;  %v7539_v54 = vsel %vm3209_vm14, %v3202_v9, %v3056_v4 }
 0xa72   : > { %v3918_v41 = vsel %vm3915_vm8, %v3916_v44, %v3917_v45 }
 0xa73   : > { %v3919_v3 = vcvt.f32.s32 %v3918_v41  ;;  %3137 = vrot.lane.b32.xlu0 %v2702_v23, %s4008_s5 }
 0xa75   : > { %v7543_v34 = vpop.permute.xlu1 %3057  ;;  %v3014_v52 = vpop.permute.xlu0 %3013  ;;  %v2952_v61 = vor.u32 %v3919_v3, %v2944_v25 }
 0xa76   : > { %v3196_v33 = vsel %vm3191_vm6, %v7379_v15, %v3014_v52 }
 0xa77   : > { %v3205_v4 = vsel %vm3200_vm9, %v3196_v33, %v3038_v53  ;;  %3155 = vrot.lane.b32.xlu1 %v2952_v61, %s4009_s6  ;;  %v3088_v50 = vpop.permute.xlu2 %3087 }
 0xa78   : > { %v3214_v48 = vsel %vm3209_vm14, %v3205_v4, %v3062_v0 }
 0xa7b   : > { %3151 = vrot.lane.b32.xlu0 %v2950_v56, %s4009_s6 }
 0xa7d   : > { %v3020_v51 = vpop.permute.xlu0 %3019  ;;  %v3064_v59 = vpop.permute.xlu1 %3063 }
 0xa7e   : > { %v3199_v35 = vsel %vm3191_vm6, %v7431_v57, %v3020_v51 }
 0xa7f   : > { %v3208_v15 = vsel %vm3200_vm9, %v3199_v35, %v3044_v5  ;;  %v7560_v32 = vpop.permute.xlu2 %3101 }
 0xa80   : > { %v3217_v43 = vsel %vm3209_vm14, %v3208_v15, %v3068_v38 }
 0xa85   : > { %v3034_v42 = vpop.permute.xlu0 %3033  ;;  %v7558_v55 = vpop.permute.xlu1 %3077 }
 0xa86   : > { %v3203_v33 = vsel %vm3200_vm9, %v7450_v37, %v3034_v42 }
 0xa87   : > { %v3108_v7 = vpop.permute.xlu2 %3107 }
 0xa8d   : > { %v3040_v0 = vpop.permute.xlu0 %3039  ;;  %v3084_v57 = vpop.permute.xlu1 %3083 }
 0xa8e   : > { %v3206_v53 = vsel %vm3200_vm9, %v7467_v27, %v3040_v0  ;;  %vm8037_vm9 = vmmov %vm8036_vm13 }
 0xa8f   : > { %v3215_v14 = vsel %vm3209_vm14, %v3206_v53, %v3064_v59  ;;  %v3114_v11 = vpop.permute.xlu2 %3113  ;;  %vm8038_vm5 = vmmov %vm8037_vm9 }
 0xa90   : > { %v7566_v26 = vsel %vm3218_vm7, %v3215_v14, %v3088_v50  ;;  %vm8039_vm3 = vmmov %vm8038_vm5 }
 0xa91   : > { %vm8040_vm12 = vmmov %vm8039_vm3 }
 0xa92   : > { %vm8042_vm10 = vmmov %vm8039_vm3 }
 0xa95   : > { %v3054_v28 = vpop.permute.xlu0 %3053  ;;  %v3090_v31 = vpop.permute.xlu1 %3089 }
 0xa97   : > { %v7583_v20 = vpop.permute.xlu2 %3127 }
 0xa9d   : > { %v3060_v29 = vpop.permute.xlu0 %3059  ;;  %v7575_v17 = vpop.permute.xlu1 %3103 }
 0xa9e   : > { %v3213_v18 = vsel %vm3209_vm14, %v7489_v30, %v3060_v29  ;;  %v2923_v13 = vpop.f32.mrf.mxu1 }
 0xa9f   : > { %v3222_v58 = vsel %vm3218_vm7, %v3213_v18, %v3084_v57  ;;  %vm3920_vm6 = vcmp.lt.s32.totalorder %v2923_v13, 0  ;;  %v3921_v22 = vceil.f32 %v2923_v13  ;;  %v3922_v8 = vfloor.f32 %v2923_v13  ;;  %v3134_v46 = vpop.permute.xlu2 %3133 }
 0xaa0   : > { %v7572_v27 = vsel %vm3227_vm4, %v3222_v58, %v3108_v7 }
 0xaa1   : > { %v3923_v12 = vsel %vm3920_vm6, %v3921_v22, %v3922_v8 }
 0xaa2   : > { %v3924_v5 = vcvt.f32.s32 %v3923_v12 }
 0xaa4   : > { %v2953_v40 = vor.u32 %v3924_v5, %v2945_v62 }
 0xaa5   : > { %v3066_v6 = vpop.permute.xlu0 %3065 }
 0xaa6   : > { %v3216_v30 = vsel %vm3209_vm14, %v7528_v21, %v3066_v6  ;;  %3157 = vrot.lane.b32.xlu0 %v2953_v40, %s4009_s6  ;;  %v2925_v49 = vpop.f32.mrf.mxu1  ;;  %v3110_v21 = vpop.permute.xlu1 %3109  ;;  %v2948_v40 = vand.u32 4294967168, %v7499_v10 }
 0xaa7   : > { %v3225_v2 = vsel %vm3218_vm7, %v3216_v30, %v3090_v31  ;;  %vm3925_vm2 = vcmp.lt.s32.totalorder %v2925_v49, 0  ;;  %v3926_v19 = vceil.f32 %v2925_v49  ;;  %v3927_v1 = vfloor.f32 %v2925_v49  ;;  %v3140_v39 = vpop.permute.xlu2 %3139 }
 0xaa8   : > { %v3234_v38 = vsel %vm3227_vm4, %v3225_v2, %v3114_v11 }
 0xaa9   : > { %v3928_v9 = vsel %vm3925_vm2, %v3926_v19, %v3927_v1 }
 0xaaa   : > { %v3929_v44 = vcvt.f32.s32 %v3928_v9 }
 0xaac   : > { %v2954_v45 = vor.u32 %v3929_v44, %v2946_v36 }
 0xaad   : > { %v3080_v23 = vpop.permute.xlu0 %3079 }
 0xaae   : > { %3159 = vrot.lane.b32.xlu2 %v2954_v45, %s4009_s6  ;;  %v3116_v52 = vpop.permute.xlu1 %3115  ;;  %v3220_v6 = vsel %vm3218_vm7, %v7539_v54, %v3080_v23 }
 0xaaf   : > { %v3229_v19 = vsel %vm3227_vm4, %v3220_v6, %v7575_v17 }
 0xab5   : > { %v3086_v41 = vpop.permute.xlu0 %3085 }
 0xab6   : > { %v3223_v25 = vsel %vm3218_vm7, %v3214_v48, %v3086_v41  ;;  %v3212_v48 = vsel %vm3209_vm14, %v3203_v33, %v7543_v34  ;;  %v3130_v51 = vpop.permute.xlu1 %3129 }
 0xab7   : > { %v3232_v3 = vsel %vm3227_vm4, %v3223_v25, %v3110_v21  ;;  %v3221_v59 = vsel %vm3218_vm7, %v3212_v48, %v7551_v16  ;;  %v3210_v16 = vsel %vm3209_vm14, %v7478_v63, %v3054_v28  ;;  %v2947_v28 = vand.u32 4294967168, %v7346_v47 }
 0xab8   : > { %v7589_v60 = vsel %vm8035_vm15, %v3232_v3, %v3134_v46  ;;  %v3219_v0 = vsel %vm3218_vm7, %v3210_v16, %v7558_v55 }
 0xab9   : > { %v3228_v53 = vsel %vm3227_vm4, %v3219_v0, %v7560_v32 }
 0xabd   : > { %v3092_v24 = vpop.permute.xlu0 %3091 }
 0xabe   : > { %v3226_v61 = vsel %vm3218_vm7, %v3217_v43, %v3092_v24  ;;  %v3136_v42 = vpop.permute.xlu1 %3135  ;;  %vm8041_vm7 = vmmov %vm8039_vm3 }
 0xabf   : > { %v3235_v4 = vsel %vm3227_vm4, %v3226_v61, %v3116_v52  ;;  %v3238_v10 = vsel %vm8041_vm7, %v3229_v19, %v7583_v20 }
 0xac0   : > { %v7596_v56 = vsel %vm8036_vm13, %v3235_v4, %v3140_v39 }
 0xac5   : > { %v3106_v35 = vpop.permute.xlu0 %3105 }
 0xac6   : > { %v3230_v15 = vsel %vm3227_vm4, %v3221_v59, %v3106_v35 }
 0xac7   : > { %v3239_v43 = vsel %vm8037_vm9, %v3230_v15, %v3130_v51 }
 0xac9   : > { %v3154_v37 = vpop.permute.xlu2 %3153 }
 0xaca   : > { %v3248_v50 = vsel %vm3245_vm0, %v3239_v43, %v3154_v37 }
 0xacb   : > { %3257 = vst.msk [vmem:[%s7607_s9 + $0x10] sm:$0xff] %vm3254_vm1, %v3248_v50 }
 0xacd   : > { %v3112_v34 = vpop.permute.xlu0 %3111 }
 0xad1   : > { %v3150_v57 = vpop.permute.xlu1 %3149 }
 0xad5   : > { %v3126_v14 = vpop.permute.xlu0 %3125 }
 0xad6   : > { %v3237_v7 = vsel %vm8038_vm5, %v3228_v53, %v3126_v14 }
 0xad7   : > { %v3246_v31 = vsel %vm3245_vm0, %v3237_v7, %v3150_v57 }
 0xad8   : > { %3255 = vst.msk [vmem:[%s7607_s9] sm:$0xff] %vm3254_vm1, %v3246_v31 }
 0xadb   : > { %v2928_v29 = vpop.f32.mrf.mxu1 }
 0xadc   : > { %vm3930_vm11 = vcmp.lt.s32.totalorder %v2928_v29, 0  ;;  %v3931_v18 = vceil.f32 %v2928_v29  ;;  %v3932_v13 = vfloor.f32 %v2928_v29 }
 0xadd   : > { %v3132_v58 = vpop.permute.xlu0 %3131 }
 0xade   : > { %v3933_v63 = vsel %vm3930_vm11, %v3931_v18, %v3932_v13  ;;  %v3240_v30 = vsel %vm8040_vm12, %v7572_v27, %v3132_v58 }
 0xadf   : > { %v3934_v55 = vcvt.f32.s32 %v3933_v63 }
 0xae1   : > { %v2955_v22 = vor.u32 %v3934_v55, %v2947_v28 }
 0xae3   : > { %3161 = vrot.lane.b32.xlu1 %v2955_v22, %s4009_s6  ;;  %v2930_v32 = vpop.f32.mrf.mxu1 }
 0xae4   : > { %vm3935_vm14 = vcmp.lt.s32.totalorder %v2930_v32, 0  ;;  %v3936_v8 = vceil.f32 %v2930_v32  ;;  %v3937_v11 = vfloor.f32 %v2930_v32 }
 0xae5   : > { %v3138_v12 = vpop.permute.xlu0 %3137 }
 0xae6   : > { %v3938_v62 = vsel %vm3935_vm14, %v3936_v8, %v3937_v11  ;;  %v3243_v5 = vsel %vm8039_vm3, %v3234_v38, %v3138_v12  ;;  %v3233_v38 = vsel %vm3227_vm4, %v7566_v26, %v3112_v34 }
 0xae7   : > { %v3939_v47 = vcvt.f32.s32 %v3938_v62  ;;  %v3242_v9 = vsel %vm8042_vm10, %v3233_v38, %v3136_v42 }
 0xae9   : > { %v2956_v49 = vor.u32 %v3939_v47, %v2948_v40  ;;  %v3156_v2 = vpop.permute.xlu1 %3155 }
 0xaea   : > { %v3249_v1 = vsel %vm3245_vm0, %v3240_v30, %v3156_v2 }
 0xaeb   : > { %3258 = vst.msk [vmem:[%s7607_s9 + $0x18] sm:$0xff] %vm3254_vm1, %v3249_v1  ;;  %3163 = vrot.lane.b32.xlu0 %v2956_v49, %s4009_s6 }
 0xaed   : > { %v3152_v54 = vpop.permute.xlu0 %3151 }
 0xaee   : > { %v3247_v27 = vsel %vm3245_vm0, %v3238_v10, %v3152_v54 }
 0xaef   : > { %3256 = vst.msk [vmem:[%s7607_s9 + $0x8] sm:$0xff] %vm3254_vm1, %v3247_v27 }
 0xb08   : > { %v3160_v17 = vpop.permute.xlu2 %3159 }
 0xb09   : > { %v3251_v36 = vsel %vm3245_vm0, %v3242_v9, %v3160_v17 }
 0xb0a   : > { %3260 = vst.msk [vmem:[%s7607_s9 + $0x28] sm:$0xff] %vm3254_vm1, %v3251_v36 }
 0xb18   : > { %v3158_v44 = vpop.permute.xlu0 %3157 }
 0xb19   : > { %v3250_v20 = vsel %vm3245_vm0, %v7589_v60, %v3158_v44 }
 0xb1a   : > { %3259 = vst.msk [vmem:[%s7607_s9 + $0x20] sm:$0xff] %vm3254_vm1, %v3250_v20 }
 0xb55   : > { %v3162_v45 = vpop.permute.xlu1 %3161 }
 0xb56   : > { %v3252_v23 = vsel %vm3245_vm0, %v3243_v5, %v3162_v45 }
 0xb57   : > { %3261 = vst.msk [vmem:[%s7607_s9 + $0x30] sm:$0xff] %vm3254_vm1, %v3252_v23 }
 0xb5d   : > { %v3164_v21 = vpop.permute.xlu0 %3163 }
 0xb5e   : > { %v3253_v26 = vsel %vm3245_vm0, %v7596_v56, %v3164_v21 }
 0xb5f   : > { %3262 = vst.msk [vmem:[%s7607_s9 + $0x38] sm:$0xff] %vm3254_vm1, %v3253_v26 }
 0xb60 PF: > { %s14_s12 = sadd.s32 1, %s3997_s12  }
 0xb61   : > { %p11_p4 = scmp.ge.s32.totalorder %s14_s12, 4  }
 0xb63   :  { %13 = sbr.rel (!%p11_p4) target bundleno = 1 (0x1), region = 78 }

</bundles_post_ra>
